<compile_context>
chip_gen: v7x
topology: tpu7x:2x2x1
jax: 0.10.0
libtpu: 0.0.40
codegen_flags: <defaults>
</compile_context>

<pallas_src>
import functools

import jax
import jax.numpy as jnp
from jax.experimental import pallas as pl
from jax.experimental.pallas import tpu as pltpu


_OUT_LANES = 128  # lane-dense output slab; q1 = col 0, q2 = col 1


def _round_up(x, m):
    return ((x + m - 1) // m) * m


def _num_tensorcores():
    """Heuristic TensorCore count per chip visible to one program."""
    try:
        kind = jax.devices()[0].device_kind.lower()
    except Exception:  # pragma: no cover - defensive
        return 1
    # v7x exposes 2 TensorCores per chip; v4/v5p megacore also wants 2
    # parallel grid steps.  v5e/v6e have a single TC.
    if "v7" in kind or "v5p" in kind or "v4" in kind:
        return 2
    return 1


# ----------------------------------------------------------------------------
# Pallas kernel: both Q-heads fused in one body.
#   per grid step i over the batch:
#     s   (tb, Ds) f32, a (tb, Da) f32
#     w14 (Din, 2H) bf16, b14 (1, 2H) f32        <- l1 | l4 side by side
#     w25 (2H, 2H)  bf16, b25 (1, 2H) f32        <- block-diag [w2, 0; 0, w5]
#     w36 (2H, 128) bf16, b36 (1, 128) f32       <- cols 0/1 = w3/w6, rest 0
#   output: q (tb, 128) f32 -> column 0 = Q1, column 1 = Q2
# ----------------------------------------------------------------------------
def _qnetwork_kernel(s_ref, a_ref,
                     w14_ref, b14_ref,
                     w25_ref, b25_ref,
                     w36_ref, b36_ref,
                     q_ref):
    # In-kernel lane concat of [state | action] (16 lanes -> cheap), bf16 for MXU.
    x = jnp.concatenate([s_ref[...], a_ref[...]], axis=1).astype(jnp.bfloat16)

    # Layer 1 of BOTH heads in one matmul: (tb, Din) @ (Din, 2H), f32 accum.
    h = jnp.dot(x, w14_ref[...], preferred_element_type=jnp.float32) + b14_ref[...]
    h = jnp.maximum(h, 0.0).astype(jnp.bfloat16)

    # Layer 2 of both heads via block-diagonal weight: (tb, 2H) @ (2H, 2H).
    g = jnp.dot(h, w25_ref[...], preferred_element_type=jnp.float32) + b25_ref[...]
    g = jnp.maximum(g, 0.0).astype(jnp.bfloat16)

    # Layer 3: block-diagonal, padded to 128 output lanes -> lane-dense store.
    q = jnp.dot(g, w36_ref[...], preferred_element_type=jnp.float32) + b36_ref[...]
    q_ref[...] = q.astype(q_ref.dtype)


# ----------------------------------------------------------------------------
# One-time parameter packing.  Params come in as (in, out)-layout weights and
# (1, out) biases (i.e. each PyTorch nn.Linear weight transposed).
# ----------------------------------------------------------------------------
def pack_qnetwork_params(params):
    (w1, b1), (w2, b2), (w3, b3), (w4, b4), (w5, b5), (w6, b6) = params
    hidden = w1.shape[1]

    # l1 | l4 fused side-by-side.
    w14 = jnp.concatenate([w1, w4], axis=1).astype(jnp.bfloat16)      # (Din, 2H)
    b14 = jnp.concatenate([b1, b4], axis=1).astype(jnp.float32)       # (1, 2H)

    # Block-diagonal middle layer: [w2, 0; 0, w5].
    w25 = jnp.zeros((2 * hidden, 2 * hidden), jnp.float32)
    w25 = w25.at[:hidden, :hidden].set(w2)
    w25 = w25.at[hidden:, hidden:].set(w5)
    w25 = w25.astype(jnp.bfloat16)
    b25 = jnp.concatenate([b2, b5], axis=1).astype(jnp.float32)       # (1, 2H)

    # Block-diagonal final layer padded to 128 lanes: col 0 <- w3, col 1 <- w6.
    w36 = jnp.zeros((2 * hidden, _OUT_LANES), jnp.float32)
    w36 = w36.at[:hidden, 0:1].set(w3)
    w36 = w36.at[hidden:, 1:2].set(w6)
    w36 = w36.astype(jnp.bfloat16)
    b36 = jnp.zeros((1, _OUT_LANES), jnp.float32)
    b36 = b36.at[0, 0].set(b3[0, 0])
    b36 = b36.at[0, 1].set(b6[0, 0])

    return dict(w14=w14, b14=b14, w25=w25, b25=b25, w36=w36, b36=b36)


# ----------------------------------------------------------------------------
# Wrapper: core-aware batch-tiled pallas_call. Returns (q1, q2), each (B, 1).
# ----------------------------------------------------------------------------
@functools.partial(jax.jit, static_argnames=("tile_cap",))
def qnetwork_forward(state, action, packed, *, tile_cap=2048):
    B, ds = state.shape
    da = action.shape[1]

    # Tile selection (trace-time Python): 1 step on 1-TC chips, 2 parallel
    # steps on 2-TC chips when the batch can be split into >=8-row halves.
    num_cores = _num_tensorcores()
    b8 = _round_up(B, 8)
    if num_cores >= 2 and b8 >= 16:
        tb = _round_up(-(-b8 // 2), 8)      # two equal "parallel" steps
    else:
        tb = b8                             # single grid step
    tb = max(8, min(tb, _round_up(tile_cap, 8)))
    b_pad = _round_up(B, tb)
    if b_pad != B:
        state = jnp.pad(state, ((0, b_pad - B), (0, 0)))
        action = jnp.pad(action, ((0, b_pad - B), (0, 0)))

    def batched(feat):
        return pl.BlockSpec((tb, feat), lambda i: (i, 0))

    def const(arr):
        shape = arr.shape
        return pl.BlockSpec(shape, lambda i: (0,) * len(shape))

    q = pl.pallas_call(
        _qnetwork_kernel,
        grid=(b_pad // tb,),
        in_specs=[
            batched(ds), batched(da),
            const(packed["w14"]), const(packed["b14"]),
            const(packed["w25"]), const(packed["b25"]),
            const(packed["w36"]), const(packed["b36"]),
        ],
        out_specs=batched(_OUT_LANES),
        out_shape=jax.ShapeDtypeStruct((b_pad, _OUT_LANES), jnp.float32),
        compiler_params=pltpu.CompilerParams(
            dimension_semantics=("parallel",),
            vmem_limit_bytes=32 * 1024 * 1024),
    )(state, action,
      packed["w14"], packed["b14"],
      packed["w25"], packed["b25"],
      packed["w36"], packed["b36"])

    return q[:B, 0:1], q[:B, 1:2]


# ----------------------------------------------------------------------------
# Deterministic parameter init (xavier_uniform weights, zero biases), matching
# weights_init_ in the PyTorch module. Weights stored as (in, out) f32.
# ----------------------------------------------------------------------------
def init_qnetwork_params(key, num_inputs, num_actions, hidden=256):
    d_in = num_inputs + num_actions

    def xavier(k, fan_in, fan_out):
        limit = jnp.sqrt(6.0 / (fan_in + fan_out))
        return jax.random.uniform(k, (fan_in, fan_out), jnp.float32,
                                  minval=-limit, maxval=limit)

    shapes = [(d_in, hidden), (hidden, hidden), (hidden, 1),
              (d_in, hidden), (hidden, hidden), (hidden, 1)]
    keys = jax.random.split(key, len(shapes))
    params = []
    for k, (fi, fo) in zip(keys, shapes):
        params.append((xavier(k, fi, fo), jnp.zeros((1, fo), jnp.float32)))
    return params


# ----------------------------------------------------------------------------
# Pure-JAX f32 reference (same math as QNetwork.forward).
# ----------------------------------------------------------------------------
def qnetwork_reference(state, action, params):
    xu = jnp.concatenate([state, action], axis=1)
    (w1, b1), (w2, b2), (w3, b3), (w4, b4), (w5, b5), (w6, b6) = params
    h = jax.nn.relu(xu @ w1 + b1)
    h = jax.nn.relu(h @ w2 + b2)
    q1 = h @ w3 + b3
    g = jax.nn.relu(xu @ w4 + b4)
    g = jax.nn.relu(g @ w5 + b5)
    q2 = g @ w6 + b6
    return q1, q2


if __name__ == "__main__":
    key = jax.random.PRNGKey(0)
    k_state, k_action, k_params = jax.random.split(key, 3)

    batch = 256
    num_inputs = 12
    num_actions = 4

    state = jax.random.normal(k_state, (batch, num_inputs), jnp.float32)
    action = jax.random.normal(k_action, (batch, num_actions), jnp.float32)
    params = init_qnetwork_params(k_params, num_inputs, num_actions, hidden=256)
    packed = pack_qnetwork_params(params)

    q1, q2 = qnetwork_forward(state, action, packed)
    jax.block_until_ready((q1, q2))

    r1, r2 = qnetwork_reference(state, action, params)
    assert q1.shape == (batch, 1) and q2.shape == (batch, 1)
    # bf16 weights/activations inside the kernel -> loosened tolerance vs f32 ref.
    assert jnp.allclose(q1, r1, atol=2e-2, rtol=2e-2), "q1 mismatch vs reference"
    assert jnp.allclose(q2, r2, atol=2e-2, rtol=2e-2), "q2 mismatch vs reference"

    print("KERNEL_OK")
</pallas_src>

<mosaic_0001>
module attributes {stable_mosaic.version = 11 : i64} {
  func.func @_qnetwork_kernel(%arg0: i32, %arg1: memref<256x12xf32, #tpu.memory_space<vmem>>, %arg2: memref<256x4xf32, #tpu.memory_space<vmem>>, %arg3: memref<16x512xbf16, #tpu.memory_space<vmem>>, %arg4: memref<1x512xf32, #tpu.memory_space<vmem>>, %arg5: memref<512x512xbf16, #tpu.memory_space<vmem>>, %arg6: memref<1x512xf32, #tpu.memory_space<vmem>>, %arg7: memref<512x128xbf16, #tpu.memory_space<vmem>>, %arg8: memref<1x128xf32, #tpu.memory_space<vmem>>, %arg9: memref<256x128xf32, #tpu.memory_space<vmem>>) attributes {dimension_semantics = [#tpu.dimension_semantics<parallel>], iteration_bounds = array<i64: 1>, scalar_prefetch = 0 : i64, scratch_operands = 0 : i64, tpu.core_type = #tpu.core_type<tc>, window_params = [{transform_indices = @transform_0, window_bounds = array<i64: 256, 12>}, {transform_indices = @transform_1, window_bounds = array<i64: 256, 4>}, {pipeline_mode = #tpu.pipeline_mode<synchronous>, transform_indices = @transform_2, window_bounds = array<i64: 16, 512>}, {pipeline_mode = #tpu.pipeline_mode<synchronous>, transform_indices = @transform_3, window_bounds = array<i64: 1, 512>}, {pipeline_mode = #tpu.pipeline_mode<synchronous>, transform_indices = @transform_4, window_bounds = array<i64: 512, 512>}, {pipeline_mode = #tpu.pipeline_mode<synchronous>, transform_indices = @transform_5, window_bounds = array<i64: 1, 512>}, {pipeline_mode = #tpu.pipeline_mode<synchronous>, transform_indices = @transform_6, window_bounds = array<i64: 512, 128>}, {pipeline_mode = #tpu.pipeline_mode<synchronous>, transform_indices = @transform_7, window_bounds = array<i64: 1, 128>}, {transform_indices = @transform_8, window_bounds = array<i64: 256, 128>}]} {
    %c0 = arith.constant 0 : index
    %c0_0 = arith.constant 0 : index
    %0 = vector.load %arg1[%c0, %c0_0] : memref<256x12xf32, #tpu.memory_space<vmem>>, vector<256x12xf32>
    %c0_1 = arith.constant 0 : index
    %c0_2 = arith.constant 0 : index
    %1 = vector.load %arg2[%c0_1, %c0_2] : memref<256x4xf32, #tpu.memory_space<vmem>>, vector<256x4xf32>
    %2 = tpu.concatenate %0, %1 in 1 : vector<256x12xf32>, vector<256x4xf32> -> vector<256x16xf32>
    %3 = arith.truncf %2 : vector<256x16xf32> to vector<256x16xbf16>
    %c0_3 = arith.constant 0 : index
    %c0_4 = arith.constant 0 : index
    %4 = vector.load %arg3[%c0_3, %c0_4] : memref<16x512xbf16, #tpu.memory_space<vmem>>, vector<16x512xbf16>
    %cst = arith.constant dense<0.000000e+00> : vector<256x512xf32>
    %5 = tpu.matmul %3, %4, %cst {dimension_numbers = #tpu.dot_dimension_numbers<[1], [0], [0], [1], [0, 0, 1, 1], [], []>} : vector<256x16xbf16>, vector<16x512xbf16>, vector<256x512xf32> -> vector<256x512xf32>
    %c0_5 = arith.constant 0 : index
    %c0_6 = arith.constant 0 : index
    %6 = vector.load %arg4[%c0_5, %c0_6] : memref<1x512xf32, #tpu.memory_space<vmem>>, vector<1x512xf32>
    %7 = vector.broadcast %6 : vector<1x512xf32> to vector<256x512xf32>
    %8 = arith.addf %5, %7 : vector<256x512xf32>
    %cst_7 = arith.constant 0.000000e+00 : f32
    %9 = vector.broadcast %cst_7 : f32 to vector<256x512xf32>
    %10 = arith.maximumf %8, %9 : vector<256x512xf32>
    %11 = arith.truncf %10 : vector<256x512xf32> to vector<256x512xbf16>
    %c0_8 = arith.constant 0 : index
    %c0_9 = arith.constant 0 : index
    %12 = vector.load %arg5[%c0_8, %c0_9] : memref<512x512xbf16, #tpu.memory_space<vmem>>, vector<512x512xbf16>
    %cst_10 = arith.constant dense<0.000000e+00> : vector<256x512xf32>
    %13 = tpu.matmul %11, %12, %cst_10 {dimension_numbers = #tpu.dot_dimension_numbers<[1], [0], [0], [1], [0, 0, 1, 1], [], []>} : vector<256x512xbf16>, vector<512x512xbf16>, vector<256x512xf32> -> vector<256x512xf32>
    %c0_11 = arith.constant 0 : index
    %c0_12 = arith.constant 0 : index
    %14 = vector.load %arg6[%c0_11, %c0_12] : memref<1x512xf32, #tpu.memory_space<vmem>>, vector<1x512xf32>
    %15 = vector.broadcast %14 : vector<1x512xf32> to vector<256x512xf32>
    %16 = arith.addf %13, %15 : vector<256x512xf32>
    %cst_13 = arith.constant 0.000000e+00 : f32
    %17 = vector.broadcast %cst_13 : f32 to vector<256x512xf32>
    %18 = arith.maximumf %16, %17 : vector<256x512xf32>
    %19 = arith.truncf %18 : vector<256x512xf32> to vector<256x512xbf16>
    %c0_14 = arith.constant 0 : index
    %c0_15 = arith.constant 0 : index
    %20 = vector.load %arg7[%c0_14, %c0_15] : memref<512x128xbf16, #tpu.memory_space<vmem>>, vector<512x128xbf16>
    %cst_16 = arith.constant dense<0.000000e+00> : vector<256x128xf32>
    %21 = tpu.matmul %19, %20, %cst_16 {dimension_numbers = #tpu.dot_dimension_numbers<[1], [0], [0], [1], [0, 0, 1, 1], [], []>} : vector<256x512xbf16>, vector<512x128xbf16>, vector<256x128xf32> -> vector<256x128xf32>
    %c0_17 = arith.constant 0 : index
    %c0_18 = arith.constant 0 : index
    %22 = vector.load %arg8[%c0_17, %c0_18] : memref<1x128xf32, #tpu.memory_space<vmem>>, vector<1x128xf32>
    %23 = vector.broadcast %22 : vector<1x128xf32> to vector<256x128xf32>
    %24 = arith.addf %21, %23 : vector<256x128xf32>
    %c0_19 = arith.constant 0 : index
    %c0_20 = arith.constant 0 : index
    %25 = vector.load %arg9[%c0_19, %c0_20] : memref<256x128xf32, #tpu.memory_space<vmem>>, vector<256x128xf32>
    tpu.vector_store %arg9[%c0_19, %c0_20], %24 {strides = array<i32>} : memref<256x128xf32, #tpu.memory_space<vmem>>, vector<256x128xf32>,
    return
  }
  func.func @transform_0(%arg0: i32) -> (i32, i32) {
    %c0_i32 = arith.constant 0 : i32
    %c0_i32_0 = arith.constant 0 : i32
    return %arg0, %c0_i32 : i32, i32
  }
  func.func @transform_1(%arg0: i32) -> (i32, i32) {
    %c0_i32 = arith.constant 0 : i32
    %c0_i32_0 = arith.constant 0 : i32
    return %arg0, %c0_i32 : i32, i32
  }
  func.func @transform_2(%arg0: i32) -> (i32, i32) {
    %c0_i32 = arith.constant 0 : i32
    %c0_i32_0 = arith.constant 0 : i32
    %c0_i32_1 = arith.constant 0 : i32
    return %c0_i32, %c0_i32_0 : i32, i32
  }
  func.func @transform_3(%arg0: i32) -> (i32, i32) {
    %c0_i32 = arith.constant 0 : i32
    %c0_i32_0 = arith.constant 0 : i32
    %c0_i32_1 = arith.constant 0 : i32
    return %c0_i32, %c0_i32_0 : i32, i32
  }
  func.func @transform_4(%arg0: i32) -> (i32, i32) {
    %c0_i32 = arith.constant 0 : i32
    %c0_i32_0 = arith.constant 0 : i32
    %c0_i32_1 = arith.constant 0 : i32
    return %c0_i32, %c0_i32_0 : i32, i32
  }
  func.func @transform_5(%arg0: i32) -> (i32, i32) {
    %c0_i32 = arith.constant 0 : i32
    %c0_i32_0 = arith.constant 0 : i32
    %c0_i32_1 = arith.constant 0 : i32
    return %c0_i32, %c0_i32_0 : i32, i32
  }
  func.func @transform_6(%arg0: i32) -> (i32, i32) {
    %c0_i32 = arith.constant 0 : i32
    %c0_i32_0 = arith.constant 0 : i32
    %c0_i32_1 = arith.constant 0 : i32
    return %c0_i32, %c0_i32_0 : i32, i32
  }
  func.func @transform_7(%arg0: i32) -> (i32, i32) {
    %c0_i32 = arith.constant 0 : i32
    %c0_i32_0 = arith.constant 0 : i32
    %c0_i32_1 = arith.constant 0 : i32
    return %c0_i32, %c0_i32_0 : i32, i32
  }
  func.func @transform_8(%arg0: i32) -> (i32, i32) {
    %c0_i32 = arith.constant 0 : i32
    %c0_i32_0 = arith.constant 0 : i32
    return %arg0, %c0_i32 : i32, i32
  }
}

</mosaic_0001>

<bundles_post_ra>
// kernel: qnetwork_forward.1
= control target key start
LH: loop header
LB: loop body
LE: loop exit
PB: predicated region body
PF: predicated region fallthrough
CT: control target
= control target key end

     0   :  { %13 = vsyncpa [#allocation3], 0  ;;  %s4350_s27 = smov [#allocation2]   ;;  %s5385_s0 = inlined_call_operand.vmem [shape: f32[256,12], index: 0, kind: input, shape index: {}]   ;;  %s5386_s1 = inlined_call_operand.vmem [shape: f32[256,4], index: 1, kind: input, shape index: {}]   ;;  %s5387_s2 = inlined_call_operand.vmem [shape: bf16[16,512], index: 2, kind: input, shape index: {}]   ;;  %s5388_s3 = inlined_call_operand.vmem [shape: f32[1,512], index: 3, kind: input, shape index: {}]   ;;  %s5389_s4 = inlined_call_operand.hbm [shape: bf16[512,512], index: 4, kind: input, shape index: {}]   ;;  %s5390_s5 = inlined_call_operand.vmem [shape: f32[1,512], index: 5, kind: input, shape index: {}]   ;;  %s5391_s6 = inlined_call_operand.vmem [shape: bf16[512,128], index: 6, kind: input, shape index: {}]   ;;  %s5392_s7 = inlined_call_operand.vmem [shape: f32[1,128], index: 7, kind: input, shape index: {}]   ;;  %s5393_s8 = inlined_call_operand.vmem [shape: f32[256,128], index: 8, kind: output, shape index: {}]  }
   0x1   :  { %s27_s28 = sshll.u32 %s4350_s27, 4  ;;  %s4326_s9 = scalar_lea.hbm %s5389_s4, 16384  ;;  %s28_s28 = int_to_ptr.vmem [resolvable:$true] %s27_s28 }
   0x2   :  { %p4327_p0 = scmp.ne.s32.totalorder %s5389_s4, %s4326_s9  ;;  %p4330_p1 = scmp.lt.u32.totalorder %s4326_s9, %s5389_s4 }
   0x4   :  { %p4332_p2 = pnand %p4330_p1, %p4327_p0 }
   0x6   :  { %4335 = shalt.err (!%p4332_p2)
}
   0x7   :  { %s4336_s14 = scalar_lea.vmem %s28_s28, 16384  ;;  %p4341_p4 = scmp.lt.s32.totalorder %s28_s28, %s28_s28 }
   0x8   :  { %p4337_p3 = scmp.ne.s32.totalorder %s28_s28, %s4336_s14  ;;  %p4342_p5 = scmp.lt.s32.totalorder %s4336_s14, %s4336_s14 }
   0xa   :  { %p4343_p6 = por %p4342_p5, %p4341_p4 }
   0xc   :  { %p4344_p7 = pnand %p4343_p6, %p4337_p3 }
   0xe   :  { %4347 = shalt.err (!%p4344_p7)
}
   0xf   :  { %s4351_s15 = smov 256   ;;  %s4352_s16 = smov 16  }
  0x10   :  { %33 = dma.hbm_to_vmem [thread:$0]  %s5389_s4, 16384, %s28_s28, [#allocation3], %s4351_s15, %s4351_s15, %s4352_s16  }
  0x11   :  { %4348 = dma.done.wait [#allocation3], 16384  }
  0x12   :  { %4349 = vsyncadd [#allocation3], 4294950912  ;;  %v4353_v0 = vmov 0   ;;  %v76_v1 = vld [vmem:[%s5386_s1] sm:$0xff]  ;;  %v77_v2 = vld [vmem:[%s5386_s1 + $0x8] sm:$0xff]  ;;  %s4354_s12 = smov 12  }
  0x13   :  { %412 = vmatprep.mubr.bf16.mxu0 %v4353_v0  ;;  %605 = vmatprep.mubr.bf16.mxu1 %v4353_v0  ;;  %v78_v3 = vld [vmem:[%s5386_s1 + $0x10] sm:$0xff]  ;;  %v4016_v4 = vpack.i.bf16 %v77_v2, %v76_v1  ;;  %v79_v5 = vld [vmem:[%s5386_s1 + $0x18] sm:$0xff]  ;;  %v80_v6 = vld [vmem:[%s5386_s1 + $0x20] sm:$0xff]  ;;  %vm236_vm0 = vcmask 97280   ;;  %vm331_vm1 = vcmask 130048  }
  0x14   :  { %v81_v7 = vld [vmem:[%s5386_s1 + $0x28] sm:$0xff]  ;;  %v82_v9 = vld [vmem:[%s5386_s1 + $0x30] sm:$0xff]  ;;  %v83_v10 = vld [vmem:[%s5386_s1 + $0x38] sm:$0xff]  ;;  %v4021_v11 = vpack.i.bf16 %v79_v5, %v78_v3 }
  0x15   :  { %v4026_v8 = vpack.i.bf16 %v81_v7, %v80_v6  ;;  %4017 = vrot.lane.b32.xlu0 %v4016_v4, %s4354_s12  ;;  %v4031_v12 = vpack.i.bf16 %v83_v10, %v82_v9  ;;  %v84_v13 = vld [vmem:[%s5386_s1 + $0x40] sm:$0xff]  ;;  %v85_v14 = vld [vmem:[%s5386_s1 + $0x48] sm:$0xff]  ;;  %v86_v15 = vld [vmem:[%s5386_s1 + $0x50] sm:$0xff] }
  0x16   :  { %v87_v16 = vld [vmem:[%s5386_s1 + $0x58] sm:$0xff]  ;;  %v4036_v17 = vpack.i.bf16 %v85_v14, %v84_v13  ;;  %v88_v19 = vld [vmem:[%s5386_s1 + $0x60] sm:$0xff]  ;;  %v89_v20 = vld [vmem:[%s5386_s1 + $0x68] sm:$0xff] }
  0x17   :  { %4027 = vrot.lane.b32.xlu1 %v4026_v8, %s4354_s12  ;;  %v4041_v18 = vpack.i.bf16 %v87_v16, %v86_v15  ;;  %v90_v21 = vld [vmem:[%s5386_s1 + $0x70] sm:$0xff]  ;;  %v91_v22 = vld [vmem:[%s5386_s1 + $0x78] sm:$0xff]  ;;  %v92_v23 = vld [vmem:[%s5386_s1 + $0x80] sm:$0xff]  ;;  %v4046_v25 = vpack.i.bf16 %v89_v20, %v88_v19 }
  0x18   :  { %v93_v24 = vld [vmem:[%s5386_s1 + $0x88] sm:$0xff]  ;;  %v4096_v26 = vld [vmem:[%s5387_s2 + $0x4] ss:$16 sps:$4 sm:$0xff]   ;;  %v4051_v27 = vpack.i.bf16 %v91_v22, %v90_v21  ;;  %v4100_v29 = vld [vmem:[%s5387_s2] ss:$16 sps:$4 sm:$0xff]  }
  0x19   :  { %4022 = vrot.lane.b32.xlu0 %v4021_v11, %s4354_s12  ;;  %v4098_v28 = vld [vmem:[%s5387_s2 + $0xc] ss:$16 sps:$4 sm:$0xff]   ;;  %v94_v30 = vld [vmem:[%s5386_s1 + $0x90] sm:$0xff]  ;;  %380 = vmatprep.subr.bf16.mxu0 %v4096_v26  ;;  %v4101_v32 = vld [vmem:[%s5387_s2 + $0x8] ss:$16 sps:$4 sm:$0xff]   ;;  %v4056_v34 = vpack.i.bf16 %v93_v24, %v92_v23 }
  0x1a   :  { %v95_v31 = vld [vmem:[%s5386_s1 + $0x98] sm:$0xff]  ;;  %v96_v33 = vld [vmem:[%s5386_s1 + $0xa0] sm:$0xff]  ;;  %573 = vmatprep.subr.bf16.mxu1 %v4098_v28  ;;  %381 = vmatpush1.bf16.msra.mxu0 %v4100_v29  ;;  %v97_v35 = vld [vmem:[%s5386_s1 + $0xa8] sm:$0xff] }
  0x1b   :  { %4032 = vrot.lane.b32.xlu1 %v4031_v12, %s4354_s12  ;;  %v98_v36 = vld [vmem:[%s5386_s1 + $0xb0] sm:$0xff]  ;;  %v99_v37 = vld [vmem:[%s5386_s1 + $0xb8] sm:$0xff]  ;;  %574 = vmatpush1.bf16.msra.mxu1 %v4101_v32  ;;  %v4061_v38 = vpack.i.bf16 %v95_v31, %v94_v30  ;;  %v100_v39 = vld [vmem:[%s5386_s1 + $0xc0] sm:$0xff]  ;;  %v4066_v41 = vpack.i.bf16 %v97_v35, %v96_v33 }
  0x1c   :  { %v101_v40 = vld [vmem:[%s5386_s1 + $0xc8] sm:$0xff]  ;;  %v102_v42 = vld [vmem:[%s5386_s1 + $0xd0] sm:$0xff]  ;;  %v103_v43 = vld [vmem:[%s5386_s1 + $0xd8] sm:$0xff]  ;;  %v4071_v44 = vpack.i.bf16 %v99_v37, %v98_v36 }
  0x1d   :  { %4037 = vrot.lane.b32.xlu0 %v4036_v17, %s4354_s12  ;;  %v104_v45 = vld [vmem:[%s5386_s1 + $0xe0] sm:$0xff]  ;;  %v105_v46 = vld [vmem:[%s5386_s1 + $0xe8] sm:$0xff]  ;;  %v4076_v47 = vpack.i.bf16 %v101_v40, %v100_v39  ;;  %v106_v48 = vld [vmem:[%s5386_s1 + $0xf0] sm:$0xff]  ;;  %v4081_v50 = vpack.i.bf16 %v103_v43, %v102_v42 }
  0x1e   :  { %v107_v49 = vld [vmem:[%s5386_s1 + $0xf8] sm:$0xff]  ;;  %v4086_v51 = vpack.i.bf16 %v105_v46, %v104_v45  ;;  %v4104_v53 = vld [vmem:[#allocation2 + $0x4] ss:$16 sps:$4 sm:$0xff]   ;;  %v45_v57 = vld [vmem:[%s5385_s0 + $0x8] sm:$0xff] }
  0x1f   :  { %4042 = vrot.lane.b32.xlu1 %v4041_v18, %s4354_s12  ;;  %v4091_v52 = vpack.i.bf16 %v107_v49, %v106_v48  ;;  %v4107_v54 = vld [vmem:[#allocation2 + $0xc] ss:$16 sps:$4 sm:$0xff]   ;;  %1748 = vmatprep.subr.bf16.mxu0 %v4104_v53  ;;  %v44_v56 = vld [vmem:[%s5385_s0] sm:$0xff]  ;;  %v46_v62 = vld [vmem:[%s5385_s0 + $0x10] sm:$0xff] }
  0x20   :  { %2134 = vmatprep.subr.bf16.mxu1 %v4107_v54  ;;  %v47_v2 = vld [vmem:[%s5385_s0 + $0x18] sm:$0xff]  ;;  %v4102_v3 = vld [vmem:[#allocation2] ss:$16 sps:$4 sm:$0xff]   ;;  %v4110_v7 = vld [vmem:[#allocation2 + $0x24] ss:$16 sps:$4 sm:$0xff]  }
  0x21   :  { %4047 = vrot.lane.b32.xlu0 %v4046_v25, %s4354_s12  ;;  %v4105_v4 = vld [vmem:[#allocation2 + $0x8] ss:$16 sps:$4 sm:$0xff]   ;;  %v4113_v8 = vld [vmem:[#allocation2 + $0x2c] ss:$16 sps:$4 sm:$0xff]   ;;  %v4108_v12 = vld [vmem:[#allocation2 + $0x20] ss:$16 sps:$4 sm:$0xff]  }
  0x22   :  { %v4111_v13 = vld [vmem:[#allocation2 + $0x28] ss:$16 sps:$4 sm:$0xff]   ;;  %v4116_v14 = vld [vmem:[#allocation2 + $0x44] ss:$16 sps:$4 sm:$0xff]   ;;  %v4119_v15 = vld [vmem:[#allocation2 + $0x4c] ss:$16 sps:$4 sm:$0xff]  }
  0x23   :  { %4052 = vrot.lane.b32.xlu1 %v4051_v27, %s4354_s12  ;;  %v48_v19 = vld [vmem:[%s5385_s0 + $0x20] sm:$0xff]  ;;  %v49_v20 = vld [vmem:[%s5385_s0 + $0x28] sm:$0xff]  ;;  %v50_v35 = vld [vmem:[%s5385_s0 + $0x30] sm:$0xff] }
  0x24   :  { %v4114_v21 = vld [vmem:[#allocation2 + $0x40] ss:$16 sps:$4 sm:$0xff]   ;;  %v4117_v22 = vld [vmem:[#allocation2 + $0x48] ss:$16 sps:$4 sm:$0xff]   ;;  %v4122_v23 = vld [vmem:[#allocation2 + $0x64] ss:$16 sps:$4 sm:$0xff]  }
  0x25   :  { %4057 = vrot.lane.b32.xlu0 %v4056_v34, %s4354_s12  ;;  %v4125_v24 = vld [vmem:[#allocation2 + $0x6c] ss:$16 sps:$4 sm:$0xff]   ;;  %v4120_v28 = vld [vmem:[#allocation2 + $0x60] ss:$16 sps:$4 sm:$0xff]   ;;  %v4123_v29 = vld [vmem:[#allocation2 + $0x68] ss:$16 sps:$4 sm:$0xff]  }
  0x26   :  { %v4128_v30 = vld [vmem:[#allocation2 + $0x84] ss:$16 sps:$4 sm:$0xff]   ;;  %v4131_v31 = vld [vmem:[#allocation2 + $0x8c] ss:$16 sps:$4 sm:$0xff]   ;;  %v4126_v37 = vld [vmem:[#allocation2 + $0x80] ss:$16 sps:$4 sm:$0xff]  }
  0x27   :  { %4062 = vrot.lane.b32.xlu1 %v4061_v38, %s4354_s12  ;;  %v51_v36 = vld [vmem:[%s5385_s0 + $0x38] sm:$0xff]  ;;  %v4134_v39 = vld [vmem:[#allocation2 + $0xa4] ss:$16 sps:$4 sm:$0xff]   ;;  %v4138_v53 = vld [vmem:[#allocation2 + $0xc0] ss:$16 sps:$4 sm:$0xff]  }
  0x28   :  { %v4129_v38 = vld [vmem:[#allocation2 + $0x88] ss:$16 sps:$4 sm:$0xff]   ;;  %v4137_v40 = vld [vmem:[#allocation2 + $0xac] ss:$16 sps:$4 sm:$0xff]   ;;  %v4140_v46 = vld [vmem:[#allocation2 + $0xc4] ss:$16 sps:$4 sm:$0xff]  }
  0x29   :  { %4067 = vrot.lane.b32.xlu0 %v4066_v41, %s4354_s12  ;;  %v4135_v45 = vld [vmem:[#allocation2 + $0xa8] ss:$16 sps:$4 sm:$0xff]  }
  0x2a   :  { %v4141_v54 = vld [vmem:[#allocation2 + $0xc8] ss:$16 sps:$4 sm:$0xff]  }
  0x2b   :  { %4072 = vrot.lane.b32.xlu1 %v4071_v44, %s4354_s12  ;;  %v4132_v44 = vld [vmem:[#allocation2 + $0xa0] ss:$16 sps:$4 sm:$0xff]  }
  0x2d   :  { %4077 = vrot.lane.b32.xlu0 %v4076_v47, %s4354_s12  ;;  %v4143_v47 = vld [vmem:[#allocation2 + $0xcc] ss:$16 sps:$4 sm:$0xff]  }
  0x2f   :  { %4082 = vrot.lane.b32.xlu1 %v4081_v50, %s4354_s12 }
  0x31   :  { %4087 = vrot.lane.b32.xlu0 %v4086_v51, %s4354_s12  ;;  %v52_v51 = vld [vmem:[%s5385_s0 + $0x40] sm:$0xff] }
  0x33   :  { %4092 = vrot.lane.b32.xlu1 %v4091_v52, %s4354_s12  ;;  %v53_v52 = vld [vmem:[%s5385_s0 + $0x48] sm:$0xff] }
  0x87   :  { %v4018_v55 = vpop.permute.xlu0 %4017 }
  0x88   :  { %v4020_v58 = vunpack.i.h.bf16 %v4018_v55  ;;  %v4019_v59 = vunpack.i.l.bf16 %v4018_v55  ;;  %v4146_v55 = vld [vmem:[#allocation2 + $0xe4] ss:$16 sps:$4 sm:$0xff]  }
  0x89   :  { %v4028_v11 = vpop.permute.xlu1 %4027 }
  0x8a   :  { %v237_v60 = vsel %vm236_vm0, %v44_v56, %v4019_v59  ;;  %v238_v61 = vsel %vm236_vm0, %v45_v57, %v4020_v58  ;;  %v4030_v17 = vunpack.i.h.bf16 %v4028_v11  ;;  %v4029_v18 = vunpack.i.l.bf16 %v4028_v11  ;;  %v4149_v56 = vld [vmem:[#allocation2 + $0xec] ss:$16 sps:$4 sm:$0xff]  }
  0x8b   :  { %v269_v63 = vpack.c.bf16 %v238_v61, %v237_v60  ;;  %v4023_v1 = vpop.permute.xlu0 %4022  ;;  %v4144_v60 = vld [vmem:[#allocation2 + $0xe0] ss:$16 sps:$4 sm:$0xff]   ;;  %v4147_v61 = vld [vmem:[#allocation2 + $0xe8] ss:$16 sps:$4 sm:$0xff]  }
  0x8c   :  { %v4025_v5 = vunpack.i.h.bf16 %v4023_v1  ;;  %v4024_v6 = vunpack.i.l.bf16 %v4023_v1  ;;  %v241_v25 = vsel %vm236_vm0, %v48_v19, %v4029_v18  ;;  %v242_v26 = vsel %vm236_vm0, %v49_v20, %v4030_v17  ;;  %v56_v20 = vld [vmem:[%s5385_s0 + $0x60] sm:$0xff] }
  0x8d   :  { %3338 = vmatmul.mubr.msk.bf16.vlgmr.msra.gmra.mrb[0].mxu0 %vm331_vm1, %v269_v63  ;;  %3354 = vmatmul.mubr.msk.bf16.vlgmr.msra.gmra.mrb[0].mxu1 %vm331_vm1, %v269_v63  ;;  %v4033_v27 = vpop.permute.xlu1 %4032  ;;  %v271_v32 = vpack.c.bf16 %v242_v26, %v241_v25  ;;  %v4155_v63 = vld [vmem:[#allocation2 + $0x10c] ss:$16 sps:$4 sm:$0xff]  }
  0x8e   :  { %v239_v9 = vsel %vm236_vm0, %v46_v62, %v4024_v6  ;;  %v240_v10 = vsel %vm236_vm0, %v47_v2, %v4025_v5  ;;  %422 = vmatprep.mubr.bf16.mxu0 %v4353_v0  ;;  %615 = vmatprep.mubr.bf16.mxu1 %v4353_v0  ;;  %v4035_v33 = vunpack.i.h.bf16 %v4033_v27  ;;  %v4034_v34 = vunpack.i.l.bf16 %v4033_v27  ;;  %v4152_v62 = vld [vmem:[#allocation2 + $0x104] ss:$16 sps:$4 sm:$0xff]   ;;  %v55_v5 = vld [vmem:[%s5385_s0 + $0x58] sm:$0xff]  ;;  %v4150_v6 = vld [vmem:[#allocation2 + $0x100] ss:$16 sps:$4 sm:$0xff]  }
  0x8f   :  { %1749 = vmatpush1.bf16.msra.mxu0 %v4102_v3  ;;  %2135 = vmatpush1.bf16.msra.mxu1 %v4105_v4  ;;  %v270_v16 = vpack.c.bf16 %v240_v10, %v239_v9  ;;  %v4038_v43 = vpop.permute.xlu0 %4037  ;;  %v54_v4 = vld [vmem:[%s5385_s0 + $0x50] sm:$0xff]  ;;  %v4161_v9 = vld [vmem:[#allocation2 + $0x12c] ss:$16 sps:$4 sm:$0xff]  }
  0x90   :  { %1750 = vmatprep.subr.bf16.mxu0 %v4110_v7  ;;  %2136 = vmatprep.subr.bf16.mxu1 %v4113_v8  ;;  %v243_v41 = vsel %vm236_vm0, %v50_v35, %v4034_v34  ;;  %v244_v42 = vsel %vm236_vm0, %v51_v36, %v4035_v33  ;;  %v4040_v49 = vunpack.i.h.bf16 %v4038_v43  ;;  %v4039_v50 = vunpack.i.l.bf16 %v4038_v43  ;;  %v4153_v7 = vld [vmem:[#allocation2 + $0x108] ss:$16 sps:$4 sm:$0xff]   ;;  %v4158_v8 = vld [vmem:[#allocation2 + $0x124] ss:$16 sps:$4 sm:$0xff]   ;;  %v4173_v25 = vld [vmem:[#allocation2 + $0x16c] ss:$16 sps:$4 sm:$0xff]  }
  0x91   :  { %v272_v48 = vpack.c.bf16 %v244_v42, %v243_v41  ;;  %v4043_v59 = vpop.permute.xlu1 %4042  ;;  %v58_v36 = vld [vmem:[%s5385_s0 + $0x70] sm:$0xff]  ;;  %v4185_v41 = vld [vmem:[#allocation2 + $0x1ac] ss:$16 sps:$4 sm:$0xff]  }
  0x92   :  { %v245_v57 = vsel %vm236_vm0, %v52_v51, %v4039_v50  ;;  %v246_v58 = vsel %vm236_vm0, %v53_v52, %v4040_v49  ;;  %v4045_v2 = vunpack.i.h.bf16 %v4043_v59  ;;  %v4044_v3 = vunpack.i.l.bf16 %v4043_v59  ;;  %v60_v52 = vld [vmem:[%s5385_s0 + $0x80] sm:$0xff] }
  0x93   :  { %1751 = vmatpush1.bf16.msra.mxu0 %v4108_v12  ;;  %2137 = vmatpush1.bf16.msra.mxu1 %v4111_v13  ;;  %v273_v1 = vpack.c.bf16 %v246_v58, %v245_v57  ;;  %v4048_v12 = vpop.permute.xlu0 %4047  ;;  %v4156_v13 = vld [vmem:[#allocation2 + $0x120] ss:$16 sps:$4 sm:$0xff]  }
  0x94   :  { %1752 = vmatprep.subr.bf16.mxu0 %v4116_v14  ;;  %2138 = vmatprep.subr.bf16.mxu1 %v4119_v15  ;;  %v247_v10 = vsel %vm236_vm0, %v54_v4, %v4044_v3  ;;  %v248_v11 = vsel %vm236_vm0, %v55_v5, %v4045_v2  ;;  %v4159_v14 = vld [vmem:[#allocation2 + $0x128] ss:$16 sps:$4 sm:$0xff]   ;;  %v4164_v15 = vld [vmem:[#allocation2 + $0x144] ss:$16 sps:$4 sm:$0xff]   ;;  %v4050_v18 = vunpack.i.h.bf16 %v4048_v12  ;;  %v4049_v19 = vunpack.i.l.bf16 %v4048_v12 }
  0x95   :  { %3339 = vmatmul.mubr.msk.bf16.gmra.mrb[4].mxu0 %vm331_vm1, %v270_v16  ;;  %3355 = vmatmul.mubr.msk.bf16.gmra.mrb[4].mxu1 %vm331_vm1, %v270_v16  ;;  %v4167_v16 = vld [vmem:[#allocation2 + $0x14c] ss:$16 sps:$4 sm:$0xff]   ;;  %v274_v17 = vpack.c.bf16 %v248_v11, %v247_v10 }
  0x96   :  { %432 = vmatprep.mubr.bf16.mxu0 %v4353_v0  ;;  %625 = vmatprep.mubr.bf16.mxu1 %v4353_v0  ;;  %v249_v26 = vsel %vm236_vm0, %v56_v20, %v4049_v19 }
  0x97   :  { %1753 = vmatpush1.bf16.msra.mxu0 %v4114_v21  ;;  %2139 = vmatpush1.bf16.msra.mxu1 %v4117_v22  ;;  %v57_v21 = vld [vmem:[%s5385_s0 + $0x68] sm:$0xff]  ;;  %v4162_v22 = vld [vmem:[#allocation2 + $0x140] ss:$16 sps:$4 sm:$0xff]  }
  0x98   :  { %1754 = vmatprep.subr.bf16.mxu0 %v4122_v23  ;;  %2140 = vmatprep.subr.bf16.mxu1 %v4125_v24  ;;  %v4165_v23 = vld [vmem:[#allocation2 + $0x148] ss:$16 sps:$4 sm:$0xff]   ;;  %v4170_v24 = vld [vmem:[#allocation2 + $0x164] ss:$16 sps:$4 sm:$0xff]   ;;  %v250_v27 = vsel %vm236_vm0, %v57_v21, %v4050_v18 }
  0x99   :  { %v275_v33 = vpack.c.bf16 %v250_v27, %v249_v26  ;;  %v4197_v26 = vld [vmem:[#allocation2 + $0x1ec] ss:$16 sps:$4 sm:$0xff]  }
  0x9b   :  { %1755 = vmatpush1.bf16.msra.mxu0 %v4120_v28  ;;  %2141 = vmatpush1.bf16.msra.mxu1 %v4123_v29  ;;  %v4053_v28 = vpop.permute.xlu1 %4052  ;;  %v4168_v29 = vld [vmem:[#allocation2 + $0x160] ss:$16 sps:$4 sm:$0xff]  }
  0x9c   :  { %1756 = vmatprep.subr.bf16.mxu0 %v4128_v30  ;;  %2142 = vmatprep.subr.bf16.mxu1 %v4131_v31  ;;  %v4171_v30 = vld [vmem:[#allocation2 + $0x168] ss:$16 sps:$4 sm:$0xff]   ;;  %v4176_v31 = vld [vmem:[#allocation2 + $0x184] ss:$16 sps:$4 sm:$0xff]   ;;  %v4055_v34 = vunpack.i.h.bf16 %v4053_v28  ;;  %v4054_v35 = vunpack.i.l.bf16 %v4053_v28 }
  0x9d   :  { %3340 = vmatmul.mubr.msk.bf16.gmra.mrb[8].mxu0 %vm331_vm1, %v271_v32  ;;  %3356 = vmatmul.mubr.msk.bf16.gmra.mrb[8].mxu1 %vm331_vm1, %v271_v32  ;;  %v4179_v32 = vld [vmem:[#allocation2 + $0x18c] ss:$16 sps:$4 sm:$0xff]  }
  0x9e   :  { %442 = vmatprep.mubr.bf16.mxu0 %v4353_v0  ;;  %635 = vmatprep.mubr.bf16.mxu1 %v4353_v0  ;;  %v251_v42 = vsel %vm236_vm0, %v58_v36, %v4054_v35  ;;  %v70_v35 = vld [vmem:[%s5385_s0 + $0xd0] sm:$0xff]  ;;  %v71_v36 = vld [vmem:[%s5385_s0 + $0xd8] sm:$0xff] }
  0x9f   :  { %1757 = vmatpush1.bf16.msra.mxu0 %v4126_v37  ;;  %2143 = vmatpush1.bf16.msra.mxu1 %v4129_v38  ;;  %v59_v37 = vld [vmem:[%s5385_s0 + $0x78] sm:$0xff]  ;;  %v4174_v38 = vld [vmem:[#allocation2 + $0x180] ss:$16 sps:$4 sm:$0xff]   ;;  %v4063_v58 = vpop.permute.xlu1 %4062 }
  0xa0   :  { %1758 = vmatprep.subr.bf16.mxu0 %v4134_v39  ;;  %2144 = vmatprep.subr.bf16.mxu1 %v4137_v40  ;;  %v4177_v39 = vld [vmem:[#allocation2 + $0x188] ss:$16 sps:$4 sm:$0xff]   ;;  %v4182_v40 = vld [vmem:[#allocation2 + $0x1a4] ss:$16 sps:$4 sm:$0xff]   ;;  %v252_v43 = vsel %vm236_vm0, %v59_v37, %v4055_v34 }
  0xa1   :  { %v276_v49 = vpack.c.bf16 %v252_v43, %v251_v42 }
  0xa3   :  { %1759 = vmatpush1.bf16.msra.mxu0 %v4132_v44  ;;  %2145 = vmatpush1.bf16.msra.mxu1 %v4135_v45  ;;  %v4058_v44 = vpop.permute.xlu0 %4057  ;;  %v4180_v45 = vld [vmem:[#allocation2 + $0x1a0] ss:$16 sps:$4 sm:$0xff]   ;;  %v4073_v11 = vpop.permute.xlu1 %4072 }
  0xa4   :  { %1760 = vmatprep.subr.bf16.mxu0 %v4140_v46  ;;  %2146 = vmatprep.subr.bf16.mxu1 %v4143_v47  ;;  %v4183_v46 = vld [vmem:[#allocation2 + $0x1a8] ss:$16 sps:$4 sm:$0xff]   ;;  %v4188_v47 = vld [vmem:[#allocation2 + $0x1c4] ss:$16 sps:$4 sm:$0xff]   ;;  %v4060_v50 = vunpack.i.h.bf16 %v4058_v44  ;;  %v4059_v51 = vunpack.i.l.bf16 %v4058_v44 }
  0xa5   :  { %3341 = vmatmul.mubr.msk.bf16.gmra.mrb[12].mxu0 %vm331_vm1, %v272_v48  ;;  %3357 = vmatmul.mubr.msk.bf16.gmra.mrb[12].mxu1 %vm331_vm1, %v272_v48  ;;  %v4191_v48 = vld [vmem:[#allocation2 + $0x1cc] ss:$16 sps:$4 sm:$0xff]  }
  0xa6   :  { %452 = vmatprep.mubr.bf16.mxu0 %v4353_v0  ;;  %645 = vmatprep.mubr.bf16.mxu1 %v4353_v0 }
  0xa7   :  { %1761 = vmatpush1.bf16.msra.mxu0 %v4138_v53  ;;  %2147 = vmatpush1.bf16.msra.mxu1 %v4141_v54  ;;  %v61_v53 = vld [vmem:[%s5385_s0 + $0x88] sm:$0xff]  ;;  %v4186_v54 = vld [vmem:[#allocation2 + $0x1c0] ss:$16 sps:$4 sm:$0xff]   ;;  %v4068_v3 = vpop.permute.xlu0 %4067 }
  0xa8   :  { %1762 = vmatprep.subr.bf16.mxu0 %v4146_v55  ;;  %2148 = vmatprep.subr.bf16.mxu1 %v4149_v56  ;;  %v4189_v55 = vld [vmem:[#allocation2 + $0x1c8] ss:$16 sps:$4 sm:$0xff]   ;;  %v253_v56 = vsel %vm236_vm0, %v60_v52, %v4059_v51  ;;  %v254_v57 = vsel %vm236_vm0, %v61_v53, %v4060_v50  ;;  %v4070_v5 = vunpack.i.h.bf16 %v4068_v3  ;;  %v74_v53 = vld [vmem:[%s5385_s0 + $0xf0] sm:$0xff] }
  0xa9   :  { %v277_v59 = vpack.c.bf16 %v254_v57, %v253_v56 }
  0xab   :  { %1763 = vmatpush1.bf16.msra.mxu0 %v4144_v60  ;;  %2149 = vmatpush1.bf16.msra.mxu1 %v4147_v61  ;;  %v4065_v60 = vunpack.i.h.bf16 %v4063_v58  ;;  %v4064_v61 = vunpack.i.l.bf16 %v4063_v58  ;;  %v4078_v19 = vpop.permute.xlu0 %4077  ;;  %v291_v58 = vlaneseq }
  0xac   :  { %1764 = vmatprep.subr.bf16.mxu0 %v4152_v62  ;;  %2150 = vmatprep.subr.bf16.mxu1 %v4155_v63  ;;  %v62_v62 = vld [vmem:[%s5385_s0 + $0x90] sm:$0xff]  ;;  %v63_v63 = vld [vmem:[%s5385_s0 + $0x98] sm:$0xff]  ;;  %v4080_v21 = vunpack.i.h.bf16 %v4078_v19 }
  0xad   :  { %3342 = vmatmul.mubr.msk.bf16.gmra.mrb[16].mxu0 %vm331_vm1, %v273_v1  ;;  %3358 = vmatmul.mubr.msk.bf16.gmra.mrb[16].mxu1 %vm331_vm1, %v273_v1  ;;  %v255_v1 = vsel %vm236_vm0, %v62_v62, %v4064_v61  ;;  %v256_v2 = vsel %vm236_vm0, %v63_v63, %v4065_v60  ;;  %v289_v62 = vld [vmem:[%s5388_s3] sm:$0xf] }
  0xae   :  { %462 = vmatprep.mubr.bf16.mxu0 %v4353_v0  ;;  %655 = vmatprep.mubr.bf16.mxu1 %v4353_v0  ;;  %v278_v4 = vpack.c.bf16 %v256_v2, %v255_v1 }
  0xaf   :  { %1765 = vmatpush1.bf16.msra.mxu0 %v4150_v6  ;;  %2151 = vmatpush1.bf16.msra.mxu1 %v4153_v7  ;;  %v4069_v6 = vunpack.i.l.bf16 %v4068_v3  ;;  %v64_v7 = vld [vmem:[%s5385_s0 + $0xa0] sm:$0xff] }
  0xb0   :  { %1766 = vmatprep.subr.bf16.mxu0 %v4158_v8  ;;  %2152 = vmatprep.subr.bf16.mxu1 %v4161_v9  ;;  %v65_v8 = vld [vmem:[%s5385_s0 + $0xa8] sm:$0xff] }
  0xb1   :  { %v257_v9 = vsel %vm236_vm0, %v64_v7, %v4069_v6  ;;  %v258_v10 = vsel %vm236_vm0, %v65_v8, %v4070_v5 }
  0xb2   :  { %v279_v12 = vpack.c.bf16 %v258_v10, %v257_v9 }
  0xb3   :  { %1767 = vmatpush1.bf16.msra.mxu0 %v4156_v13  ;;  %2153 = vmatpush1.bf16.msra.mxu1 %v4159_v14  ;;  %v4075_v13 = vunpack.i.h.bf16 %v4073_v11  ;;  %v4074_v14 = vunpack.i.l.bf16 %v4073_v11 }
  0xb4   :  { %1768 = vmatprep.subr.bf16.mxu0 %v4164_v15  ;;  %2154 = vmatprep.subr.bf16.mxu1 %v4167_v16  ;;  %v66_v15 = vld [vmem:[%s5385_s0 + $0xb0] sm:$0xff]  ;;  %v67_v16 = vld [vmem:[%s5385_s0 + $0xb8] sm:$0xff] }
  0xb5   :  { %3343 = vmatmul.mubr.msk.bf16.gmra.mrb[20].mxu0 %vm331_vm1, %v274_v17  ;;  %3359 = vmatmul.mubr.msk.bf16.gmra.mrb[20].mxu1 %vm331_vm1, %v274_v17  ;;  %v259_v17 = vsel %vm236_vm0, %v66_v15, %v4074_v14  ;;  %v260_v18 = vsel %vm236_vm0, %v67_v16, %v4075_v13 }
  0xb6   :  { %472 = vmatprep.mubr.bf16.mxu0 %v4353_v0  ;;  %665 = vmatprep.mubr.bf16.mxu1 %v4353_v0  ;;  %v280_v20 = vpack.c.bf16 %v260_v18, %v259_v17 }
  0xb7   :  { %1769 = vmatpush1.bf16.msra.mxu0 %v4162_v22  ;;  %2155 = vmatpush1.bf16.msra.mxu1 %v4165_v23  ;;  %v4079_v22 = vunpack.i.l.bf16 %v4078_v19  ;;  %v68_v23 = vld [vmem:[%s5385_s0 + $0xc0] sm:$0xff] }
  0xb8   :  { %1770 = vmatprep.subr.bf16.mxu0 %v4170_v24  ;;  %2156 = vmatprep.subr.bf16.mxu1 %v4173_v25  ;;  %v69_v24 = vld [vmem:[%s5385_s0 + $0xc8] sm:$0xff]  ;;  %v4194_v25 = vld [vmem:[#allocation2 + $0x1e4] ss:$16 sps:$4 sm:$0xff]  }
  0xb9   :  { %v261_v27 = vsel %vm236_vm0, %v68_v23, %v4079_v22  ;;  %v262_v28 = vsel %vm236_vm0, %v69_v24, %v4080_v21 }
  0xbb   :  { %1771 = vmatpush1.bf16.msra.mxu0 %v4168_v29  ;;  %2157 = vmatpush1.bf16.msra.mxu1 %v4171_v30  ;;  %v4192_v29 = vld [vmem:[#allocation2 + $0x1e0] ss:$16 sps:$4 sm:$0xff]   ;;  %v4195_v30 = vld [vmem:[#allocation2 + $0x1e8] ss:$16 sps:$4 sm:$0xff]  }
  0xbc   :  { %1772 = vmatprep.subr.bf16.mxu0 %v4176_v31  ;;  %2158 = vmatprep.subr.bf16.mxu1 %v4179_v32  ;;  %v4083_v31 = vpop.permute.xlu1 %4082  ;;  %v281_v32 = vpack.c.bf16 %v262_v28, %v261_v27 }
  0xbd   :  { %3344 = vmatmul.mubr.msk.bf16.gmra.mrb[24].mxu0 %vm331_vm1, %v275_v33  ;;  %3360 = vmatmul.mubr.msk.bf16.gmra.mrb[24].mxu1 %vm331_vm1, %v275_v33  ;;  %v4085_v33 = vunpack.i.h.bf16 %v4083_v31  ;;  %v4084_v34 = vunpack.i.l.bf16 %v4083_v31 }
  0xbe   :  { %482 = vmatprep.mubr.bf16.mxu0 %v4353_v0  ;;  %675 = vmatprep.mubr.bf16.mxu1 %v4353_v0 }
  0xbf   :  { %1773 = vmatpush1.bf16.msra.mxu0 %v4174_v38  ;;  %2159 = vmatpush1.bf16.msra.mxu1 %v4177_v39  ;;  %v263_v37 = vsel %vm236_vm0, %v70_v35, %v4084_v34  ;;  %v264_v38 = vsel %vm236_vm0, %v71_v36, %v4085_v33  ;;  %v4088_v39 = vpop.permute.xlu0 %4087  ;;  %v4198_v35 = vld [vmem:[#allocation2 + $0x200] ss:$16 sps:$4 sm:$0xff]   ;;  %v4201_v36 = vld [vmem:[#allocation2 + $0x208] ss:$16 sps:$4 sm:$0xff]  }
  0xc0   :  { %1774 = vmatprep.subr.bf16.mxu0 %v4182_v40  ;;  %2160 = vmatprep.subr.bf16.mxu1 %v4185_v41  ;;  %v4200_v40 = vld [vmem:[#allocation2 + $0x204] ss:$16 sps:$4 sm:$0xff]   ;;  %v4203_v41 = vld [vmem:[#allocation2 + $0x20c] ss:$16 sps:$4 sm:$0xff]   ;;  %v282_v42 = vpack.c.bf16 %v264_v38, %v263_v37  ;;  %v4090_v43 = vunpack.i.h.bf16 %v4088_v39  ;;  %v4089_v44 = vunpack.i.l.bf16 %v4088_v39 }
  0xc3   :  { %1775 = vmatpush1.bf16.msra.mxu0 %v4180_v45  ;;  %2161 = vmatpush1.bf16.msra.mxu1 %v4183_v46  ;;  %v72_v45 = vld [vmem:[%s5385_s0 + $0xe0] sm:$0xff]  ;;  %v73_v46 = vld [vmem:[%s5385_s0 + $0xe8] sm:$0xff] }
  0xc4   :  { %1776 = vmatprep.subr.bf16.mxu0 %v4188_v47  ;;  %2162 = vmatprep.subr.bf16.mxu1 %v4191_v48  ;;  %v265_v47 = vsel %vm236_vm0, %v72_v45, %v4089_v44  ;;  %v266_v48 = vsel %vm236_vm0, %v73_v46, %v4090_v43 }
  0xc5   :  { %3345 = vmatmul.mubr.msk.bf16.gmra.mrb[28].mxu0 %vm331_vm1, %v276_v49  ;;  %3361 = vmatmul.mubr.msk.bf16.gmra.mrb[28].mxu1 %vm331_vm1, %v276_v49  ;;  %v4093_v49 = vpop.permute.xlu1 %4092  ;;  %v283_v50 = vpack.c.bf16 %v266_v48, %v265_v47 }
  0xc6   :  { %492 = vmatprep.mubr.bf16.mxu0 %v4353_v0  ;;  %685 = vmatprep.mubr.bf16.mxu1 %v4353_v0  ;;  %v4095_v51 = vunpack.i.h.bf16 %v4093_v49  ;;  %v4094_v52 = vunpack.i.l.bf16 %v4093_v49 }
  0xc7   :  { %1777 = vmatpush1.bf16.msra.mxu0 %v4186_v54  ;;  %2163 = vmatpush1.bf16.msra.mxu1 %v4189_v55  ;;  %v75_v54 = vld [vmem:[%s5385_s0 + $0xf8] sm:$0xff] }
  0xc8   :  { %1778 = vmatprep.subr.bf16.mxu0 %v4194_v25  ;;  %2164 = vmatprep.subr.bf16.mxu1 %v4197_v26  ;;  %v267_v55 = vsel %vm236_vm0, %v74_v53, %v4094_v52  ;;  %v268_v56 = vsel %vm236_vm0, %v75_v54, %v4095_v51  ;;  %v4204_v53 = vld [vmem:[#allocation2 + $0x220] ss:$16 sps:$4 sm:$0xff]   ;;  %v4207_v54 = vld [vmem:[#allocation2 + $0x228] ss:$16 sps:$4 sm:$0xff]  }
  0xc9   :  { %v284_v57 = vpack.c.bf16 %v268_v56, %v267_v55  ;;  %v4212_v55 = vld [vmem:[#allocation2 + $0x244] ss:$16 sps:$4 sm:$0xff]  }
  0xcb   :  { %1779 = vmatpush1.bf16.msra.mxu0 %v4192_v29  ;;  %2165 = vmatpush1.bf16.msra.mxu1 %v4195_v30 }
  0xcc   :  { %1941 = vmatprep.subr.bf16.mxu0 %v4200_v40  ;;  %2327 = vmatprep.subr.bf16.mxu1 %v4203_v41  ;;  %v4206_v41 = vld [vmem:[#allocation2 + $0x224] ss:$16 sps:$4 sm:$0xff]  }
  0xcd   :  { %3346 = vmatmul.mubr.msk.bf16.gmra.mrb[32].mxu0 %vm331_vm1, %v277_v59  ;;  %3362 = vmatmul.mubr.msk.bf16.gmra.mrb[32].mxu1 %vm331_vm1, %v277_v59  ;;  %v4728_v59 = vshrl.u32 %v291_v58, 7 }
  0xce   :  { %502 = vmatprep.mubr.bf16.mxu0 %v4353_v0  ;;  %695 = vmatprep.mubr.bf16.mxu1 %v4353_v0 }
  0xcf   :  { %v293_v60 = vsub.s32 0, %v4728_v59  ;;  %v301_v61 = vsub.s32 2, %v4728_v59  ;;  %v297_v63 = vsub.s32 1, %v4728_v59 }
  0xd1   :  { %v4739_v1 = vrot.slane %v289_v62, %v293_v60  ;;  %v4743_v2 = vrot.slane %v289_v62, %v301_v61  ;;  %v4747_v3 = vrot.slane %v289_v62, %v297_v63 }
  0xd5   :  { %3347 = vmatmul.mubr.msk.bf16.gmra.mrb[36].mxu0 %vm331_vm1, %v278_v4  ;;  %3363 = vmatmul.mubr.msk.bf16.gmra.mrb[36].mxu1 %vm331_vm1, %v278_v4 }
  0xd6   :  { %512 = vmatprep.mubr.bf16.mxu0 %v4353_v0  ;;  %705 = vmatprep.mubr.bf16.mxu1 %v4353_v0 }
  0xdd   :  { %3348 = vmatmul.mubr.msk.bf16.gmra.mrb[40].mxu0 %vm331_vm1, %v279_v12  ;;  %3364 = vmatmul.mubr.msk.bf16.gmra.mrb[40].mxu1 %vm331_vm1, %v279_v12 }
  0xde   :  { %522 = vmatprep.mubr.bf16.mxu0 %v4353_v0  ;;  %715 = vmatprep.mubr.bf16.mxu1 %v4353_v0 }
  0xe5   :  { %3349 = vmatmul.mubr.msk.bf16.gmra.mrb[44].mxu0 %vm331_vm1, %v280_v20  ;;  %3365 = vmatmul.mubr.msk.bf16.gmra.mrb[44].mxu1 %vm331_vm1, %v280_v20 }
  0xe6   :  { %532 = vmatprep.mubr.bf16.mxu0 %v4353_v0  ;;  %725 = vmatprep.mubr.bf16.mxu1 %v4353_v0 }
  0xed   :  { %3350 = vmatmul.mubr.msk.bf16.gmra.mrb[48].mxu0 %vm331_vm1, %v281_v32  ;;  %3366 = vmatmul.mubr.msk.bf16.gmra.mrb[48].mxu1 %vm331_vm1, %v281_v32 }
  0xee   :  { %542 = vmatprep.mubr.bf16.mxu0 %v4353_v0  ;;  %735 = vmatprep.mubr.bf16.mxu1 %v4353_v0 }
  0xf5   :  { %3351 = vmatmul.mubr.msk.bf16.gmra.mrb[52].mxu0 %vm331_vm1, %v282_v42  ;;  %3367 = vmatmul.mubr.msk.bf16.gmra.mrb[52].mxu1 %vm331_vm1, %v282_v42  ;;  %v4209_v42 = vld [vmem:[#allocation2 + $0x22c] ss:$16 sps:$4 sm:$0xff]  }
  0xf6   :  { %552 = vmatprep.mubr.bf16.mxu0 %v4353_v0  ;;  %745 = vmatprep.mubr.bf16.mxu1 %v4353_v0 }
  0xfd   :  { %3352 = vmatmul.mubr.msk.bf16.gmra.mrb[56].mxu0 %vm331_vm1, %v283_v50  ;;  %3368 = vmatmul.mubr.msk.bf16.gmra.mrb[56].mxu1 %vm331_vm1, %v283_v50 }
  0xfe   :  { %562 = vmatprep.mubr.bf16.mxu0 %v4353_v0  ;;  %755 = vmatprep.mubr.bf16.mxu1 %v4353_v0  ;;  %v305_v0 = vsub.s32 3, %v4728_v59 }
 0x100   :  { %v4751_v4 = vrot.slane %v289_v62, %v305_v0 }
 0x105   :  { %3353 = vmatmul.mubr.msk.bf16.gmra.mrb[60].mxu0 %vm331_vm1, %v284_v57  ;;  %3369 = vmatmul.mubr.msk.bf16.gmra.mrb[60].mxu1 %vm331_vm1, %v284_v57 }
 0x160   :  { %v414_v5 = vpop.f32.mrb[0].mxu0  ;;  %v607_v6 = vpop.f32.mrb[0].mxu1 }
 0x161   :  { %v415_v7 = vadd.f32 %v414_v5, %v4739_v1  ;;  %v608_v8 = vadd.f32 %v607_v6, %v4743_v2  ;;  %v416_v9 = vpop.f32.mrb[1].mxu0  ;;  %v609_v10 = vpop.f32.mrb[1].mxu1  ;;  %v4215_v5 = vld [vmem:[#allocation2 + $0x24c] ss:$16 sps:$4 sm:$0xff]  }
 0x162   :  { %v417_v11 = vadd.f32 %v416_v9, %v4747_v3  ;;  %v610_v12 = vadd.f32 %v609_v10, %v4751_v4  ;;  %v418_v13 = vpop.f32.mrb[2].mxu0  ;;  %v611_v14 = vpop.f32.mrb[2].mxu1 }
 0x163   :  { %v419_v15 = vadd.f32 %v418_v13, %v4739_v1  ;;  %v612_v16 = vadd.f32 %v611_v14, %v4743_v2  ;;  %v420_v17 = vpop.f32.mrb[3].mxu0  ;;  %v613_v18 = vpop.f32.mrb[3].mxu1  ;;  %v766_v21 = vmax.f32 %v415_v7, 0.0  ;;  %v768_v22 = vmax.f32 %v608_v8, 0.0 }
 0x164   :  { %v421_v19 = vadd.f32 %v420_v17, %v4747_v3  ;;  %v614_v20 = vadd.f32 %v613_v18, %v4751_v4  ;;  %v767_v25 = vmax.f32 %v417_v11, 0.0  ;;  %v769_v26 = vmax.f32 %v610_v12, 0.0  ;;  %v4213_v17 = vld [vmem:[#allocation2 + $0x248] ss:$16 sps:$4 sm:$0xff]  }
 0x165   :  { %v770_v23 = vmax.f32 %v419_v15, 0.0  ;;  %v772_v24 = vmax.f32 %v612_v16, 0.0  ;;  %v4210_v16 = vld [vmem:[#allocation2 + $0x240] ss:$16 sps:$4 sm:$0xff]  }
 0x166   :  { %v771_v27 = vmax.f32 %v421_v19, 0.0  ;;  %v773_v28 = vmax.f32 %v614_v20, 0.0 }
 0x167   :  { %v894_v29 = vpack.c.bf16 %v770_v23, %v766_v21  ;;  %v4761_v30 = vpack.c.bf16 %v772_v24, %v768_v22  ;;  %v4218_v22 = vld [vmem:[#allocation2 + $0x264] ss:$16 sps:$4 sm:$0xff]   ;;  %v4221_v23 = vld [vmem:[#allocation2 + $0x26c] ss:$16 sps:$4 sm:$0xff]  }
 0x168   :  { %v895_v31 = vpack.c.bf16 %v771_v27, %v767_v25  ;;  %v4763_v32 = vpack.c.bf16 %v773_v28, %v769_v26  ;;  %v424_v33 = vpop.f32.mrb[4].mxu0  ;;  %v617_v34 = vpop.f32.mrb[4].mxu1 }
 0x169   :  { %v425_v37 = vadd.f32 %v424_v33, %v4739_v1  ;;  %v618_v38 = vadd.f32 %v617_v34, %v4743_v2  ;;  %v426_v39 = vpop.f32.mrb[5].mxu0  ;;  %v619_v40 = vpop.f32.mrb[5].mxu1 }
 0x16a   :  { %v427_v43 = vadd.f32 %v426_v39, %v4747_v3  ;;  %v620_v44 = vadd.f32 %v619_v40, %v4751_v4  ;;  %v428_v45 = vpop.f32.mrb[6].mxu0  ;;  %v621_v46 = vpop.f32.mrb[6].mxu1  ;;  %1780 = vmatprep.mubr.bf16.mxu0 %v895_v31  ;;  %2166 = vmatprep.mubr.bf16.mxu1 %v895_v31 }
 0x16b   :  { %v429_v47 = vadd.f32 %v428_v45, %v4739_v1  ;;  %v622_v48 = vadd.f32 %v621_v46, %v4743_v2  ;;  %v430_v49 = vpop.f32.mrb[7].mxu0  ;;  %v623_v50 = vpop.f32.mrb[7].mxu1  ;;  %1781 = vmatmul.mubr.bf16.vlgmr.msra.gmra.mrb[64].mxu0 %v894_v29  ;;  %2167 = vmatmul.mubr.bf16.vlgmr.msra.gmra.mrb[64].mxu1 %v894_v29  ;;  %v774_v56 = vmax.f32 %v425_v37, 0.0  ;;  %v776_v57 = vmax.f32 %v618_v38, 0.0  ;;  %v4219_v37 = vld [vmem:[#allocation2 + $0x268] ss:$16 sps:$4 sm:$0xff]  }
 0x16c   :  { %v431_v51 = vadd.f32 %v430_v49, %v4747_v3  ;;  %v624_v52 = vadd.f32 %v623_v50, %v4751_v4  ;;  %1942 = vmatpush1.bf16.msra.mxu0 %v4198_v35  ;;  %2328 = vmatpush1.bf16.msra.mxu1 %v4201_v36  ;;  %v775_v6 = vmax.f32 %v427_v43, 0.0  ;;  %v777_v7 = vmax.f32 %v620_v44, 0.0  ;;  %v4216_v36 = vld [vmem:[#allocation2 + $0x260] ss:$16 sps:$4 sm:$0xff]   ;;  %v4224_v38 = vld [vmem:[#allocation2 + $0x284] ss:$16 sps:$4 sm:$0xff]  }
 0x16d   :  { %v778_v58 = vmax.f32 %v429_v47, 0.0  ;;  %v780_v62 = vmax.f32 %v622_v48, 0.0  ;;  %1943 = vmatprep.subr.bf16.mxu0 %v4206_v41  ;;  %2329 = vmatprep.subr.bf16.mxu1 %v4209_v42  ;;  %v4227_v43 = vld [vmem:[#allocation2 + $0x28c] ss:$16 sps:$4 sm:$0xff]  }
 0x16e   :  { %v779_v8 = vmax.f32 %v431_v51, 0.0  ;;  %v781_v9 = vmax.f32 %v624_v52, 0.0 }
 0x16f   :  { %v898_v10 = vpack.c.bf16 %v778_v58, %v774_v56  ;;  %v4773_v11 = vpack.c.bf16 %v780_v62, %v776_v57 }
 0x170   :  { %v899_v12 = vpack.c.bf16 %v779_v8, %v775_v6  ;;  %v4775_v13 = vpack.c.bf16 %v781_v9, %v777_v7  ;;  %v434_v14 = vpop.f32.mrb[8].mxu0  ;;  %v627_v15 = vpop.f32.mrb[8].mxu1  ;;  %1944 = vmatpush1.bf16.msra.mxu0 %v4204_v53  ;;  %2330 = vmatpush1.bf16.msra.mxu1 %v4207_v54  ;;  %v4222_v54 = vld [vmem:[#allocation2 + $0x280] ss:$16 sps:$4 sm:$0xff]   ;;  %v4233_v6 = vld [vmem:[#allocation2 + $0x2ac] ss:$16 sps:$4 sm:$0xff]  }
 0x171   :  { %v435_v18 = vadd.f32 %v434_v14, %v4739_v1  ;;  %v628_v19 = vadd.f32 %v627_v15, %v4743_v2  ;;  %v436_v20 = vpop.f32.mrb[9].mxu0  ;;  %v629_v21 = vpop.f32.mrb[9].mxu1  ;;  %1945 = vmatprep.subr.bf16.mxu0 %v4212_v55  ;;  %2331 = vmatprep.subr.bf16.mxu1 %v4215_v5  ;;  %v4225_v55 = vld [vmem:[#allocation2 + $0x288] ss:$16 sps:$4 sm:$0xff]   ;;  %v4230_v5 = vld [vmem:[#allocation2 + $0x2a4] ss:$16 sps:$4 sm:$0xff]  }
 0x172   :  { %v437_v24 = vadd.f32 %v436_v20, %v4747_v3  ;;  %v630_v25 = vadd.f32 %v629_v21, %v4751_v4  ;;  %v438_v26 = vpop.f32.mrb[10].mxu0  ;;  %v631_v27 = vpop.f32.mrb[10].mxu1  ;;  %1790 = vmatprep.mubr.bf16.mxu0 %v899_v12  ;;  %2176 = vmatprep.mubr.bf16.mxu1 %v899_v12  ;;  %v4231_v20 = vld [vmem:[#allocation2 + $0x2a8] ss:$16 sps:$4 sm:$0xff]   ;;  %v4236_v21 = vld [vmem:[#allocation2 + $0x2c4] ss:$16 sps:$4 sm:$0xff]  }
 0x173   :  { %v439_v28 = vadd.f32 %v438_v26, %v4739_v1  ;;  %v632_v29 = vadd.f32 %v631_v27, %v4743_v2  ;;  %v440_v31 = vpop.f32.mrb[11].mxu0  ;;  %v633_v33 = vpop.f32.mrb[11].mxu1  ;;  %1791 = vmatmul.mubr.bf16.gmra.mrb[68].mxu0 %v898_v10  ;;  %2177 = vmatmul.mubr.bf16.gmra.mrb[68].mxu1 %v898_v10  ;;  %v782_v39 = vmax.f32 %v435_v18, 0.0  ;;  %v784_v40 = vmax.f32 %v628_v19, 0.0  ;;  %v4228_v19 = vld [vmem:[#allocation2 + $0x2a0] ss:$16 sps:$4 sm:$0xff]  }
 0x174   :  { %v441_v34 = vadd.f32 %v440_v31, %v4747_v3  ;;  %v634_v35 = vadd.f32 %v633_v33, %v4751_v4  ;;  %1946 = vmatpush1.bf16.msra.mxu0 %v4210_v16  ;;  %2332 = vmatpush1.bf16.msra.mxu1 %v4213_v17  ;;  %v783_v44 = vmax.f32 %v437_v24, 0.0  ;;  %v785_v45 = vmax.f32 %v630_v25, 0.0  ;;  %v4239_v26 = vld [vmem:[#allocation2 + $0x2cc] ss:$16 sps:$4 sm:$0xff]  }
 0x175   :  { %v786_v41 = vmax.f32 %v439_v28, 0.0  ;;  %v788_v42 = vmax.f32 %v632_v29, 0.0  ;;  %1947 = vmatprep.subr.bf16.mxu0 %v4218_v22  ;;  %2333 = vmatprep.subr.bf16.mxu1 %v4221_v23 }
 0x176   :  { %v787_v46 = vmax.f32 %v441_v34, 0.0  ;;  %v789_v47 = vmax.f32 %v634_v35, 0.0 }
 0x177   :  { %v902_v48 = vpack.c.bf16 %v786_v41, %v782_v39  ;;  %v4785_v49 = vpack.c.bf16 %v788_v42, %v784_v40  ;;  %v4234_v39 = vld [vmem:[#allocation2 + $0x2c0] ss:$16 sps:$4 sm:$0xff]   ;;  %v4237_v40 = vld [vmem:[#allocation2 + $0x2c8] ss:$16 sps:$4 sm:$0xff]  }
 0x178   :  { %v903_v50 = vpack.c.bf16 %v787_v46, %v783_v44  ;;  %v4787_v51 = vpack.c.bf16 %v789_v47, %v785_v45  ;;  %v444_v52 = vpop.f32.mrb[12].mxu0  ;;  %v637_v53 = vpop.f32.mrb[12].mxu1  ;;  %1948 = vmatpush1.bf16.msra.mxu0 %v4216_v36  ;;  %2334 = vmatpush1.bf16.msra.mxu1 %v4219_v37  ;;  %v4242_v45 = vld [vmem:[#allocation2 + $0x2e4] ss:$16 sps:$4 sm:$0xff]   ;;  %v4245_v46 = vld [vmem:[#allocation2 + $0x2ec] ss:$16 sps:$4 sm:$0xff]  }
 0x179   :  { %v445_v56 = vadd.f32 %v444_v52, %v4739_v1  ;;  %v638_v57 = vadd.f32 %v637_v53, %v4743_v2  ;;  %v446_v58 = vpop.f32.mrb[13].mxu0  ;;  %v639_v62 = vpop.f32.mrb[13].mxu1  ;;  %1949 = vmatprep.subr.bf16.mxu0 %v4224_v38  ;;  %2335 = vmatprep.subr.bf16.mxu1 %v4227_v43 }
 0x17a   :  { %v447_v7 = vadd.f32 %v446_v58, %v4747_v3  ;;  %v640_v8 = vadd.f32 %v639_v62, %v4751_v4  ;;  %v448_v9 = vpop.f32.mrb[14].mxu0  ;;  %v641_v10 = vpop.f32.mrb[14].mxu1  ;;  %1800 = vmatprep.mubr.bf16.mxu0 %v903_v50  ;;  %2186 = vmatprep.mubr.bf16.mxu1 %v903_v50  ;;  %v4240_v62 = vld [vmem:[#allocation2 + $0x2e0] ss:$16 sps:$4 sm:$0xff]  }
 0x17b   :  { %v449_v12 = vadd.f32 %v448_v9, %v4739_v1  ;;  %v642_v14 = vadd.f32 %v641_v10, %v4743_v2  ;;  %v450_v15 = vpop.f32.mrb[15].mxu0  ;;  %v643_v16 = vpop.f32.mrb[15].mxu1  ;;  %1801 = vmatmul.mubr.bf16.gmra.mrb[72].mxu0 %v902_v48  ;;  %2187 = vmatmul.mubr.bf16.gmra.mrb[72].mxu1 %v902_v48  ;;  %v790_v22 = vmax.f32 %v445_v56, 0.0  ;;  %v792_v23 = vmax.f32 %v638_v57, 0.0 }
 0x17c   :  { %v451_v17 = vadd.f32 %v450_v15, %v4747_v3  ;;  %v644_v18 = vadd.f32 %v643_v16, %v4751_v4  ;;  %1950 = vmatpush1.bf16.msra.mxu0 %v4222_v54  ;;  %2336 = vmatpush1.bf16.msra.mxu1 %v4225_v55  ;;  %v791_v27 = vmax.f32 %v447_v7, 0.0  ;;  %v793_v28 = vmax.f32 %v640_v8, 0.0 }
 0x17d   :  { %v794_v24 = vmax.f32 %v449_v12, 0.0  ;;  %v796_v25 = vmax.f32 %v642_v14, 0.0  ;;  %1951 = vmatprep.subr.bf16.mxu0 %v4230_v5  ;;  %2337 = vmatprep.subr.bf16.mxu1 %v4233_v6  ;;  %v4243_v5 = vld [vmem:[#allocation2 + $0x2e8] ss:$16 sps:$4 sm:$0xff]   ;;  %v4248_v6 = vld [vmem:[#allocation2 + $0x304] ss:$16 sps:$4 sm:$0xff]  }
 0x17e   :  { %v795_v29 = vmax.f32 %v451_v17, 0.0  ;;  %v797_v31 = vmax.f32 %v644_v18, 0.0  ;;  %v4251_v12 = vld [vmem:[#allocation2 + $0x30c] ss:$16 sps:$4 sm:$0xff]  }
 0x17f   :  { %v906_v33 = vpack.c.bf16 %v794_v24, %v790_v22  ;;  %v4797_v34 = vpack.c.bf16 %v796_v25, %v792_v23  ;;  %v4246_v24 = vld [vmem:[#allocation2 + $0x300] ss:$16 sps:$4 sm:$0xff]   ;;  %v4249_v25 = vld [vmem:[#allocation2 + $0x308] ss:$16 sps:$4 sm:$0xff]  }
 0x180   :  { %v907_v35 = vpack.c.bf16 %v795_v29, %v791_v27  ;;  %v4799_v36 = vpack.c.bf16 %v797_v31, %v793_v28  ;;  %v454_v37 = vpop.f32.mrb[16].mxu0  ;;  %v647_v38 = vpop.f32.mrb[16].mxu1  ;;  %1952 = vmatpush1.bf16.msra.mxu0 %v4228_v19  ;;  %2338 = vmatpush1.bf16.msra.mxu1 %v4231_v20  ;;  %v4254_v31 = vld [vmem:[#allocation2 + $0x324] ss:$16 sps:$4 sm:$0xff]  }
 0x181   :  { %v455_v41 = vadd.f32 %v454_v37, %v4739_v1  ;;  %v648_v42 = vadd.f32 %v647_v38, %v4743_v2  ;;  %v456_v43 = vpop.f32.mrb[17].mxu0  ;;  %v649_v44 = vpop.f32.mrb[17].mxu1  ;;  %1953 = vmatprep.subr.bf16.mxu0 %v4236_v21  ;;  %2339 = vmatprep.subr.bf16.mxu1 %v4239_v26 }
 0x182   :  { %v457_v47 = vadd.f32 %v456_v43, %v4747_v3  ;;  %v650_v48 = vadd.f32 %v649_v44, %v4751_v4  ;;  %v458_v50 = vpop.f32.mrb[18].mxu0  ;;  %v651_v52 = vpop.f32.mrb[18].mxu1  ;;  %1810 = vmatprep.mubr.bf16.mxu0 %v907_v35  ;;  %2196 = vmatprep.mubr.bf16.mxu1 %v907_v35 }
 0x183   :  { %v459_v53 = vadd.f32 %v458_v50, %v4739_v1  ;;  %v652_v54 = vadd.f32 %v651_v52, %v4743_v2  ;;  %v460_v55 = vpop.f32.mrb[19].mxu0  ;;  %v653_v56 = vpop.f32.mrb[19].mxu1  ;;  %1811 = vmatmul.mubr.bf16.gmra.mrb[76].mxu0 %v906_v33  ;;  %2197 = vmatmul.mubr.bf16.gmra.mrb[76].mxu1 %v906_v33  ;;  %v798_v7 = vmax.f32 %v455_v41, 0.0  ;;  %v800_v8 = vmax.f32 %v648_v42, 0.0  ;;  %v4257_v33 = vld [vmem:[#allocation2 + $0x32c] ss:$16 sps:$4 sm:$0xff]  }
 0x184   :  { %v461_v57 = vadd.f32 %v460_v55, %v4747_v3  ;;  %v654_v58 = vadd.f32 %v653_v56, %v4751_v4  ;;  %1954 = vmatpush1.bf16.msra.mxu0 %v4234_v39  ;;  %2340 = vmatpush1.bf16.msra.mxu1 %v4237_v40  ;;  %v799_v14 = vmax.f32 %v457_v47, 0.0  ;;  %v801_v15 = vmax.f32 %v650_v48, 0.0  ;;  %v4255_v47 = vld [vmem:[#allocation2 + $0x328] ss:$16 sps:$4 sm:$0xff]   ;;  %v4260_v48 = vld [vmem:[#allocation2 + $0x344] ss:$16 sps:$4 sm:$0xff]  }
 0x185   :  { %v802_v9 = vmax.f32 %v459_v53, 0.0  ;;  %v804_v10 = vmax.f32 %v652_v54, 0.0  ;;  %1955 = vmatprep.subr.bf16.mxu0 %v4242_v45  ;;  %2341 = vmatprep.subr.bf16.mxu1 %v4245_v46  ;;  %v4252_v46 = vld [vmem:[#allocation2 + $0x320] ss:$16 sps:$4 sm:$0xff]   ;;  %v4263_v55 = vld [vmem:[#allocation2 + $0x34c] ss:$16 sps:$4 sm:$0xff]  }
 0x186   :  { %v803_v16 = vmax.f32 %v461_v57, 0.0  ;;  %v805_v17 = vmax.f32 %v654_v58, 0.0 }
 0x187   :  { %v910_v18 = vpack.c.bf16 %v802_v9, %v798_v7  ;;  %v4809_v19 = vpack.c.bf16 %v804_v10, %v800_v8 }
 0x188   :  { %v911_v20 = vpack.c.bf16 %v803_v16, %v799_v14  ;;  %v4811_v21 = vpack.c.bf16 %v805_v17, %v801_v15  ;;  %v464_v22 = vpop.f32.mrb[20].mxu0  ;;  %v657_v23 = vpop.f32.mrb[20].mxu1  ;;  %1956 = vmatpush1.bf16.msra.mxu0 %v4240_v62  ;;  %2342 = vmatpush1.bf16.msra.mxu1 %v4243_v5  ;;  %v4261_v14 = vld [vmem:[#allocation2 + $0x348] ss:$16 sps:$4 sm:$0xff]  }
 0x189   :  { %v465_v26 = vadd.f32 %v464_v22, %v4739_v1  ;;  %v658_v27 = vadd.f32 %v657_v23, %v4743_v2  ;;  %v466_v28 = vpop.f32.mrb[21].mxu0  ;;  %v659_v29 = vpop.f32.mrb[21].mxu1  ;;  %1957 = vmatprep.subr.bf16.mxu0 %v4248_v6  ;;  %2343 = vmatprep.subr.bf16.mxu1 %v4251_v12  ;;  %v4258_v12 = vld [vmem:[#allocation2 + $0x340] ss:$16 sps:$4 sm:$0xff]   ;;  %v4269_v22 = vld [vmem:[#allocation2 + $0x36c] ss:$16 sps:$4 sm:$0xff]  }
 0x18a   :  { %v467_v35 = vadd.f32 %v466_v28, %v4747_v3  ;;  %v660_v37 = vadd.f32 %v659_v29, %v4751_v4  ;;  %v468_v38 = vpop.f32.mrb[22].mxu0  ;;  %v661_v39 = vpop.f32.mrb[22].mxu1  ;;  %1820 = vmatprep.mubr.bf16.mxu0 %v911_v20  ;;  %2206 = vmatprep.mubr.bf16.mxu1 %v911_v20  ;;  %v4266_v20 = vld [vmem:[#allocation2 + $0x364] ss:$16 sps:$4 sm:$0xff]  }
 0x18b   :  { %v469_v40 = vadd.f32 %v468_v38, %v4739_v1  ;;  %v662_v41 = vadd.f32 %v661_v39, %v4743_v2  ;;  %v470_v42 = vpop.f32.mrb[23].mxu0  ;;  %v663_v43 = vpop.f32.mrb[23].mxu1  ;;  %1821 = vmatmul.mubr.bf16.gmra.mrb[80].mxu0 %v910_v18  ;;  %2207 = vmatmul.mubr.bf16.gmra.mrb[80].mxu1 %v910_v18  ;;  %v806_v50 = vmax.f32 %v465_v26, 0.0  ;;  %v808_v52 = vmax.f32 %v658_v27, 0.0  ;;  %v4267_v38 = vld [vmem:[#allocation2 + $0x368] ss:$16 sps:$4 sm:$0xff]  }
 0x18c   :  { %v471_v44 = vadd.f32 %v470_v42, %v4747_v3  ;;  %v664_v45 = vadd.f32 %v663_v43, %v4751_v4  ;;  %1958 = vmatpush1.bf16.msra.mxu0 %v4246_v24  ;;  %2344 = vmatpush1.bf16.msra.mxu1 %v4249_v25  ;;  %v807_v56 = vmax.f32 %v467_v35, 0.0  ;;  %v809_v57 = vmax.f32 %v660_v37, 0.0  ;;  %v4264_v37 = vld [vmem:[#allocation2 + $0x360] ss:$16 sps:$4 sm:$0xff]   ;;  %v4272_v39 = vld [vmem:[#allocation2 + $0x384] ss:$16 sps:$4 sm:$0xff]  }
 0x18d   :  { %v810_v53 = vmax.f32 %v469_v40, 0.0  ;;  %v812_v54 = vmax.f32 %v662_v41, 0.0  ;;  %1959 = vmatprep.subr.bf16.mxu0 %v4254_v31  ;;  %2345 = vmatprep.subr.bf16.mxu1 %v4257_v33 }
 0x18e   :  { %v811_v58 = vmax.f32 %v471_v44, 0.0  ;;  %v813_v62 = vmax.f32 %v664_v45, 0.0  ;;  %v4275_v44 = vld [vmem:[#allocation2 + $0x38c] ss:$16 sps:$4 sm:$0xff]  }
 0x18f   :  { %v914_v5 = vpack.c.bf16 %v810_v53, %v806_v50  ;;  %v4821_v6 = vpack.c.bf16 %v812_v54, %v808_v52 }
 0x190   :  { %v915_v7 = vpack.c.bf16 %v811_v58, %v807_v56  ;;  %v4823_v8 = vpack.c.bf16 %v813_v62, %v809_v57  ;;  %v474_v9 = vpop.f32.mrb[24].mxu0  ;;  %v667_v10 = vpop.f32.mrb[24].mxu1  ;;  %1960 = vmatpush1.bf16.msra.mxu0 %v4252_v46  ;;  %2346 = vmatpush1.bf16.msra.mxu1 %v4255_v47  ;;  %v4270_v57 = vld [vmem:[#allocation2 + $0x380] ss:$16 sps:$4 sm:$0xff]   ;;  %v4273_v58 = vld [vmem:[#allocation2 + $0x388] ss:$16 sps:$4 sm:$0xff]  }
 0x191   :  { %v475_v15 = vadd.f32 %v474_v9, %v4739_v1  ;;  %v668_v16 = vadd.f32 %v667_v10, %v4743_v2  ;;  %v476_v17 = vpop.f32.mrb[25].mxu0  ;;  %v669_v18 = vpop.f32.mrb[25].mxu1  ;;  %1961 = vmatprep.subr.bf16.mxu0 %v4260_v48  ;;  %2347 = vmatprep.subr.bf16.mxu1 %v4263_v55  ;;  %v4278_v10 = vld [vmem:[#allocation2 + $0x3a4] ss:$16 sps:$4 sm:$0xff]  }
 0x192   :  { %v477_v23 = vadd.f32 %v476_v17, %v4747_v3  ;;  %v670_v24 = vadd.f32 %v669_v18, %v4751_v4  ;;  %v478_v25 = vpop.f32.mrb[26].mxu0  ;;  %v671_v26 = vpop.f32.mrb[26].mxu1  ;;  %1830 = vmatprep.mubr.bf16.mxu0 %v915_v7  ;;  %2216 = vmatprep.mubr.bf16.mxu1 %v915_v7 }
 0x193   :  { %v479_v27 = vadd.f32 %v478_v25, %v4739_v1  ;;  %v672_v28 = vadd.f32 %v671_v26, %v4743_v2  ;;  %v480_v29 = vpop.f32.mrb[27].mxu0  ;;  %v673_v31 = vpop.f32.mrb[27].mxu1  ;;  %1831 = vmatmul.mubr.bf16.gmra.mrb[84].mxu0 %v914_v5  ;;  %2217 = vmatmul.mubr.bf16.gmra.mrb[84].mxu1 %v914_v5  ;;  %v814_v40 = vmax.f32 %v475_v15, 0.0  ;;  %v816_v41 = vmax.f32 %v668_v16, 0.0  ;;  %v4276_v26 = vld [vmem:[#allocation2 + $0x3a0] ss:$16 sps:$4 sm:$0xff]  }
 0x194   :  { %v481_v33 = vadd.f32 %v480_v29, %v4747_v3  ;;  %v674_v35 = vadd.f32 %v673_v31, %v4751_v4  ;;  %1962 = vmatpush1.bf16.msra.mxu0 %v4258_v12  ;;  %2348 = vmatpush1.bf16.msra.mxu1 %v4261_v14  ;;  %v815_v45 = vmax.f32 %v477_v23, 0.0  ;;  %v817_v46 = vmax.f32 %v670_v24, 0.0  ;;  %v4281_v12 = vld [vmem:[#allocation2 + $0x3ac] ss:$16 sps:$4 sm:$0xff]  }
 0x195   :  { %v818_v42 = vmax.f32 %v479_v27, 0.0  ;;  %v820_v43 = vmax.f32 %v672_v28, 0.0  ;;  %1963 = vmatprep.subr.bf16.mxu0 %v4266_v20  ;;  %2349 = vmatprep.subr.bf16.mxu1 %v4269_v22  ;;  %v4279_v27 = vld [vmem:[#allocation2 + $0x3a8] ss:$16 sps:$4 sm:$0xff]   ;;  %v4284_v28 = vld [vmem:[#allocation2 + $0x3c4] ss:$16 sps:$4 sm:$0xff]  }
 0x196   :  { %v819_v47 = vmax.f32 %v481_v33, 0.0  ;;  %v821_v48 = vmax.f32 %v674_v35, 0.0 }
 0x197   :  { %v918_v50 = vpack.c.bf16 %v818_v42, %v814_v40  ;;  %v4833_v52 = vpack.c.bf16 %v820_v43, %v816_v41 }
 0x198   :  { %v919_v53 = vpack.c.bf16 %v819_v47, %v815_v45  ;;  %v4835_v54 = vpack.c.bf16 %v821_v48, %v817_v46  ;;  %v484_v55 = vpop.f32.mrb[28].mxu0  ;;  %v677_v56 = vpop.f32.mrb[28].mxu1  ;;  %1964 = vmatpush1.bf16.msra.mxu0 %v4264_v37  ;;  %2350 = vmatpush1.bf16.msra.mxu1 %v4267_v38  ;;  %v4287_v37 = vld [vmem:[#allocation2 + $0x3cc] ss:$16 sps:$4 sm:$0xff]   ;;  %v4282_v48 = vld [vmem:[#allocation2 + $0x3c0] ss:$16 sps:$4 sm:$0xff]  }
 0x199   :  { %v485_v62 = vadd.f32 %v484_v55, %v4739_v1  ;;  %v678_v5 = vadd.f32 %v677_v56, %v4743_v2  ;;  %v486_v7 = vpop.f32.mrb[29].mxu0  ;;  %v679_v9 = vpop.f32.mrb[29].mxu1  ;;  %1965 = vmatprep.subr.bf16.mxu0 %v4272_v39  ;;  %2351 = vmatprep.subr.bf16.mxu1 %v4275_v44 }
 0x19a   :  { %v487_v14 = vadd.f32 %v486_v7, %v4747_v3  ;;  %v680_v15 = vadd.f32 %v679_v9, %v4751_v4  ;;  %v488_v16 = vpop.f32.mrb[30].mxu0  ;;  %v681_v17 = vpop.f32.mrb[30].mxu1  ;;  %1840 = vmatprep.mubr.bf16.mxu0 %v919_v53  ;;  %2226 = vmatprep.mubr.bf16.mxu1 %v919_v53 }
 0x19b   :  { %v489_v18 = vadd.f32 %v488_v16, %v4739_v1  ;;  %v682_v20 = vadd.f32 %v681_v17, %v4743_v2  ;;  %v490_v22 = vpop.f32.mrb[31].mxu0  ;;  %v683_v23 = vpop.f32.mrb[31].mxu1  ;;  %1841 = vmatmul.mubr.bf16.gmra.mrb[88].mxu0 %v918_v50  ;;  %2227 = vmatmul.mubr.bf16.gmra.mrb[88].mxu1 %v918_v50  ;;  %v822_v29 = vmax.f32 %v485_v62, 0.0  ;;  %v824_v31 = vmax.f32 %v678_v5, 0.0  ;;  %v4285_v50 = vld [vmem:[#allocation2 + $0x3c8] ss:$16 sps:$4 sm:$0xff]  }
 0x19c   :  { %v491_v24 = vadd.f32 %v490_v22, %v4747_v3  ;;  %v684_v25 = vadd.f32 %v683_v23, %v4751_v4  ;;  %1966 = vmatpush1.bf16.msra.mxu0 %v4270_v57  ;;  %2352 = vmatpush1.bf16.msra.mxu1 %v4273_v58  ;;  %v823_v38 = vmax.f32 %v487_v14, 0.0  ;;  %v825_v39 = vmax.f32 %v680_v15, 0.0  ;;  %v4290_v58 = vld [vmem:[#allocation2 + $0x3e4] ss:$16 sps:$4 sm:$0xff]   ;;  %v4293_v62 = vld [vmem:[#allocation2 + $0x3ec] ss:$16 sps:$4 sm:$0xff]  }
 0x19d   :  { %v826_v33 = vmax.f32 %v489_v18, 0.0  ;;  %v828_v35 = vmax.f32 %v682_v20, 0.0  ;;  %1967 = vmatprep.subr.bf16.mxu0 %v4278_v10  ;;  %2353 = vmatprep.subr.bf16.mxu1 %v4281_v12  ;;  %v4288_v20 = vld [vmem:[#allocation2 + $0x3e0] ss:$16 sps:$4 sm:$0xff]   ;;  %v4291_v22 = vld [vmem:[#allocation2 + $0x3e8] ss:$16 sps:$4 sm:$0xff]  }
 0x19e   :  { %v827_v40 = vmax.f32 %v491_v24, 0.0  ;;  %v829_v41 = vmax.f32 %v684_v25, 0.0 }
 0x19f   :  { %v922_v42 = vpack.c.bf16 %v826_v33, %v822_v29  ;;  %v4845_v43 = vpack.c.bf16 %v828_v35, %v824_v31 }
 0x1a0   :  { %v923_v44 = vpack.c.bf16 %v827_v40, %v823_v38  ;;  %v4847_v45 = vpack.c.bf16 %v829_v41, %v825_v39  ;;  %v494_v46 = vpop.f32.mrb[32].mxu0  ;;  %v687_v47 = vpop.f32.mrb[32].mxu1  ;;  %1968 = vmatpush1.bf16.msra.mxu0 %v4276_v26  ;;  %2354 = vmatpush1.bf16.msra.mxu1 %v4279_v27 }
 0x1a1   :  { %v495_v53 = vadd.f32 %v494_v46, %v4739_v1  ;;  %v688_v55 = vadd.f32 %v687_v47, %v4743_v2  ;;  %v496_v56 = vpop.f32.mrb[33].mxu0  ;;  %v689_v57 = vpop.f32.mrb[33].mxu1  ;;  %1969 = vmatprep.subr.bf16.mxu0 %v4284_v28  ;;  %2355 = vmatprep.subr.bf16.mxu1 %v4287_v37 }
 0x1a2   :  { %v497_v5 = vadd.f32 %v496_v56, %v4747_v3  ;;  %v690_v7 = vadd.f32 %v689_v57, %v4751_v4  ;;  %v498_v9 = vpop.f32.mrb[34].mxu0  ;;  %v691_v10 = vpop.f32.mrb[34].mxu1  ;;  %1850 = vmatprep.mubr.bf16.mxu0 %v923_v44  ;;  %2236 = vmatprep.mubr.bf16.mxu1 %v923_v44 }
 0x1a3   :  { %v499_v12 = vadd.f32 %v498_v9, %v4739_v1  ;;  %v692_v14 = vadd.f32 %v691_v10, %v4743_v2  ;;  %v500_v15 = vpop.f32.mrb[35].mxu0  ;;  %v693_v16 = vpop.f32.mrb[35].mxu1  ;;  %1851 = vmatmul.mubr.bf16.gmra.mrb[92].mxu0 %v922_v42  ;;  %2237 = vmatmul.mubr.bf16.gmra.mrb[92].mxu1 %v922_v42  ;;  %v830_v23 = vmax.f32 %v495_v53, 0.0  ;;  %v832_v24 = vmax.f32 %v688_v55, 0.0 }
 0x1a4   :  { %v501_v17 = vadd.f32 %v500_v15, %v4747_v3  ;;  %v694_v18 = vadd.f32 %v693_v16, %v4751_v4  ;;  %1970 = vmatpush1.bf16.msra.mxu0 %v4282_v48  ;;  %2356 = vmatpush1.bf16.msra.mxu1 %v4285_v50  ;;  %v831_v27 = vmax.f32 %v497_v5, 0.0  ;;  %v833_v28 = vmax.f32 %v690_v7, 0.0 }
 0x1a5   :  { %v834_v25 = vmax.f32 %v499_v12, 0.0  ;;  %v836_v26 = vmax.f32 %v692_v14, 0.0  ;;  %1971 = vmatprep.subr.bf16.mxu0 %v4290_v58  ;;  %2357 = vmatprep.subr.bf16.mxu1 %v4293_v62 }
 0x1a6   :  { %v835_v29 = vmax.f32 %v501_v17, 0.0  ;;  %v837_v31 = vmax.f32 %v694_v18, 0.0 }
 0x1a7   :  { %v926_v33 = vpack.c.bf16 %v834_v25, %v830_v23  ;;  %v4857_v35 = vpack.c.bf16 %v836_v26, %v832_v24 }
 0x1a8   :  { %v927_v37 = vpack.c.bf16 %v835_v29, %v831_v27  ;;  %v4859_v38 = vpack.c.bf16 %v837_v31, %v833_v28  ;;  %v504_v39 = vpop.f32.mrb[36].mxu0  ;;  %v697_v40 = vpop.f32.mrb[36].mxu1  ;;  %1972 = vmatpush1.bf16.msra.mxu0 %v4288_v20  ;;  %2358 = vmatpush1.bf16.msra.mxu1 %v4291_v22 }
 0x1a9   :  { %v505_v41 = vadd.f32 %v504_v39, %v4739_v1  ;;  %v698_v42 = vadd.f32 %v697_v40, %v4743_v2  ;;  %v506_v44 = vpop.f32.mrb[37].mxu0  ;;  %v699_v46 = vpop.f32.mrb[37].mxu1 }
 0x1aa   :  { %v507_v47 = vadd.f32 %v506_v44, %v4747_v3  ;;  %v700_v48 = vadd.f32 %v699_v46, %v4751_v4  ;;  %v508_v50 = vpop.f32.mrb[38].mxu0  ;;  %v701_v53 = vpop.f32.mrb[38].mxu1  ;;  %1860 = vmatprep.mubr.bf16.mxu0 %v927_v37  ;;  %2246 = vmatprep.mubr.bf16.mxu1 %v927_v37 }
 0x1ab   :  { %v509_v55 = vadd.f32 %v508_v50, %v4739_v1  ;;  %v702_v56 = vadd.f32 %v701_v53, %v4743_v2  ;;  %v510_v57 = vpop.f32.mrb[39].mxu0  ;;  %v703_v58 = vpop.f32.mrb[39].mxu1  ;;  %1861 = vmatmul.mubr.bf16.gmra.mrb[96].mxu0 %v926_v33  ;;  %2247 = vmatmul.mubr.bf16.gmra.mrb[96].mxu1 %v926_v33  ;;  %v838_v7 = vmax.f32 %v505_v41, 0.0  ;;  %v840_v9 = vmax.f32 %v698_v42, 0.0 }
 0x1ac   :  { %v511_v62 = vadd.f32 %v510_v57, %v4747_v3  ;;  %v704_v5 = vadd.f32 %v703_v58, %v4751_v4  ;;  %v839_v14 = vmax.f32 %v507_v47, 0.0  ;;  %v841_v15 = vmax.f32 %v700_v48, 0.0 }
 0x1ad   :  { %v842_v10 = vmax.f32 %v509_v55, 0.0  ;;  %v844_v12 = vmax.f32 %v702_v56, 0.0 }
 0x1ae   :  { %v843_v16 = vmax.f32 %v511_v62, 0.0  ;;  %v845_v17 = vmax.f32 %v704_v5, 0.0 }
 0x1af   :  { %v930_v18 = vpack.c.bf16 %v842_v10, %v838_v7  ;;  %v4869_v20 = vpack.c.bf16 %v844_v12, %v840_v9 }
 0x1b0   :  { %v931_v22 = vpack.c.bf16 %v843_v16, %v839_v14  ;;  %v4871_v23 = vpack.c.bf16 %v845_v17, %v841_v15  ;;  %v514_v24 = vpop.f32.mrb[40].mxu0  ;;  %v707_v25 = vpop.f32.mrb[40].mxu1 }
 0x1b1   :  { %v515_v26 = vadd.f32 %v514_v24, %v4739_v1  ;;  %v708_v27 = vadd.f32 %v707_v25, %v4743_v2  ;;  %v516_v28 = vpop.f32.mrb[41].mxu0  ;;  %v709_v29 = vpop.f32.mrb[41].mxu1 }
 0x1b2   :  { %v517_v31 = vadd.f32 %v516_v28, %v4747_v3  ;;  %v710_v33 = vadd.f32 %v709_v29, %v4751_v4  ;;  %v518_v37 = vpop.f32.mrb[42].mxu0  ;;  %v711_v39 = vpop.f32.mrb[42].mxu1  ;;  %1870 = vmatprep.mubr.bf16.mxu0 %v931_v22  ;;  %2256 = vmatprep.mubr.bf16.mxu1 %v931_v22 }
 0x1b3   :  { %v519_v40 = vadd.f32 %v518_v37, %v4739_v1  ;;  %v712_v41 = vadd.f32 %v711_v39, %v4743_v2  ;;  %v520_v42 = vpop.f32.mrb[43].mxu0  ;;  %v713_v44 = vpop.f32.mrb[43].mxu1  ;;  %1871 = vmatmul.mubr.bf16.gmra.mrb[100].mxu0 %v930_v18  ;;  %2257 = vmatmul.mubr.bf16.gmra.mrb[100].mxu1 %v930_v18  ;;  %v846_v48 = vmax.f32 %v515_v26, 0.0  ;;  %v848_v50 = vmax.f32 %v708_v27, 0.0 }
 0x1b4   :  { %v521_v46 = vadd.f32 %v520_v42, %v4747_v3  ;;  %v714_v47 = vadd.f32 %v713_v44, %v4751_v4  ;;  %v847_v56 = vmax.f32 %v517_v31, 0.0  ;;  %v849_v57 = vmax.f32 %v710_v33, 0.0 }
 0x1b5   :  { %v850_v53 = vmax.f32 %v519_v40, 0.0  ;;  %v852_v55 = vmax.f32 %v712_v41, 0.0 }
 0x1b6   :  { %v851_v58 = vmax.f32 %v521_v46, 0.0  ;;  %v853_v62 = vmax.f32 %v714_v47, 0.0 }
 0x1b7   :  { %v934_v5 = vpack.c.bf16 %v850_v53, %v846_v48  ;;  %v4881_v7 = vpack.c.bf16 %v852_v55, %v848_v50 }
 0x1b8   :  { %v935_v9 = vpack.c.bf16 %v851_v58, %v847_v56  ;;  %v4883_v10 = vpack.c.bf16 %v853_v62, %v849_v57  ;;  %v524_v12 = vpop.f32.mrb[44].mxu0  ;;  %v717_v14 = vpop.f32.mrb[44].mxu1 }
 0x1b9   :  { %v525_v15 = vadd.f32 %v524_v12, %v4739_v1  ;;  %v718_v16 = vadd.f32 %v717_v14, %v4743_v2  ;;  %v526_v17 = vpop.f32.mrb[45].mxu0  ;;  %v719_v18 = vpop.f32.mrb[45].mxu1 }
 0x1ba   :  { %v527_v22 = vadd.f32 %v526_v17, %v4747_v3  ;;  %v720_v24 = vadd.f32 %v719_v18, %v4751_v4  ;;  %v528_v25 = vpop.f32.mrb[46].mxu0  ;;  %v721_v26 = vpop.f32.mrb[46].mxu1  ;;  %1880 = vmatprep.mubr.bf16.mxu0 %v935_v9  ;;  %2266 = vmatprep.mubr.bf16.mxu1 %v935_v9 }
 0x1bb   :  { %v529_v27 = vadd.f32 %v528_v25, %v4739_v1  ;;  %v722_v28 = vadd.f32 %v721_v26, %v4743_v2  ;;  %v530_v29 = vpop.f32.mrb[47].mxu0  ;;  %v723_v31 = vpop.f32.mrb[47].mxu1  ;;  %1881 = vmatmul.mubr.bf16.gmra.mrb[104].mxu0 %v934_v5  ;;  %2267 = vmatmul.mubr.bf16.gmra.mrb[104].mxu1 %v934_v5  ;;  %v854_v39 = vmax.f32 %v525_v15, 0.0  ;;  %v856_v40 = vmax.f32 %v718_v16, 0.0 }
 0x1bc   :  { %v531_v33 = vadd.f32 %v530_v29, %v4747_v3  ;;  %v724_v37 = vadd.f32 %v723_v31, %v4751_v4  ;;  %v855_v44 = vmax.f32 %v527_v22, 0.0  ;;  %v857_v46 = vmax.f32 %v720_v24, 0.0  ;;  %v4296_v29 = vld [vmem:[%s5391_s6 + $0xc0] sm:$0xff]  }
 0x1bd   :  { %v858_v41 = vmax.f32 %v529_v27, 0.0  ;;  %v860_v42 = vmax.f32 %v722_v28, 0.0  ;;  %v4294_v28 = vld [vmem:[%s5391_s6 + $0x40] sm:$0xff]   ;;  %3643 = vmatprep.subr.bf16.mxu1 %v4296_v29 }
 0x1be   :  { %v859_v47 = vmax.f32 %v531_v33, 0.0  ;;  %v861_v48 = vmax.f32 %v724_v37, 0.0  ;;  %3531 = vmatprep.subr.bf16.mxu0 %v4294_v28 }
 0x1bf   :  { %v938_v50 = vpack.c.bf16 %v858_v41, %v854_v39  ;;  %v4893_v53 = vpack.c.bf16 %v860_v42, %v856_v40 }
 0x1c0   :  { %v939_v55 = vpack.c.bf16 %v859_v47, %v855_v44  ;;  %v4895_v56 = vpack.c.bf16 %v861_v48, %v857_v46  ;;  %v534_v57 = vpop.f32.mrb[48].mxu0  ;;  %v727_v58 = vpop.f32.mrb[48].mxu1 }
 0x1c1   :  { %v535_v62 = vadd.f32 %v534_v57, %v4739_v1  ;;  %v728_v5 = vadd.f32 %v727_v58, %v4743_v2  ;;  %v536_v9 = vpop.f32.mrb[49].mxu0  ;;  %v729_v12 = vpop.f32.mrb[49].mxu1 }
 0x1c2   :  { %v537_v14 = vadd.f32 %v536_v9, %v4747_v3  ;;  %v730_v15 = vadd.f32 %v729_v12, %v4751_v4  ;;  %v538_v16 = vpop.f32.mrb[50].mxu0  ;;  %v731_v17 = vpop.f32.mrb[50].mxu1  ;;  %1890 = vmatprep.mubr.bf16.mxu0 %v939_v55  ;;  %2276 = vmatprep.mubr.bf16.mxu1 %v939_v55 }
 0x1c3   :  { %v539_v18 = vadd.f32 %v538_v16, %v4739_v1  ;;  %v732_v22 = vadd.f32 %v731_v17, %v4743_v2  ;;  %v540_v24 = vpop.f32.mrb[51].mxu0  ;;  %v733_v25 = vpop.f32.mrb[51].mxu1  ;;  %1891 = vmatmul.mubr.bf16.gmra.mrb[108].mxu0 %v938_v50  ;;  %2277 = vmatmul.mubr.bf16.gmra.mrb[108].mxu1 %v938_v50  ;;  %v862_v31 = vmax.f32 %v535_v62, 0.0  ;;  %v864_v33 = vmax.f32 %v728_v5, 0.0 }
 0x1c4   :  { %v541_v26 = vadd.f32 %v540_v24, %v4747_v3  ;;  %v734_v27 = vadd.f32 %v733_v25, %v4751_v4  ;;  %v863_v40 = vmax.f32 %v537_v14, 0.0  ;;  %v865_v41 = vmax.f32 %v730_v15, 0.0 }
 0x1c5   :  { %v866_v37 = vmax.f32 %v539_v18, 0.0  ;;  %v868_v39 = vmax.f32 %v732_v22, 0.0 }
 0x1c6   :  { %v867_v42 = vmax.f32 %v541_v26, 0.0  ;;  %v869_v44 = vmax.f32 %v734_v27, 0.0 }
 0x1c7   :  { %v942_v46 = vpack.c.bf16 %v866_v37, %v862_v31  ;;  %v4911_v47 = vpack.c.bf16 %v868_v39, %v864_v33 }
 0x1c8   :  { %v943_v48 = vpack.c.bf16 %v867_v42, %v863_v40  ;;  %v4913_v50 = vpack.c.bf16 %v869_v44, %v865_v41  ;;  %v544_v55 = vpop.f32.mrb[52].mxu0  ;;  %v737_v57 = vpop.f32.mrb[52].mxu1 }
 0x1c9   :  { %v545_v58 = vadd.f32 %v544_v55, %v4739_v1  ;;  %v738_v62 = vadd.f32 %v737_v57, %v4743_v2  ;;  %v546_v5 = vpop.f32.mrb[53].mxu0  ;;  %v739_v9 = vpop.f32.mrb[53].mxu1 }
 0x1ca   :  { %v547_v12 = vadd.f32 %v546_v5, %v4747_v3  ;;  %v740_v14 = vadd.f32 %v739_v9, %v4751_v4  ;;  %v548_v15 = vpop.f32.mrb[54].mxu0  ;;  %v741_v16 = vpop.f32.mrb[54].mxu1  ;;  %1900 = vmatprep.mubr.bf16.mxu0 %v943_v48  ;;  %2286 = vmatprep.mubr.bf16.mxu1 %v943_v48 }
 0x1cb   :  { %v549_v17 = vadd.f32 %v548_v15, %v4739_v1  ;;  %v742_v18 = vadd.f32 %v741_v16, %v4743_v2  ;;  %v550_v22 = vpop.f32.mrb[55].mxu0  ;;  %v743_v24 = vpop.f32.mrb[55].mxu1  ;;  %1901 = vmatmul.mubr.bf16.gmra.mrb[112].mxu0 %v942_v46  ;;  %2287 = vmatmul.mubr.bf16.gmra.mrb[112].mxu1 %v942_v46  ;;  %v870_v27 = vmax.f32 %v545_v58, 0.0  ;;  %v872_v28 = vmax.f32 %v738_v62, 0.0 }
 0x1cc   :  { %v551_v25 = vadd.f32 %v550_v22, %v4747_v3  ;;  %v744_v26 = vadd.f32 %v743_v24, %v4751_v4  ;;  %v871_v33 = vmax.f32 %v547_v12, 0.0  ;;  %v873_v37 = vmax.f32 %v740_v14, 0.0 }
 0x1cd   :  { %v874_v29 = vmax.f32 %v549_v17, 0.0  ;;  %v876_v31 = vmax.f32 %v742_v18, 0.0 }
 0x1ce   :  { %v875_v39 = vmax.f32 %v551_v25, 0.0  ;;  %v877_v40 = vmax.f32 %v744_v26, 0.0 }
 0x1cf   :  { %v946_v41 = vpack.c.bf16 %v874_v29, %v870_v27  ;;  %v4923_v42 = vpack.c.bf16 %v876_v31, %v872_v28 }
 0x1d0   :  { %v947_v44 = vpack.c.bf16 %v875_v39, %v871_v33  ;;  %v4925_v48 = vpack.c.bf16 %v877_v40, %v873_v37  ;;  %v554_v55 = vpop.f32.mrb[56].mxu0  ;;  %v747_v46 = vpop.f32.mrb[56].mxu1 }
 0x1d1   :  { %v555_v57 = vadd.f32 %v554_v55, %v4739_v1  ;;  %v748_v5 = vadd.f32 %v747_v46, %v4743_v2  ;;  %v556_v58 = vpop.f32.mrb[57].mxu0  ;;  %v749_v62 = vpop.f32.mrb[57].mxu1 }
 0x1d2   :  { %v557_v9 = vadd.f32 %v556_v58, %v4747_v3  ;;  %v750_v12 = vadd.f32 %v749_v62, %v4751_v4  ;;  %v558_v14 = vpop.f32.mrb[58].mxu0  ;;  %v751_v15 = vpop.f32.mrb[58].mxu1  ;;  %1910 = vmatprep.mubr.bf16.mxu0 %v947_v44  ;;  %2296 = vmatprep.mubr.bf16.mxu1 %v947_v44 }
 0x1d3   :  { %v559_v16 = vadd.f32 %v558_v14, %v4739_v1  ;;  %v752_v17 = vadd.f32 %v751_v15, %v4743_v2  ;;  %v560_v18 = vpop.f32.mrb[59].mxu0  ;;  %v753_v22 = vpop.f32.mrb[59].mxu1  ;;  %1911 = vmatmul.mubr.bf16.gmra.mrb[116].mxu0 %v946_v41  ;;  %2297 = vmatmul.mubr.bf16.gmra.mrb[116].mxu1 %v946_v41  ;;  %v878_v26 = vmax.f32 %v555_v57, 0.0  ;;  %v880_v27 = vmax.f32 %v748_v5, 0.0 }
 0x1d4   :  { %v561_v24 = vadd.f32 %v560_v18, %v4747_v3  ;;  %v754_v25 = vadd.f32 %v753_v22, %v4751_v4  ;;  %v879_v31 = vmax.f32 %v557_v9, 0.0  ;;  %v881_v33 = vmax.f32 %v750_v12, 0.0 }
 0x1d5   :  { %v882_v28 = vmax.f32 %v559_v16, 0.0  ;;  %v884_v29 = vmax.f32 %v752_v17, 0.0 }
 0x1d6   :  { %v883_v37 = vmax.f32 %v561_v24, 0.0  ;;  %v885_v39 = vmax.f32 %v754_v25, 0.0 }
 0x1d7   :  { %v950_v40 = vpack.c.bf16 %v882_v28, %v878_v26  ;;  %v4935_v44 = vpack.c.bf16 %v884_v29, %v880_v27 }
 0x1d8   :  { %v951_v55 = vpack.c.bf16 %v883_v37, %v879_v31  ;;  %v4937_v46 = vpack.c.bf16 %v885_v39, %v881_v33  ;;  %v564_v58 = vpop.f32.mrb[60].mxu0  ;;  %v757_v41 = vpop.f32.mrb[60].mxu1 }
 0x1d9   :  { %v565_v62 = vadd.f32 %v564_v58, %v4739_v1  ;;  %v758_v14 = vadd.f32 %v757_v41, %v4743_v2  ;;  %v566_v57 = vpop.f32.mrb[61].mxu0  ;;  %v759_v5 = vpop.f32.mrb[61].mxu1 }
 0x1da   :  { %v567_v15 = vadd.f32 %v566_v57, %v4747_v3  ;;  %v760_v9 = vadd.f32 %v759_v5, %v4751_v4  ;;  %v568_v12 = vpop.f32.mrb[62].mxu0  ;;  %v761_v16 = vpop.f32.mrb[62].mxu1  ;;  %1920 = vmatprep.mubr.bf16.mxu0 %v951_v55  ;;  %2306 = vmatprep.mubr.bf16.mxu1 %v951_v55  ;;  %v4303_v57 = vld [vmem:[%s5391_s6 + $0x10] sm:$0xff]  }
 0x1db   :  { %v569_v17 = vadd.f32 %v568_v12, %v4739_v1  ;;  %v762_v18 = vadd.f32 %v761_v16, %v4743_v2  ;;  %v570_v22 = vpop.f32.mrb[63].mxu0  ;;  %v763_v24 = vpop.f32.mrb[63].mxu1  ;;  %1921 = vmatmul.mubr.bf16.gmra.mrb[120].mxu0 %v950_v40  ;;  %2307 = vmatmul.mubr.bf16.gmra.mrb[120].mxu1 %v950_v40  ;;  %v886_v27 = vmax.f32 %v565_v62, 0.0  ;;  %v888_v28 = vmax.f32 %v758_v14, 0.0  ;;  %v4298_v40 = vld [vmem:[%s5391_s6 + $0x48] sm:$0xff]   ;;  %v4305_v5 = vld [vmem:[%s5391_s6 + $0x90] sm:$0xff]  }
 0x1dc   :  { %v571_v25 = vadd.f32 %v570_v22, %v4747_v3  ;;  %v764_v26 = vadd.f32 %v763_v24, %v4751_v4  ;;  %v887_v33 = vmax.f32 %v567_v15, 0.0  ;;  %v889_v37 = vmax.f32 %v760_v9, 0.0  ;;  %v4295_v3 = vld [vmem:[%s5391_s6] sm:$0xff]   ;;  %v4300_v62 = vld [vmem:[%s5391_s6 + $0xc8] sm:$0xff]   ;;  %v4306_v15 = vld [vmem:[%s5391_s6 + $0x58] sm:$0xff]  }
 0x1dd   :  { %v890_v29 = vmax.f32 %v569_v17, 0.0  ;;  %v892_v31 = vmax.f32 %v762_v18, 0.0  ;;  %v4297_v4 = vld [vmem:[%s5391_s6 + $0x80] sm:$0xff]   ;;  %v4301_v14 = vld [vmem:[%s5391_s6 + $0x88] sm:$0xff]   ;;  %v4308_v9 = vld [vmem:[%s5391_s6 + $0xd8] sm:$0xff]  }
 0x1de   :  { %v891_v39 = vmax.f32 %v571_v25, 0.0  ;;  %v893_v55 = vmax.f32 %v764_v26, 0.0  ;;  %v4307_v12 = vld [vmem:[%s5391_s6 + $0x18] sm:$0xff]   ;;  %v4311_v17 = vld [vmem:[%s5391_s6 + $0x20] sm:$0xff]   ;;  %v4314_v22 = vld [vmem:[%s5391_s6 + $0x68] sm:$0xff]  }
 0x1df   :  { %v954_v58 = vpack.c.bf16 %v890_v29, %v886_v27  ;;  %v4947_v1 = vpack.c.bf16 %v892_v31, %v888_v28  ;;  %v4309_v16 = vld [vmem:[%s5391_s6 + $0x98] sm:$0xff]   ;;  %v4313_v18 = vld [vmem:[%s5391_s6 + $0xa0] sm:$0xff]   ;;  %v4316_v24 = vld [vmem:[%s5391_s6 + $0xe8] sm:$0xff]  }
 0x1e0   :  { %v955_v2 = vpack.c.bf16 %v891_v39, %v887_v33  ;;  %v4949_v41 = vpack.c.bf16 %v893_v55, %v889_v37  ;;  %v4315_v25 = vld [vmem:[%s5391_s6 + $0x28] sm:$0xff]   ;;  %v4319_v27 = vld [vmem:[%s5391_s6 + $0x30] sm:$0xff]   ;;  %v4322_v29 = vld [vmem:[%s5391_s6 + $0x78] sm:$0xff]  }
 0x1e1   :  { %v4317_v26 = vld [vmem:[%s5391_s6 + $0xa8] sm:$0xff]   ;;  %v4321_v28 = vld [vmem:[%s5391_s6 + $0xb0] sm:$0xff]   ;;  %v4324_v31 = vld [vmem:[%s5391_s6 + $0xf8] sm:$0xff]  }
 0x1e2   :  { %1930 = vmatprep.mubr.bf16.mxu0 %v955_v2  ;;  %2316 = vmatprep.mubr.bf16.mxu1 %v955_v2  ;;  %v4323_v33 = vld [vmem:[%s5391_s6 + $0x38] sm:$0xff]  }
 0x1e3   :  { %1931 = vmatmul.mubr.bf16.gmra.mrb[124].mxu0 %v954_v58  ;;  %2317 = vmatmul.mubr.bf16.gmra.mrb[124].mxu1 %v954_v58  ;;  %v4325_v37 = vld [vmem:[%s5391_s6 + $0xb8] sm:$0xff]  }
 0x1e4   :  { %1973 = vmatprep.mubr.bf16.mxu0 %v4763_v32  ;;  %2359 = vmatprep.mubr.bf16.mxu1 %v4763_v32  ;;  %v4299_v32 = vld [vmem:[%s5391_s6 + $0x8] sm:$0xff]  }
 0x1eb   :  { %1974 = vmatmul.mubr.bf16.vlgmr.msra.gmra.mrb[64].mxu0 %v4761_v30  ;;  %2360 = vmatmul.mubr.bf16.vlgmr.msra.gmra.mrb[64].mxu1 %v4761_v30  ;;  %v4302_v30 = vld [vmem:[%s5391_s6 + $0x50] sm:$0xff]  }
 0x1ec   :  { %1983 = vmatprep.mubr.bf16.mxu0 %v4775_v13  ;;  %2369 = vmatprep.mubr.bf16.mxu1 %v4775_v13  ;;  %v4304_v13 = vld [vmem:[%s5391_s6 + $0xd0] sm:$0xff]  }
 0x1ed   :  { %3532 = vmatpush3.bf16.msra.mxu0 %v4295_v3  ;;  %3644 = vmatpush3.bf16.msra.mxu1 %v4297_v4 }
 0x1ee   :  { %3533 = vmatprep.subr.bf16.mxu0 %v4298_v40  ;;  %3645 = vmatprep.subr.bf16.mxu1 %v4300_v62 }
 0x1f1   :  { %3534 = vmatpush3.bf16.msra.mxu0 %v4299_v32  ;;  %3646 = vmatpush3.bf16.msra.mxu1 %v4301_v14 }
 0x1f2   :  { %3535 = vmatprep.subr.bf16.mxu0 %v4302_v30  ;;  %3647 = vmatprep.subr.bf16.mxu1 %v4304_v13 }
 0x1f3   :  { %1984 = vmatmul.mubr.bf16.gmra.mrb[68].mxu0 %v4773_v11  ;;  %2370 = vmatmul.mubr.bf16.gmra.mrb[68].mxu1 %v4773_v11  ;;  %v4310_v11 = vld [vmem:[%s5391_s6 + $0x60] sm:$0xff]  }
 0x1f4   :  { %1993 = vmatprep.mubr.bf16.mxu0 %v4787_v51  ;;  %2379 = vmatprep.mubr.bf16.mxu1 %v4787_v51  ;;  %v4312_v51 = vld [vmem:[%s5391_s6 + $0xe0] sm:$0xff]  }
 0x1f5   :  { %3536 = vmatpush3.bf16.msra.mxu0 %v4303_v57  ;;  %3648 = vmatpush3.bf16.msra.mxu1 %v4305_v5 }
 0x1f6   :  { %3537 = vmatprep.subr.bf16.mxu0 %v4306_v15  ;;  %3649 = vmatprep.subr.bf16.mxu1 %v4308_v9 }
 0x1f9   :  { %3538 = vmatpush3.bf16.msra.mxu0 %v4307_v12  ;;  %3650 = vmatpush3.bf16.msra.mxu1 %v4309_v16 }
 0x1fa   :  { %3539 = vmatprep.subr.bf16.mxu0 %v4310_v11  ;;  %3651 = vmatprep.subr.bf16.mxu1 %v4312_v51 }
 0x1fb   :  { %1994 = vmatmul.mubr.bf16.gmra.mrb[72].mxu0 %v4785_v49  ;;  %2380 = vmatmul.mubr.bf16.gmra.mrb[72].mxu1 %v4785_v49  ;;  %v4318_v49 = vld [vmem:[%s5391_s6 + $0x70] sm:$0xff]  }
 0x1fc   :  { %2003 = vmatprep.mubr.bf16.mxu0 %v4799_v36  ;;  %2389 = vmatprep.mubr.bf16.mxu1 %v4799_v36  ;;  %v4320_v36 = vld [vmem:[%s5391_s6 + $0xf0] sm:$0xff]  }
 0x1fd   :  { %3540 = vmatpush3.bf16.msra.mxu0 %v4311_v17  ;;  %3652 = vmatpush3.bf16.msra.mxu1 %v4313_v18 }
 0x1fe   :  { %3541 = vmatprep.subr.bf16.mxu0 %v4314_v22  ;;  %3653 = vmatprep.subr.bf16.mxu1 %v4316_v24 }
 0x201   :  { %3542 = vmatpush3.bf16.msra.mxu0 %v4315_v25  ;;  %3654 = vmatpush3.bf16.msra.mxu1 %v4317_v26 }
 0x202   :  { %3543 = vmatprep.subr.bf16.mxu0 %v4318_v49  ;;  %3655 = vmatprep.subr.bf16.mxu1 %v4320_v36 }
 0x203   :  { %2004 = vmatmul.mubr.bf16.gmra.mrb[76].mxu0 %v4797_v34  ;;  %2390 = vmatmul.mubr.bf16.gmra.mrb[76].mxu1 %v4797_v34  ;;  %v1086_v34 = vld [vmem:[%s5390_s5] sm:$0xf] }
 0x204   :  { %2013 = vmatprep.mubr.bf16.mxu0 %v4811_v21  ;;  %2399 = vmatprep.mubr.bf16.mxu1 %v4811_v21  ;;  %v5114_v21 = vrot.slane %v1086_v34, %v301_v61 }
 0x205   :  { %3544 = vmatpush3.bf16.msra.mxu0 %v4319_v27  ;;  %3656 = vmatpush3.bf16.msra.mxu1 %v4321_v28 }
 0x206   :  { %3545 = vmatprep.subr.bf16.mxu0 %v4322_v29  ;;  %3657 = vmatprep.subr.bf16.mxu1 %v4324_v31 }
 0x209   :  { %3546 = vmatpush3.bf16.msra.mxu0 %v4323_v33  ;;  %3658 = vmatpush3.bf16.msra.mxu1 %v4325_v37 }
 0x20b   :  { %2014 = vmatmul.mubr.bf16.gmra.mrb[80].mxu0 %v4809_v19  ;;  %2400 = vmatmul.mubr.bf16.gmra.mrb[80].mxu1 %v4809_v19  ;;  %v5110_v19 = vrot.slane %v1086_v34, %v293_v60 }
 0x20c   :  { %2023 = vmatprep.mubr.bf16.mxu0 %v4823_v8  ;;  %2409 = vmatprep.mubr.bf16.mxu1 %v4823_v8  ;;  %v5122_v8 = vrot.slane %v1086_v34, %v305_v0 }
 0x213   :  { %2024 = vmatmul.mubr.bf16.gmra.mrb[84].mxu0 %v4821_v6  ;;  %2410 = vmatmul.mubr.bf16.gmra.mrb[84].mxu1 %v4821_v6  ;;  %v5118_v6 = vrot.slane %v1086_v34, %v297_v63 }
 0x214   :  { %2033 = vmatprep.mubr.bf16.mxu0 %v4835_v54  ;;  %2419 = vmatprep.mubr.bf16.mxu1 %v4835_v54 }
 0x21b   :  { %2034 = vmatmul.mubr.bf16.gmra.mrb[88].mxu0 %v4833_v52  ;;  %2420 = vmatmul.mubr.bf16.gmra.mrb[88].mxu1 %v4833_v52 }
 0x21c   :  { %2043 = vmatprep.mubr.bf16.mxu0 %v4847_v45  ;;  %2429 = vmatprep.mubr.bf16.mxu1 %v4847_v45 }
 0x223   :  { %2044 = vmatmul.mubr.bf16.gmra.mrb[92].mxu0 %v4845_v43  ;;  %2430 = vmatmul.mubr.bf16.gmra.mrb[92].mxu1 %v4845_v43 }
 0x224   :  { %2053 = vmatprep.mubr.bf16.mxu0 %v4859_v38  ;;  %2439 = vmatprep.mubr.bf16.mxu1 %v4859_v38 }
 0x22b   :  { %2054 = vmatmul.mubr.bf16.gmra.mrb[96].mxu0 %v4857_v35  ;;  %2440 = vmatmul.mubr.bf16.gmra.mrb[96].mxu1 %v4857_v35 }
 0x22c   :  { %2063 = vmatprep.mubr.bf16.mxu0 %v4871_v23  ;;  %2449 = vmatprep.mubr.bf16.mxu1 %v4871_v23 }
 0x233   :  { %2064 = vmatmul.mubr.bf16.gmra.mrb[100].mxu0 %v4869_v20  ;;  %2450 = vmatmul.mubr.bf16.gmra.mrb[100].mxu1 %v4869_v20 }
 0x234   :  { %2073 = vmatprep.mubr.bf16.mxu0 %v4883_v10  ;;  %2459 = vmatprep.mubr.bf16.mxu1 %v4883_v10 }
 0x23b   :  { %2074 = vmatmul.mubr.bf16.gmra.mrb[104].mxu0 %v4881_v7  ;;  %2460 = vmatmul.mubr.bf16.gmra.mrb[104].mxu1 %v4881_v7 }
 0x23c   :  { %2083 = vmatprep.mubr.bf16.mxu0 %v4895_v56  ;;  %2469 = vmatprep.mubr.bf16.mxu1 %v4895_v56 }
 0x243   :  { %2084 = vmatmul.mubr.bf16.gmra.mrb[108].mxu0 %v4893_v53  ;;  %2470 = vmatmul.mubr.bf16.gmra.mrb[108].mxu1 %v4893_v53 }
 0x244   :  { %2093 = vmatprep.mubr.bf16.mxu0 %v4913_v50  ;;  %2479 = vmatprep.mubr.bf16.mxu1 %v4913_v50 }
 0x24b   :  { %2094 = vmatmul.mubr.bf16.gmra.mrb[112].mxu0 %v4911_v47  ;;  %2480 = vmatmul.mubr.bf16.gmra.mrb[112].mxu1 %v4911_v47 }
 0x24c   :  { %2103 = vmatprep.mubr.bf16.mxu0 %v4925_v48  ;;  %2489 = vmatprep.mubr.bf16.mxu1 %v4925_v48 }
 0x253   :  { %2104 = vmatmul.mubr.bf16.gmra.mrb[116].mxu0 %v4923_v42  ;;  %2490 = vmatmul.mubr.bf16.gmra.mrb[116].mxu1 %v4923_v42 }
 0x254   :  { %2113 = vmatprep.mubr.bf16.mxu0 %v4937_v46  ;;  %2499 = vmatprep.mubr.bf16.mxu1 %v4937_v46 }
 0x25b   :  { %2114 = vmatmul.mubr.bf16.gmra.mrb[120].mxu0 %v4935_v44  ;;  %2500 = vmatmul.mubr.bf16.gmra.mrb[120].mxu1 %v4935_v44 }
 0x25c   :  { %2123 = vmatprep.mubr.bf16.mxu0 %v4949_v41  ;;  %2509 = vmatprep.mubr.bf16.mxu1 %v4949_v41 }
 0x263   :  { %2124 = vmatmul.mubr.bf16.gmra.mrb[124].mxu0 %v4947_v1  ;;  %2510 = vmatmul.mubr.bf16.gmra.mrb[124].mxu1 %v4947_v1 }
 0x2be   :  { %v1975_v52 = vpop.f32.mrb[64].mxu0  ;;  %v2361_v54 = vpop.f32.mrb[64].mxu1 }
 0x2bf   :  { %v3755_v43 = vadd.f32 %v1975_v52, %v5110_v19  ;;  %v3819_v45 = vadd.f32 %v2361_v54, %v5114_v21  ;;  %v1977_v60 = vpop.f32.mrb[65].mxu0  ;;  %v2363_v35 = vpop.f32.mrb[65].mxu1 }
 0x2c0   :  { %v3756_v38 = vadd.f32 %v1977_v60, %v5118_v6  ;;  %v3820_v61 = vadd.f32 %v2363_v35, %v5122_v8  ;;  %v1979_v20 = vpop.f32.mrb[66].mxu0  ;;  %v2365_v23 = vpop.f32.mrb[66].mxu1 }
 0x2c1   :  { %v3757_v63 = vadd.f32 %v1979_v20, %v5110_v19  ;;  %v3821_v59 = vadd.f32 %v2365_v23, %v5114_v21  ;;  %v1981_v0 = vpop.f32.mrb[67].mxu0  ;;  %v2367_v7 = vpop.f32.mrb[67].mxu1  ;;  %v2520_v56 = vmax.f32 %v3755_v43, 0.0  ;;  %v2522_v47 = vmax.f32 %v3819_v45, 0.0 }
 0x2c2   :  { %v3758_v10 = vadd.f32 %v1981_v0, %v5118_v6  ;;  %v3822_v53 = vadd.f32 %v2367_v7, %v5122_v8  ;;  %v2521_v48 = vmax.f32 %v3756_v38, 0.0  ;;  %v2523_v44 = vmax.f32 %v3820_v61, 0.0 }
 0x2c3   :  { %v2524_v50 = vmax.f32 %v3757_v63, 0.0  ;;  %v2526_v42 = vmax.f32 %v3821_v59, 0.0 }
 0x2c4   :  { %v2525_v46 = vmax.f32 %v3758_v10, 0.0  ;;  %v2527_v39 = vmax.f32 %v3822_v53, 0.0 }
 0x2c5   :  { %v2648_v55 = vpack.c.bf16 %v2524_v50, %v2520_v56  ;;  %v2650_v58 = vpack.c.bf16 %v2526_v42, %v2522_v47 }
 0x2c6   :  { %v2649_v1 = vpack.c.bf16 %v2525_v46, %v2521_v48  ;;  %v2651_v2 = vpack.c.bf16 %v2527_v39, %v2523_v44  ;;  %v1985_v41 = vpop.f32.mrb[68].mxu0  ;;  %v2371_v3 = vpop.f32.mrb[68].mxu1 }
 0x2c7   :  { %v3759_v4 = vadd.f32 %v1985_v41, %v5110_v19  ;;  %v3823_v40 = vadd.f32 %v2371_v3, %v5114_v21  ;;  %v1987_v62 = vpop.f32.mrb[69].mxu0  ;;  %v2373_v32 = vpop.f32.mrb[69].mxu1 }
 0x2c8   :  { %v3760_v14 = vadd.f32 %v1987_v62, %v5118_v6  ;;  %v3824_v30 = vadd.f32 %v2373_v32, %v5122_v8  ;;  %v1989_v13 = vpop.f32.mrb[70].mxu0  ;;  %v2375_v57 = vpop.f32.mrb[70].mxu1  ;;  %3007 = vmatprep.mubr.bf16.mxu0 %v2649_v1  ;;  %3168 = vmatprep.mubr.bf16.mxu1 %v2651_v2 }
 0x2c9   :  { %v3761_v5 = vadd.f32 %v1989_v13, %v5110_v19  ;;  %v3825_v15 = vadd.f32 %v2375_v57, %v5114_v21  ;;  %v1991_v9 = vpop.f32.mrb[71].mxu0  ;;  %v2377_v12 = vpop.f32.mrb[71].mxu1  ;;  %3008 = vmatmul.mubr.bf16.vlgmr.msra.gmra.mrb[128].mxu0 %v2648_v55  ;;  %3169 = vmatmul.mubr.bf16.vlgmr.msra.gmra.mrb[128].mxu1 %v2650_v58  ;;  %v2528_v51 = vmax.f32 %v3759_v4, 0.0  ;;  %v2530_v17 = vmax.f32 %v3823_v40, 0.0 }
 0x2ca   :  { %v3762_v16 = vadd.f32 %v1991_v9, %v5118_v6  ;;  %v3826_v11 = vadd.f32 %v2377_v12, %v5122_v8  ;;  %v2529_v24 = vmax.f32 %v3760_v14, 0.0  ;;  %v2531_v25 = vmax.f32 %v3824_v30, 0.0 }
 0x2cb   :  { %v2532_v18 = vmax.f32 %v3761_v5, 0.0  ;;  %v2534_v22 = vmax.f32 %v3825_v15, 0.0 }
 0x2cc   :  { %v2533_v26 = vmax.f32 %v3762_v16, 0.0  ;;  %v2535_v49 = vmax.f32 %v3826_v11, 0.0 }
 0x2cd   :  { %v2652_v36 = vpack.c.bf16 %v2532_v18, %v2528_v51  ;;  %v2654_v27 = vpack.c.bf16 %v2534_v22, %v2530_v17 }
 0x2ce   :  { %v2653_v28 = vpack.c.bf16 %v2533_v26, %v2529_v24  ;;  %v2655_v29 = vpack.c.bf16 %v2535_v49, %v2531_v25  ;;  %v1995_v31 = vpop.f32.mrb[72].mxu0  ;;  %v2381_v33 = vpop.f32.mrb[72].mxu1 }
 0x2cf   :  { %v3763_v37 = vadd.f32 %v1995_v31, %v5110_v19  ;;  %v3827_v34 = vadd.f32 %v2381_v33, %v5114_v21  ;;  %v1997_v52 = vpop.f32.mrb[73].mxu0  ;;  %v2383_v54 = vpop.f32.mrb[73].mxu1 }
 0x2d0   :  { %v3764_v43 = vadd.f32 %v1997_v52, %v5118_v6  ;;  %v3828_v45 = vadd.f32 %v2383_v54, %v5122_v8  ;;  %v1999_v60 = vpop.f32.mrb[74].mxu0  ;;  %v2385_v35 = vpop.f32.mrb[74].mxu1  ;;  %3015 = vmatprep.mubr.bf16.mxu0 %v2653_v28  ;;  %3176 = vmatprep.mubr.bf16.mxu1 %v2655_v29 }
 0x2d1   :  { %v3765_v38 = vadd.f32 %v1999_v60, %v5110_v19  ;;  %v3829_v61 = vadd.f32 %v2385_v35, %v5114_v21  ;;  %v2001_v20 = vpop.f32.mrb[75].mxu0  ;;  %v2387_v23 = vpop.f32.mrb[75].mxu1  ;;  %3016 = vmatmul.mubr.bf16.gmra.mrb[132].mxu0 %v2652_v36  ;;  %3177 = vmatmul.mubr.bf16.gmra.mrb[132].mxu1 %v2654_v27  ;;  %v2536_v0 = vmax.f32 %v3763_v37, 0.0  ;;  %v2538_v7 = vmax.f32 %v3827_v34, 0.0 }
 0x2d2   :  { %v3766_v63 = vadd.f32 %v2001_v20, %v5118_v6  ;;  %v3830_v59 = vadd.f32 %v2387_v23, %v5122_v8  ;;  %v2537_v56 = vmax.f32 %v3764_v43, 0.0  ;;  %v2539_v47 = vmax.f32 %v3828_v45, 0.0 }
 0x2d3   :  { %v2540_v10 = vmax.f32 %v3765_v38, 0.0  ;;  %v2542_v53 = vmax.f32 %v3829_v61, 0.0 }
 0x2d4   :  { %v2541_v50 = vmax.f32 %v3766_v63, 0.0  ;;  %v2543_v42 = vmax.f32 %v3830_v59, 0.0 }
 0x2d5   :  { %v2656_v48 = vpack.c.bf16 %v2540_v10, %v2536_v0  ;;  %v2658_v44 = vpack.c.bf16 %v2542_v53, %v2538_v7 }
 0x2d6   :  { %v2657_v46 = vpack.c.bf16 %v2541_v50, %v2537_v56  ;;  %v2659_v39 = vpack.c.bf16 %v2543_v42, %v2539_v47  ;;  %v2005_v55 = vpop.f32.mrb[76].mxu0  ;;  %v2391_v58 = vpop.f32.mrb[76].mxu1 }
 0x2d7   :  { %v3767_v1 = vadd.f32 %v2005_v55, %v5110_v19  ;;  %v3831_v2 = vadd.f32 %v2391_v58, %v5114_v21  ;;  %v2007_v41 = vpop.f32.mrb[77].mxu0  ;;  %v2393_v3 = vpop.f32.mrb[77].mxu1 }
 0x2d8   :  { %v3768_v4 = vadd.f32 %v2007_v41, %v5118_v6  ;;  %v3832_v40 = vadd.f32 %v2393_v3, %v5122_v8  ;;  %v2009_v62 = vpop.f32.mrb[78].mxu0  ;;  %v2395_v32 = vpop.f32.mrb[78].mxu1  ;;  %3023 = vmatprep.mubr.bf16.mxu0 %v2657_v46  ;;  %3184 = vmatprep.mubr.bf16.mxu1 %v2659_v39 }
 0x2d9   :  { %v3769_v14 = vadd.f32 %v2009_v62, %v5110_v19  ;;  %v3833_v30 = vadd.f32 %v2395_v32, %v5114_v21  ;;  %v2011_v13 = vpop.f32.mrb[79].mxu0  ;;  %v2397_v57 = vpop.f32.mrb[79].mxu1  ;;  %3024 = vmatmul.mubr.bf16.gmra.mrb[136].mxu0 %v2656_v48  ;;  %3185 = vmatmul.mubr.bf16.gmra.mrb[136].mxu1 %v2658_v44  ;;  %v2544_v9 = vmax.f32 %v3767_v1, 0.0  ;;  %v2546_v12 = vmax.f32 %v3831_v2, 0.0 }
 0x2da   :  { %v3770_v5 = vadd.f32 %v2011_v13, %v5118_v6  ;;  %v3834_v15 = vadd.f32 %v2397_v57, %v5122_v8  ;;  %v2545_v51 = vmax.f32 %v3768_v4, 0.0  ;;  %v2547_v17 = vmax.f32 %v3832_v40, 0.0 }
 0x2db   :  { %v2548_v16 = vmax.f32 %v3769_v14, 0.0  ;;  %v2550_v11 = vmax.f32 %v3833_v30, 0.0 }
 0x2dc   :  { %v2549_v18 = vmax.f32 %v3770_v5, 0.0  ;;  %v2551_v22 = vmax.f32 %v3834_v15, 0.0 }
 0x2dd   :  { %v2660_v24 = vpack.c.bf16 %v2548_v16, %v2544_v9  ;;  %v2662_v25 = vpack.c.bf16 %v2550_v11, %v2546_v12 }
 0x2de   :  { %v2661_v26 = vpack.c.bf16 %v2549_v18, %v2545_v51  ;;  %v2663_v49 = vpack.c.bf16 %v2551_v22, %v2547_v17  ;;  %v2015_v36 = vpop.f32.mrb[80].mxu0  ;;  %v2401_v27 = vpop.f32.mrb[80].mxu1 }
 0x2df   :  { %v3771_v28 = vadd.f32 %v2015_v36, %v5110_v19  ;;  %v3835_v29 = vadd.f32 %v2401_v27, %v5114_v21  ;;  %v2017_v31 = vpop.f32.mrb[81].mxu0  ;;  %v2403_v33 = vpop.f32.mrb[81].mxu1 }
 0x2e0   :  { %v3772_v37 = vadd.f32 %v2017_v31, %v5118_v6  ;;  %v3836_v34 = vadd.f32 %v2403_v33, %v5122_v8  ;;  %v2019_v52 = vpop.f32.mrb[82].mxu0  ;;  %v2405_v54 = vpop.f32.mrb[82].mxu1  ;;  %3031 = vmatprep.mubr.bf16.mxu0 %v2661_v26  ;;  %3192 = vmatprep.mubr.bf16.mxu1 %v2663_v49 }
 0x2e1   :  { %v3773_v43 = vadd.f32 %v2019_v52, %v5110_v19  ;;  %v3837_v45 = vadd.f32 %v2405_v54, %v5114_v21  ;;  %v2021_v60 = vpop.f32.mrb[83].mxu0  ;;  %v2407_v35 = vpop.f32.mrb[83].mxu1  ;;  %3032 = vmatmul.mubr.bf16.gmra.mrb[140].mxu0 %v2660_v24  ;;  %3193 = vmatmul.mubr.bf16.gmra.mrb[140].mxu1 %v2662_v25  ;;  %v2552_v20 = vmax.f32 %v3771_v28, 0.0  ;;  %v2554_v23 = vmax.f32 %v3835_v29, 0.0 }
 0x2e2   :  { %v3774_v38 = vadd.f32 %v2021_v60, %v5118_v6  ;;  %v3838_v61 = vadd.f32 %v2407_v35, %v5122_v8  ;;  %v2553_v0 = vmax.f32 %v3772_v37, 0.0  ;;  %v2555_v7 = vmax.f32 %v3836_v34, 0.0 }
 0x2e3   :  { %v2556_v63 = vmax.f32 %v3773_v43, 0.0  ;;  %v2558_v59 = vmax.f32 %v3837_v45, 0.0 }
 0x2e4   :  { %v2557_v10 = vmax.f32 %v3774_v38, 0.0  ;;  %v2559_v53 = vmax.f32 %v3838_v61, 0.0 }
 0x2e5   :  { %v2664_v56 = vpack.c.bf16 %v2556_v63, %v2552_v20  ;;  %v2666_v47 = vpack.c.bf16 %v2558_v59, %v2554_v23 }
 0x2e6   :  { %v2665_v50 = vpack.c.bf16 %v2557_v10, %v2553_v0  ;;  %v2667_v42 = vpack.c.bf16 %v2559_v53, %v2555_v7  ;;  %v2025_v48 = vpop.f32.mrb[84].mxu0  ;;  %v2411_v44 = vpop.f32.mrb[84].mxu1 }
 0x2e7   :  { %v3775_v46 = vadd.f32 %v2025_v48, %v5110_v19  ;;  %v3839_v39 = vadd.f32 %v2411_v44, %v5114_v21  ;;  %v2027_v55 = vpop.f32.mrb[85].mxu0  ;;  %v2413_v58 = vpop.f32.mrb[85].mxu1 }
 0x2e8   :  { %v3776_v1 = vadd.f32 %v2027_v55, %v5118_v6  ;;  %v3840_v2 = vadd.f32 %v2413_v58, %v5122_v8  ;;  %v2029_v41 = vpop.f32.mrb[86].mxu0  ;;  %v2415_v3 = vpop.f32.mrb[86].mxu1  ;;  %3039 = vmatprep.mubr.bf16.mxu0 %v2665_v50  ;;  %3200 = vmatprep.mubr.bf16.mxu1 %v2667_v42 }
 0x2e9   :  { %v3777_v4 = vadd.f32 %v2029_v41, %v5110_v19  ;;  %v3841_v40 = vadd.f32 %v2415_v3, %v5114_v21  ;;  %v2031_v62 = vpop.f32.mrb[87].mxu0  ;;  %v2417_v32 = vpop.f32.mrb[87].mxu1  ;;  %3040 = vmatmul.mubr.bf16.gmra.mrb[144].mxu0 %v2664_v56  ;;  %3201 = vmatmul.mubr.bf16.gmra.mrb[144].mxu1 %v2666_v47  ;;  %v2560_v13 = vmax.f32 %v3775_v46, 0.0  ;;  %v2562_v57 = vmax.f32 %v3839_v39, 0.0 }
 0x2ea   :  { %v3778_v14 = vadd.f32 %v2031_v62, %v5118_v6  ;;  %v3842_v30 = vadd.f32 %v2417_v32, %v5122_v8  ;;  %v2561_v9 = vmax.f32 %v3776_v1, 0.0  ;;  %v2563_v12 = vmax.f32 %v3840_v2, 0.0 }
 0x2eb   :  { %v2564_v5 = vmax.f32 %v3777_v4, 0.0  ;;  %v2566_v15 = vmax.f32 %v3841_v40, 0.0 }
 0x2ec   :  { %v2565_v16 = vmax.f32 %v3778_v14, 0.0  ;;  %v2567_v11 = vmax.f32 %v3842_v30, 0.0 }
 0x2ed   :  { %v2668_v51 = vpack.c.bf16 %v2564_v5, %v2560_v13  ;;  %v2670_v17 = vpack.c.bf16 %v2566_v15, %v2562_v57 }
 0x2ee   :  { %v2669_v18 = vpack.c.bf16 %v2565_v16, %v2561_v9  ;;  %v2671_v22 = vpack.c.bf16 %v2567_v11, %v2563_v12  ;;  %v2035_v24 = vpop.f32.mrb[88].mxu0  ;;  %v2421_v25 = vpop.f32.mrb[88].mxu1 }
 0x2ef   :  { %v3779_v26 = vadd.f32 %v2035_v24, %v5110_v19  ;;  %v3843_v49 = vadd.f32 %v2421_v25, %v5114_v21  ;;  %v2037_v36 = vpop.f32.mrb[89].mxu0  ;;  %v2423_v27 = vpop.f32.mrb[89].mxu1 }
 0x2f0   :  { %v3780_v28 = vadd.f32 %v2037_v36, %v5118_v6  ;;  %v3844_v29 = vadd.f32 %v2423_v27, %v5122_v8  ;;  %v2039_v31 = vpop.f32.mrb[90].mxu0  ;;  %v2425_v33 = vpop.f32.mrb[90].mxu1  ;;  %3047 = vmatprep.mubr.bf16.mxu0 %v2669_v18  ;;  %3208 = vmatprep.mubr.bf16.mxu1 %v2671_v22 }
 0x2f1   :  { %v3781_v37 = vadd.f32 %v2039_v31, %v5110_v19  ;;  %v3845_v34 = vadd.f32 %v2425_v33, %v5114_v21  ;;  %v2041_v52 = vpop.f32.mrb[91].mxu0  ;;  %v2427_v54 = vpop.f32.mrb[91].mxu1  ;;  %3048 = vmatmul.mubr.bf16.gmra.mrb[148].mxu0 %v2668_v51  ;;  %3209 = vmatmul.mubr.bf16.gmra.mrb[148].mxu1 %v2670_v17  ;;  %v2568_v60 = vmax.f32 %v3779_v26, 0.0  ;;  %v2570_v35 = vmax.f32 %v3843_v49, 0.0 }
 0x2f2   :  { %v3782_v43 = vadd.f32 %v2041_v52, %v5118_v6  ;;  %v3846_v45 = vadd.f32 %v2427_v54, %v5122_v8  ;;  %v2569_v20 = vmax.f32 %v3780_v28, 0.0  ;;  %v2571_v23 = vmax.f32 %v3844_v29, 0.0 }
 0x2f3   :  { %v2572_v38 = vmax.f32 %v3781_v37, 0.0  ;;  %v2574_v61 = vmax.f32 %v3845_v34, 0.0 }
 0x2f4   :  { %v2573_v63 = vmax.f32 %v3782_v43, 0.0  ;;  %v2575_v59 = vmax.f32 %v3846_v45, 0.0 }
 0x2f5   :  { %v2672_v0 = vpack.c.bf16 %v2572_v38, %v2568_v60  ;;  %v2674_v7 = vpack.c.bf16 %v2574_v61, %v2570_v35 }
 0x2f6   :  { %v2673_v10 = vpack.c.bf16 %v2573_v63, %v2569_v20  ;;  %v2675_v53 = vpack.c.bf16 %v2575_v59, %v2571_v23  ;;  %v2045_v56 = vpop.f32.mrb[92].mxu0  ;;  %v2431_v47 = vpop.f32.mrb[92].mxu1 }
 0x2f7   :  { %v3783_v50 = vadd.f32 %v2045_v56, %v5110_v19  ;;  %v3847_v42 = vadd.f32 %v2431_v47, %v5114_v21  ;;  %v2047_v48 = vpop.f32.mrb[93].mxu0  ;;  %v2433_v44 = vpop.f32.mrb[93].mxu1 }
 0x2f8   :  { %v3784_v46 = vadd.f32 %v2047_v48, %v5118_v6  ;;  %v3848_v39 = vadd.f32 %v2433_v44, %v5122_v8  ;;  %v2049_v55 = vpop.f32.mrb[94].mxu0  ;;  %v2435_v58 = vpop.f32.mrb[94].mxu1  ;;  %3055 = vmatprep.mubr.bf16.mxu0 %v2673_v10  ;;  %3216 = vmatprep.mubr.bf16.mxu1 %v2675_v53 }
 0x2f9   :  { %v3785_v1 = vadd.f32 %v2049_v55, %v5110_v19  ;;  %v3849_v2 = vadd.f32 %v2435_v58, %v5114_v21  ;;  %v2051_v41 = vpop.f32.mrb[95].mxu0  ;;  %v2437_v3 = vpop.f32.mrb[95].mxu1  ;;  %3056 = vmatmul.mubr.bf16.gmra.mrb[152].mxu0 %v2672_v0  ;;  %3217 = vmatmul.mubr.bf16.gmra.mrb[152].mxu1 %v2674_v7  ;;  %v2576_v62 = vmax.f32 %v3783_v50, 0.0  ;;  %v2578_v32 = vmax.f32 %v3847_v42, 0.0 }
 0x2fa   :  { %v3786_v4 = vadd.f32 %v2051_v41, %v5118_v6  ;;  %v3850_v40 = vadd.f32 %v2437_v3, %v5122_v8  ;;  %v2577_v13 = vmax.f32 %v3784_v46, 0.0  ;;  %v2579_v57 = vmax.f32 %v3848_v39, 0.0 }
 0x2fb   :  { %v2580_v14 = vmax.f32 %v3785_v1, 0.0  ;;  %v2582_v30 = vmax.f32 %v3849_v2, 0.0 }
 0x2fc   :  { %v2581_v5 = vmax.f32 %v3786_v4, 0.0  ;;  %v2583_v15 = vmax.f32 %v3850_v40, 0.0 }
 0x2fd   :  { %v2676_v9 = vpack.c.bf16 %v2580_v14, %v2576_v62  ;;  %v2678_v12 = vpack.c.bf16 %v2582_v30, %v2578_v32 }
 0x2fe   :  { %v2677_v16 = vpack.c.bf16 %v2581_v5, %v2577_v13  ;;  %v2679_v11 = vpack.c.bf16 %v2583_v15, %v2579_v57  ;;  %v2055_v51 = vpop.f32.mrb[96].mxu0  ;;  %v2441_v17 = vpop.f32.mrb[96].mxu1 }
 0x2ff   :  { %v3787_v18 = vadd.f32 %v2055_v51, %v5110_v19  ;;  %v3851_v22 = vadd.f32 %v2441_v17, %v5114_v21  ;;  %v2057_v24 = vpop.f32.mrb[97].mxu0  ;;  %v2443_v25 = vpop.f32.mrb[97].mxu1 }
 0x300   :  { %v3788_v26 = vadd.f32 %v2057_v24, %v5118_v6  ;;  %v3852_v49 = vadd.f32 %v2443_v25, %v5122_v8  ;;  %v2059_v36 = vpop.f32.mrb[98].mxu0  ;;  %v2445_v27 = vpop.f32.mrb[98].mxu1  ;;  %3063 = vmatprep.mubr.bf16.mxu0 %v2677_v16  ;;  %3224 = vmatprep.mubr.bf16.mxu1 %v2679_v11 }
 0x301   :  { %v3789_v28 = vadd.f32 %v2059_v36, %v5110_v19  ;;  %v3853_v29 = vadd.f32 %v2445_v27, %v5114_v21  ;;  %v2061_v31 = vpop.f32.mrb[99].mxu0  ;;  %v2447_v33 = vpop.f32.mrb[99].mxu1  ;;  %3064 = vmatmul.mubr.bf16.gmra.mrb[156].mxu0 %v2676_v9  ;;  %3225 = vmatmul.mubr.bf16.gmra.mrb[156].mxu1 %v2678_v12  ;;  %v2584_v52 = vmax.f32 %v3787_v18, 0.0  ;;  %v2586_v54 = vmax.f32 %v3851_v22, 0.0 }
 0x302   :  { %v3790_v37 = vadd.f32 %v2061_v31, %v5118_v6  ;;  %v3854_v34 = vadd.f32 %v2447_v33, %v5122_v8  ;;  %v2585_v60 = vmax.f32 %v3788_v26, 0.0  ;;  %v2587_v35 = vmax.f32 %v3852_v49, 0.0 }
 0x303   :  { %v2588_v43 = vmax.f32 %v3789_v28, 0.0  ;;  %v2590_v45 = vmax.f32 %v3853_v29, 0.0 }
 0x304   :  { %v2589_v38 = vmax.f32 %v3790_v37, 0.0  ;;  %v2591_v61 = vmax.f32 %v3854_v34, 0.0 }
 0x305   :  { %v2680_v20 = vpack.c.bf16 %v2588_v43, %v2584_v52  ;;  %v2682_v23 = vpack.c.bf16 %v2590_v45, %v2586_v54 }
 0x306   :  { %v2681_v63 = vpack.c.bf16 %v2589_v38, %v2585_v60  ;;  %v2683_v59 = vpack.c.bf16 %v2591_v61, %v2587_v35  ;;  %v2065_v0 = vpop.f32.mrb[100].mxu0  ;;  %v2451_v7 = vpop.f32.mrb[100].mxu1 }
 0x307   :  { %v3791_v10 = vadd.f32 %v2065_v0, %v5110_v19  ;;  %v3855_v53 = vadd.f32 %v2451_v7, %v5114_v21  ;;  %v2067_v56 = vpop.f32.mrb[101].mxu0  ;;  %v2453_v47 = vpop.f32.mrb[101].mxu1 }
 0x308   :  { %v3792_v50 = vadd.f32 %v2067_v56, %v5118_v6  ;;  %v3856_v42 = vadd.f32 %v2453_v47, %v5122_v8  ;;  %v2069_v48 = vpop.f32.mrb[102].mxu0  ;;  %v2455_v44 = vpop.f32.mrb[102].mxu1  ;;  %3071 = vmatprep.mubr.bf16.mxu0 %v2681_v63  ;;  %3232 = vmatprep.mubr.bf16.mxu1 %v2683_v59 }
 0x309   :  { %v3793_v46 = vadd.f32 %v2069_v48, %v5110_v19  ;;  %v3857_v39 = vadd.f32 %v2455_v44, %v5114_v21  ;;  %v2071_v55 = vpop.f32.mrb[103].mxu0  ;;  %v2457_v58 = vpop.f32.mrb[103].mxu1  ;;  %3072 = vmatmul.mubr.bf16.gmra.mrb[160].mxu0 %v2680_v20  ;;  %3233 = vmatmul.mubr.bf16.gmra.mrb[160].mxu1 %v2682_v23  ;;  %v2592_v41 = vmax.f32 %v3791_v10, 0.0  ;;  %v2594_v3 = vmax.f32 %v3855_v53, 0.0 }
 0x30a   :  { %v3794_v1 = vadd.f32 %v2071_v55, %v5118_v6  ;;  %v3858_v2 = vadd.f32 %v2457_v58, %v5122_v8  ;;  %v2593_v62 = vmax.f32 %v3792_v50, 0.0  ;;  %v2595_v32 = vmax.f32 %v3856_v42, 0.0 }
 0x30b   :  { %v2596_v4 = vmax.f32 %v3793_v46, 0.0  ;;  %v2598_v40 = vmax.f32 %v3857_v39, 0.0 }
 0x30c   :  { %v2597_v14 = vmax.f32 %v3794_v1, 0.0  ;;  %v2599_v30 = vmax.f32 %v3858_v2, 0.0 }
 0x30d   :  { %v2684_v13 = vpack.c.bf16 %v2596_v4, %v2592_v41  ;;  %v2686_v57 = vpack.c.bf16 %v2598_v40, %v2594_v3 }
 0x30e   :  { %v2685_v5 = vpack.c.bf16 %v2597_v14, %v2593_v62  ;;  %v2687_v15 = vpack.c.bf16 %v2599_v30, %v2595_v32  ;;  %v2075_v9 = vpop.f32.mrb[104].mxu0  ;;  %v2461_v12 = vpop.f32.mrb[104].mxu1 }
 0x30f   :  { %v3795_v16 = vadd.f32 %v2075_v9, %v5110_v19  ;;  %v3859_v11 = vadd.f32 %v2461_v12, %v5114_v21  ;;  %v2077_v51 = vpop.f32.mrb[105].mxu0  ;;  %v2463_v17 = vpop.f32.mrb[105].mxu1 }
 0x310   :  { %v3796_v18 = vadd.f32 %v2077_v51, %v5118_v6  ;;  %v3860_v22 = vadd.f32 %v2463_v17, %v5122_v8  ;;  %v2079_v24 = vpop.f32.mrb[106].mxu0  ;;  %v2465_v25 = vpop.f32.mrb[106].mxu1  ;;  %3079 = vmatprep.mubr.bf16.mxu0 %v2685_v5  ;;  %3240 = vmatprep.mubr.bf16.mxu1 %v2687_v15 }
 0x311   :  { %v3797_v26 = vadd.f32 %v2079_v24, %v5110_v19  ;;  %v3861_v49 = vadd.f32 %v2465_v25, %v5114_v21  ;;  %v2081_v36 = vpop.f32.mrb[107].mxu0  ;;  %v2467_v27 = vpop.f32.mrb[107].mxu1  ;;  %3080 = vmatmul.mubr.bf16.gmra.mrb[164].mxu0 %v2684_v13  ;;  %3241 = vmatmul.mubr.bf16.gmra.mrb[164].mxu1 %v2686_v57  ;;  %v2600_v31 = vmax.f32 %v3795_v16, 0.0  ;;  %v2602_v33 = vmax.f32 %v3859_v11, 0.0 }
 0x312   :  { %v3798_v28 = vadd.f32 %v2081_v36, %v5118_v6  ;;  %v3862_v29 = vadd.f32 %v2467_v27, %v5122_v8  ;;  %v2601_v52 = vmax.f32 %v3796_v18, 0.0  ;;  %v2603_v54 = vmax.f32 %v3860_v22, 0.0 }
 0x313   :  { %v2604_v37 = vmax.f32 %v3797_v26, 0.0  ;;  %v2606_v34 = vmax.f32 %v3861_v49, 0.0 }
 0x314   :  { %v2605_v43 = vmax.f32 %v3798_v28, 0.0  ;;  %v2607_v45 = vmax.f32 %v3862_v29, 0.0 }
 0x315   :  { %v2688_v60 = vpack.c.bf16 %v2604_v37, %v2600_v31  ;;  %v2690_v35 = vpack.c.bf16 %v2606_v34, %v2602_v33 }
 0x316   :  { %v2689_v38 = vpack.c.bf16 %v2605_v43, %v2601_v52  ;;  %v2691_v61 = vpack.c.bf16 %v2607_v45, %v2603_v54  ;;  %v2085_v20 = vpop.f32.mrb[108].mxu0  ;;  %v2471_v23 = vpop.f32.mrb[108].mxu1 }
 0x317   :  { %v3799_v63 = vadd.f32 %v2085_v20, %v5110_v19  ;;  %v3863_v59 = vadd.f32 %v2471_v23, %v5114_v21  ;;  %v2087_v0 = vpop.f32.mrb[109].mxu0  ;;  %v2473_v7 = vpop.f32.mrb[109].mxu1 }
 0x318   :  { %v3800_v10 = vadd.f32 %v2087_v0, %v5118_v6  ;;  %v3864_v53 = vadd.f32 %v2473_v7, %v5122_v8  ;;  %v2089_v56 = vpop.f32.mrb[110].mxu0  ;;  %v2475_v47 = vpop.f32.mrb[110].mxu1  ;;  %3087 = vmatprep.mubr.bf16.mxu0 %v2689_v38  ;;  %3248 = vmatprep.mubr.bf16.mxu1 %v2691_v61 }
 0x319   :  { %v3801_v50 = vadd.f32 %v2089_v56, %v5110_v19  ;;  %v3865_v42 = vadd.f32 %v2475_v47, %v5114_v21  ;;  %v2091_v48 = vpop.f32.mrb[111].mxu0  ;;  %v2477_v44 = vpop.f32.mrb[111].mxu1  ;;  %3088 = vmatmul.mubr.bf16.gmra.mrb[168].mxu0 %v2688_v60  ;;  %3249 = vmatmul.mubr.bf16.gmra.mrb[168].mxu1 %v2690_v35  ;;  %v2608_v55 = vmax.f32 %v3799_v63, 0.0  ;;  %v2610_v58 = vmax.f32 %v3863_v59, 0.0 }
 0x31a   :  { %v3802_v46 = vadd.f32 %v2091_v48, %v5118_v6  ;;  %v3866_v39 = vadd.f32 %v2477_v44, %v5122_v8  ;;  %v2609_v41 = vmax.f32 %v3800_v10, 0.0  ;;  %v2611_v3 = vmax.f32 %v3864_v53, 0.0 }
 0x31b   :  { %v2612_v1 = vmax.f32 %v3801_v50, 0.0  ;;  %v2614_v2 = vmax.f32 %v3865_v42, 0.0 }
 0x31c   :  { %v2613_v4 = vmax.f32 %v3802_v46, 0.0  ;;  %v2615_v40 = vmax.f32 %v3866_v39, 0.0 }
 0x31d   :  { %v2692_v62 = vpack.c.bf16 %v2612_v1, %v2608_v55  ;;  %v2694_v32 = vpack.c.bf16 %v2614_v2, %v2610_v58 }
 0x31e   :  { %v2693_v14 = vpack.c.bf16 %v2613_v4, %v2609_v41  ;;  %v2695_v30 = vpack.c.bf16 %v2615_v40, %v2611_v3  ;;  %v2095_v13 = vpop.f32.mrb[112].mxu0  ;;  %v2481_v57 = vpop.f32.mrb[112].mxu1 }
 0x31f   :  { %v3803_v5 = vadd.f32 %v2095_v13, %v5110_v19  ;;  %v3867_v15 = vadd.f32 %v2481_v57, %v5114_v21  ;;  %v2097_v9 = vpop.f32.mrb[113].mxu0  ;;  %v2483_v12 = vpop.f32.mrb[113].mxu1 }
 0x320   :  { %v3804_v16 = vadd.f32 %v2097_v9, %v5118_v6  ;;  %v3868_v11 = vadd.f32 %v2483_v12, %v5122_v8  ;;  %v2099_v51 = vpop.f32.mrb[114].mxu0  ;;  %v2485_v17 = vpop.f32.mrb[114].mxu1  ;;  %3095 = vmatprep.mubr.bf16.mxu0 %v2693_v14  ;;  %3256 = vmatprep.mubr.bf16.mxu1 %v2695_v30 }
 0x321   :  { %v3805_v18 = vadd.f32 %v2099_v51, %v5110_v19  ;;  %v3869_v22 = vadd.f32 %v2485_v17, %v5114_v21  ;;  %v2101_v24 = vpop.f32.mrb[115].mxu0  ;;  %v2487_v25 = vpop.f32.mrb[115].mxu1  ;;  %3096 = vmatmul.mubr.bf16.gmra.mrb[172].mxu0 %v2692_v62  ;;  %3257 = vmatmul.mubr.bf16.gmra.mrb[172].mxu1 %v2694_v32  ;;  %v2616_v36 = vmax.f32 %v3803_v5, 0.0  ;;  %v2618_v27 = vmax.f32 %v3867_v15, 0.0 }
 0x322   :  { %v3806_v26 = vadd.f32 %v2101_v24, %v5118_v6  ;;  %v3870_v49 = vadd.f32 %v2487_v25, %v5122_v8  ;;  %v2617_v31 = vmax.f32 %v3804_v16, 0.0  ;;  %v2619_v33 = vmax.f32 %v3868_v11, 0.0 }
 0x323   :  { %v2620_v28 = vmax.f32 %v3805_v18, 0.0  ;;  %v2622_v29 = vmax.f32 %v3869_v22, 0.0 }
 0x324   :  { %v2621_v37 = vmax.f32 %v3806_v26, 0.0  ;;  %v2623_v34 = vmax.f32 %v3870_v49, 0.0 }
 0x325   :  { %v2696_v52 = vpack.c.bf16 %v2620_v28, %v2616_v36  ;;  %v2698_v54 = vpack.c.bf16 %v2622_v29, %v2618_v27 }
 0x326   :  { %v2697_v43 = vpack.c.bf16 %v2621_v37, %v2617_v31  ;;  %v2699_v45 = vpack.c.bf16 %v2623_v34, %v2619_v33  ;;  %v2105_v60 = vpop.f32.mrb[116].mxu0  ;;  %v2491_v35 = vpop.f32.mrb[116].mxu1 }
 0x327   :  { %v3807_v38 = vadd.f32 %v2105_v60, %v5110_v19  ;;  %v3871_v61 = vadd.f32 %v2491_v35, %v5114_v21  ;;  %v2107_v20 = vpop.f32.mrb[117].mxu0  ;;  %v2493_v23 = vpop.f32.mrb[117].mxu1 }
 0x328   :  { %v3808_v63 = vadd.f32 %v2107_v20, %v5118_v6  ;;  %v3872_v59 = vadd.f32 %v2493_v23, %v5122_v8  ;;  %v2109_v0 = vpop.f32.mrb[118].mxu0  ;;  %v2495_v7 = vpop.f32.mrb[118].mxu1  ;;  %3103 = vmatprep.mubr.bf16.mxu0 %v2697_v43  ;;  %3264 = vmatprep.mubr.bf16.mxu1 %v2699_v45 }
 0x329   :  { %v3809_v10 = vadd.f32 %v2109_v0, %v5110_v19  ;;  %v3873_v53 = vadd.f32 %v2495_v7, %v5114_v21  ;;  %v2111_v56 = vpop.f32.mrb[119].mxu0  ;;  %v2497_v47 = vpop.f32.mrb[119].mxu1  ;;  %3104 = vmatmul.mubr.bf16.gmra.mrb[176].mxu0 %v2696_v52  ;;  %3265 = vmatmul.mubr.bf16.gmra.mrb[176].mxu1 %v2698_v54  ;;  %v2624_v48 = vmax.f32 %v3807_v38, 0.0  ;;  %v2626_v44 = vmax.f32 %v3871_v61, 0.0 }
 0x32a   :  { %v3810_v50 = vadd.f32 %v2111_v56, %v5118_v6  ;;  %v3874_v42 = vadd.f32 %v2497_v47, %v5122_v8  ;;  %v2625_v55 = vmax.f32 %v3808_v63, 0.0  ;;  %v2627_v58 = vmax.f32 %v3872_v59, 0.0 }
 0x32b   :  { %v2628_v46 = vmax.f32 %v3809_v10, 0.0  ;;  %v2630_v39 = vmax.f32 %v3873_v53, 0.0 }
 0x32c   :  { %v2629_v1 = vmax.f32 %v3810_v50, 0.0  ;;  %v2631_v2 = vmax.f32 %v3874_v42, 0.0 }
 0x32d   :  { %v2700_v41 = vpack.c.bf16 %v2628_v46, %v2624_v48  ;;  %v2702_v3 = vpack.c.bf16 %v2630_v39, %v2626_v44 }
 0x32e   :  { %v2701_v4 = vpack.c.bf16 %v2629_v1, %v2625_v55  ;;  %v2703_v40 = vpack.c.bf16 %v2631_v2, %v2627_v58  ;;  %v2115_v62 = vpop.f32.mrb[120].mxu0  ;;  %v2501_v32 = vpop.f32.mrb[120].mxu1 }
 0x32f   :  { %v3811_v14 = vadd.f32 %v2115_v62, %v5110_v19  ;;  %v3875_v30 = vadd.f32 %v2501_v32, %v5114_v21  ;;  %v2117_v13 = vpop.f32.mrb[121].mxu0  ;;  %v2503_v57 = vpop.f32.mrb[121].mxu1 }
 0x330   :  { %v3812_v5 = vadd.f32 %v2117_v13, %v5118_v6  ;;  %v3876_v15 = vadd.f32 %v2503_v57, %v5122_v8  ;;  %v2119_v9 = vpop.f32.mrb[122].mxu0  ;;  %v2505_v12 = vpop.f32.mrb[122].mxu1  ;;  %3111 = vmatprep.mubr.bf16.mxu0 %v2701_v4  ;;  %3272 = vmatprep.mubr.bf16.mxu1 %v2703_v40 }
 0x331   :  { %v3813_v16 = vadd.f32 %v2119_v9, %v5110_v19  ;;  %v3877_v11 = vadd.f32 %v2505_v12, %v5114_v21  ;;  %v2121_v51 = vpop.f32.mrb[123].mxu0  ;;  %v2507_v17 = vpop.f32.mrb[123].mxu1  ;;  %3112 = vmatmul.mubr.bf16.gmra.mrb[180].mxu0 %v2700_v41  ;;  %3273 = vmatmul.mubr.bf16.gmra.mrb[180].mxu1 %v2702_v3  ;;  %v2632_v24 = vmax.f32 %v3811_v14, 0.0  ;;  %v2634_v25 = vmax.f32 %v3875_v30, 0.0 }
 0x332   :  { %v3814_v18 = vadd.f32 %v2121_v51, %v5118_v6  ;;  %v3878_v22 = vadd.f32 %v2507_v17, %v5122_v8  ;;  %v2633_v36 = vmax.f32 %v3812_v5, 0.0  ;;  %v2635_v27 = vmax.f32 %v3876_v15, 0.0 }
 0x333   :  { %v2636_v26 = vmax.f32 %v3813_v16, 0.0  ;;  %v2638_v49 = vmax.f32 %v3877_v11, 0.0 }
 0x334   :  { %v2637_v28 = vmax.f32 %v3814_v18, 0.0  ;;  %v2639_v29 = vmax.f32 %v3878_v22, 0.0 }
 0x335   :  { %v2704_v31 = vpack.c.bf16 %v2636_v26, %v2632_v24  ;;  %v2706_v33 = vpack.c.bf16 %v2638_v49, %v2634_v25 }
 0x336   :  { %v2705_v37 = vpack.c.bf16 %v2637_v28, %v2633_v36  ;;  %v2707_v34 = vpack.c.bf16 %v2639_v29, %v2635_v27  ;;  %v2125_v52 = vpop.f32.mrb[124].mxu0  ;;  %v2511_v54 = vpop.f32.mrb[124].mxu1 }
 0x337   :  { %v3815_v43 = vadd.f32 %v2125_v52, %v5110_v19  ;;  %v3879_v45 = vadd.f32 %v2511_v54, %v5114_v21  ;;  %v2127_v60 = vpop.f32.mrb[125].mxu0  ;;  %v2513_v35 = vpop.f32.mrb[125].mxu1 }
 0x338   :  { %v3816_v38 = vadd.f32 %v2127_v60, %v5118_v6  ;;  %v3880_v61 = vadd.f32 %v2513_v35, %v5122_v8  ;;  %v2129_v20 = vpop.f32.mrb[126].mxu0  ;;  %v2515_v23 = vpop.f32.mrb[126].mxu1  ;;  %3119 = vmatprep.mubr.bf16.mxu0 %v2705_v37  ;;  %3280 = vmatprep.mubr.bf16.mxu1 %v2707_v34 }
 0x339   :  { %v3817_v63 = vadd.f32 %v2129_v20, %v5110_v19  ;;  %v3881_v59 = vadd.f32 %v2515_v23, %v5114_v21  ;;  %v2131_v0 = vpop.f32.mrb[127].mxu0  ;;  %v2517_v7 = vpop.f32.mrb[127].mxu1  ;;  %3120 = vmatmul.mubr.bf16.gmra.mrb[184].mxu0 %v2704_v31  ;;  %3281 = vmatmul.mubr.bf16.gmra.mrb[184].mxu1 %v2706_v33  ;;  %v2640_v56 = vmax.f32 %v3815_v43, 0.0  ;;  %v2642_v47 = vmax.f32 %v3879_v45, 0.0 }
 0x33a   :  { %v3818_v10 = vadd.f32 %v2131_v0, %v5118_v6  ;;  %v3882_v53 = vadd.f32 %v2517_v7, %v5122_v8  ;;  %v2641_v48 = vmax.f32 %v3816_v38, 0.0  ;;  %v2643_v44 = vmax.f32 %v3880_v61, 0.0  ;;  %v5255_v8 = vld [vmem:[%s5392_s7] ss:$0 sm:$0xff] }
 0x33b   :  { %v2644_v50 = vmax.f32 %v3817_v63, 0.0  ;;  %v2646_v42 = vmax.f32 %v3881_v59, 0.0 }
 0x33c   :  { %v2645_v46 = vmax.f32 %v3818_v10, 0.0  ;;  %v2647_v39 = vmax.f32 %v3882_v53, 0.0 }
 0x33d   :  { %v2708_v55 = vpack.c.bf16 %v2644_v50, %v2640_v56  ;;  %v2710_v19 = vpack.c.bf16 %v2646_v42, %v2642_v47 }
 0x33e   :  { %v2709_v58 = vpack.c.bf16 %v2645_v46, %v2641_v48  ;;  %v2711_v21 = vpack.c.bf16 %v2647_v39, %v2643_v44 }
 0x340   :  { %3127 = vmatprep.mubr.bf16.mxu0 %v2709_v58  ;;  %3288 = vmatprep.mubr.bf16.mxu1 %v2711_v21 }
 0x341   :  { %3128 = vmatmul.mubr.bf16.gmra.mrb[188].mxu0 %v2708_v55  ;;  %3289 = vmatmul.mubr.bf16.gmra.mrb[188].mxu1 %v2710_v19 }
 0x39c   :  { %v3547_v1 = vpop.f32.mrb[128].mxu0  ;;  %v3659_v6 = vpop.f32.mrb[128].mxu1 }
 0x39d   :  { %v3548_v2 = vpop.f32.mrb[129].mxu0  ;;  %v3660_v41 = vpop.f32.mrb[129].mxu1 }
 0x39e   :  { %v3549_v3 = vadd.f32 %v3548_v2, %v3547_v1  ;;  %v3661_v4 = vadd.f32 %v3660_v41, %v3659_v6  ;;  %v3550_v40 = vpop.f32.mrb[130].mxu0  ;;  %v3662_v62 = vpop.f32.mrb[130].mxu1 }
 0x39f   :  { %v3551_v32 = vpop.f32.mrb[131].mxu0  ;;  %v3663_v14 = vpop.f32.mrb[131].mxu1 }
 0x3a0   :  { %v3010_v30 = vadd.f32 %v3549_v3, %v5255_v8  ;;  %v3552_v13 = vadd.f32 %v3551_v32, %v3550_v40  ;;  %v3664_v57 = vadd.f32 %v3663_v14, %v3662_v62 }
 0x3a2   :  { %v3171_v5 = vadd.f32 %v3661_v4, %v3010_v30  ;;  %v3013_v15 = vadd.f32 %v3552_v13, %v5255_v8 }
 0x3a4   :  { %3297 = vst [vmem:[%s5393_s8] sm:$0xff] %v3171_v5  ;;  %v3174_v9 = vadd.f32 %v3664_v57, %v3013_v15  ;;  %v3553_v12 = vpop.f32.mrb[132].mxu0  ;;  %v3665_v16 = vpop.f32.mrb[132].mxu1 }
 0x3a5   :  { %v3554_v11 = vpop.f32.mrb[133].mxu0  ;;  %v3666_v51 = vpop.f32.mrb[133].mxu1 }
 0x3a6   :  { %3298 = vst [vmem:[%s5393_s8 + $0x8] sm:$0xff] %v3174_v9  ;;  %v3555_v17 = vadd.f32 %v3554_v11, %v3553_v12  ;;  %v3667_v18 = vadd.f32 %v3666_v51, %v3665_v16  ;;  %v3556_v22 = vpop.f32.mrb[134].mxu0  ;;  %v3668_v24 = vpop.f32.mrb[134].mxu1 }
 0x3a7   :  { %v3557_v25 = vpop.f32.mrb[135].mxu0  ;;  %v3669_v26 = vpop.f32.mrb[135].mxu1 }
 0x3a8   :  { %v3018_v49 = vadd.f32 %v3555_v17, %v5255_v8  ;;  %v3558_v36 = vadd.f32 %v3557_v25, %v3556_v22  ;;  %v3670_v27 = vadd.f32 %v3669_v26, %v3668_v24 }
 0x3aa   :  { %v3179_v28 = vadd.f32 %v3667_v18, %v3018_v49  ;;  %v3021_v29 = vadd.f32 %v3558_v36, %v5255_v8 }
 0x3ac   :  { %3299 = vst [vmem:[%s5393_s8 + $0x10] sm:$0xff] %v3179_v28  ;;  %v3182_v31 = vadd.f32 %v3670_v27, %v3021_v29  ;;  %v3559_v33 = vpop.f32.mrb[136].mxu0  ;;  %v3671_v37 = vpop.f32.mrb[136].mxu1 }
 0x3ad   :  { %v3560_v34 = vpop.f32.mrb[137].mxu0  ;;  %v3672_v52 = vpop.f32.mrb[137].mxu1 }
 0x3ae   :  { %3300 = vst [vmem:[%s5393_s8 + $0x18] sm:$0xff] %v3182_v31  ;;  %v3561_v54 = vadd.f32 %v3560_v34, %v3559_v33  ;;  %v3673_v43 = vadd.f32 %v3672_v52, %v3671_v37  ;;  %v3562_v45 = vpop.f32.mrb[138].mxu0  ;;  %v3674_v60 = vpop.f32.mrb[138].mxu1 }
 0x3af   :  { %v3563_v35 = vpop.f32.mrb[139].mxu0  ;;  %v3675_v38 = vpop.f32.mrb[139].mxu1 }
 0x3b0   :  { %v3026_v61 = vadd.f32 %v3561_v54, %v5255_v8  ;;  %v3564_v20 = vadd.f32 %v3563_v35, %v3562_v45  ;;  %v3676_v23 = vadd.f32 %v3675_v38, %v3674_v60 }
 0x3b2   :  { %v3187_v63 = vadd.f32 %v3673_v43, %v3026_v61  ;;  %v3029_v59 = vadd.f32 %v3564_v20, %v5255_v8 }
 0x3b4   :  { %3301 = vst [vmem:[%s5393_s8 + $0x20] sm:$0xff] %v3187_v63  ;;  %v3190_v0 = vadd.f32 %v3676_v23, %v3029_v59  ;;  %v3565_v7 = vpop.f32.mrb[140].mxu0  ;;  %v3677_v10 = vpop.f32.mrb[140].mxu1 }
 0x3b5   :  { %v3566_v53 = vpop.f32.mrb[141].mxu0  ;;  %v3678_v56 = vpop.f32.mrb[141].mxu1 }
 0x3b6   :  { %3302 = vst [vmem:[%s5393_s8 + $0x28] sm:$0xff] %v3190_v0  ;;  %v3567_v47 = vadd.f32 %v3566_v53, %v3565_v7  ;;  %v3679_v50 = vadd.f32 %v3678_v56, %v3677_v10  ;;  %v3568_v42 = vpop.f32.mrb[142].mxu0  ;;  %v3680_v48 = vpop.f32.mrb[142].mxu1 }
 0x3b7   :  { %v3569_v44 = vpop.f32.mrb[143].mxu0  ;;  %v3681_v46 = vpop.f32.mrb[143].mxu1 }
 0x3b8   :  { %v3034_v39 = vadd.f32 %v3567_v47, %v5255_v8  ;;  %v3570_v55 = vadd.f32 %v3569_v44, %v3568_v42  ;;  %v3682_v19 = vadd.f32 %v3681_v46, %v3680_v48 }
 0x3ba   :  { %v3195_v58 = vadd.f32 %v3679_v50, %v3034_v39  ;;  %v3037_v21 = vadd.f32 %v3570_v55, %v5255_v8 }
 0x3bc   :  { %3303 = vst [vmem:[%s5393_s8 + $0x30] sm:$0xff] %v3195_v58  ;;  %v3198_v1 = vadd.f32 %v3682_v19, %v3037_v21  ;;  %v3571_v6 = vpop.f32.mrb[144].mxu0  ;;  %v3683_v2 = vpop.f32.mrb[144].mxu1 }
 0x3bd   :  { %v3572_v41 = vpop.f32.mrb[145].mxu0  ;;  %v3684_v3 = vpop.f32.mrb[145].mxu1 }
 0x3be   :  { %3304 = vst [vmem:[%s5393_s8 + $0x38] sm:$0xff] %v3198_v1  ;;  %v3573_v4 = vadd.f32 %v3572_v41, %v3571_v6  ;;  %v3685_v40 = vadd.f32 %v3684_v3, %v3683_v2  ;;  %v3574_v62 = vpop.f32.mrb[146].mxu0  ;;  %v3686_v32 = vpop.f32.mrb[146].mxu1 }
 0x3bf   :  { %v3575_v14 = vpop.f32.mrb[147].mxu0  ;;  %v3687_v30 = vpop.f32.mrb[147].mxu1 }
 0x3c0   :  { %v3042_v13 = vadd.f32 %v3573_v4, %v5255_v8  ;;  %v3576_v57 = vadd.f32 %v3575_v14, %v3574_v62  ;;  %v3688_v5 = vadd.f32 %v3687_v30, %v3686_v32 }
 0x3c2   :  { %v3203_v15 = vadd.f32 %v3685_v40, %v3042_v13  ;;  %v3045_v9 = vadd.f32 %v3576_v57, %v5255_v8 }
 0x3c4   :  { %3305 = vst [vmem:[%s5393_s8 + $0x40] sm:$0xff] %v3203_v15  ;;  %v3206_v12 = vadd.f32 %v3688_v5, %v3045_v9  ;;  %v3577_v16 = vpop.f32.mrb[148].mxu0  ;;  %v3689_v11 = vpop.f32.mrb[148].mxu1 }
 0x3c5   :  { %v3578_v51 = vpop.f32.mrb[149].mxu0  ;;  %v3690_v17 = vpop.f32.mrb[149].mxu1 }
 0x3c6   :  { %3306 = vst [vmem:[%s5393_s8 + $0x48] sm:$0xff] %v3206_v12  ;;  %v3579_v18 = vadd.f32 %v3578_v51, %v3577_v16  ;;  %v3691_v22 = vadd.f32 %v3690_v17, %v3689_v11  ;;  %v3580_v24 = vpop.f32.mrb[150].mxu0  ;;  %v3692_v25 = vpop.f32.mrb[150].mxu1 }
 0x3c7   :  { %v3581_v26 = vpop.f32.mrb[151].mxu0  ;;  %v3693_v49 = vpop.f32.mrb[151].mxu1 }
 0x3c8   :  { %v3050_v36 = vadd.f32 %v3579_v18, %v5255_v8  ;;  %v3582_v27 = vadd.f32 %v3581_v26, %v3580_v24  ;;  %v3694_v28 = vadd.f32 %v3693_v49, %v3692_v25 }
 0x3ca   :  { %v3211_v29 = vadd.f32 %v3691_v22, %v3050_v36  ;;  %v3053_v31 = vadd.f32 %v3582_v27, %v5255_v8 }
 0x3cc   :  { %3307 = vst [vmem:[%s5393_s8 + $0x50] sm:$0xff] %v3211_v29  ;;  %v3214_v33 = vadd.f32 %v3694_v28, %v3053_v31  ;;  %v3583_v37 = vpop.f32.mrb[152].mxu0  ;;  %v3695_v34 = vpop.f32.mrb[152].mxu1 }
 0x3cd   :  { %v3584_v52 = vpop.f32.mrb[153].mxu0  ;;  %v3696_v54 = vpop.f32.mrb[153].mxu1 }
 0x3ce   :  { %3308 = vst [vmem:[%s5393_s8 + $0x58] sm:$0xff] %v3214_v33  ;;  %v3585_v43 = vadd.f32 %v3584_v52, %v3583_v37  ;;  %v3697_v45 = vadd.f32 %v3696_v54, %v3695_v34  ;;  %v3586_v60 = vpop.f32.mrb[154].mxu0  ;;  %v3698_v35 = vpop.f32.mrb[154].mxu1 }
 0x3cf   :  { %v3587_v38 = vpop.f32.mrb[155].mxu0  ;;  %v3699_v61 = vpop.f32.mrb[155].mxu1 }
 0x3d0   :  { %v3058_v20 = vadd.f32 %v3585_v43, %v5255_v8  ;;  %v3588_v23 = vadd.f32 %v3587_v38, %v3586_v60  ;;  %v3700_v63 = vadd.f32 %v3699_v61, %v3698_v35 }
 0x3d2   :  { %v3219_v59 = vadd.f32 %v3697_v45, %v3058_v20  ;;  %v3061_v0 = vadd.f32 %v3588_v23, %v5255_v8 }
 0x3d4   :  { %3309 = vst [vmem:[%s5393_s8 + $0x60] sm:$0xff] %v3219_v59  ;;  %v3222_v7 = vadd.f32 %v3700_v63, %v3061_v0  ;;  %v3589_v10 = vpop.f32.mrb[156].mxu0  ;;  %v3701_v53 = vpop.f32.mrb[156].mxu1 }
 0x3d5   :  { %v3590_v56 = vpop.f32.mrb[157].mxu0  ;;  %v3702_v47 = vpop.f32.mrb[157].mxu1 }
 0x3d6   :  { %3310 = vst [vmem:[%s5393_s8 + $0x68] sm:$0xff] %v3222_v7  ;;  %v3591_v50 = vadd.f32 %v3590_v56, %v3589_v10  ;;  %v3703_v42 = vadd.f32 %v3702_v47, %v3701_v53  ;;  %v3592_v48 = vpop.f32.mrb[158].mxu0  ;;  %v3704_v44 = vpop.f32.mrb[158].mxu1 }
 0x3d7   :  { %v3593_v46 = vpop.f32.mrb[159].mxu0  ;;  %v3705_v39 = vpop.f32.mrb[159].mxu1 }
 0x3d8   :  { %v3066_v55 = vadd.f32 %v3591_v50, %v5255_v8  ;;  %v3594_v19 = vadd.f32 %v3593_v46, %v3592_v48  ;;  %v3706_v58 = vadd.f32 %v3705_v39, %v3704_v44 }
 0x3da   :  { %v3227_v21 = vadd.f32 %v3703_v42, %v3066_v55  ;;  %v3069_v1 = vadd.f32 %v3594_v19, %v5255_v8 }
 0x3dc   :  { %3311 = vst [vmem:[%s5393_s8 + $0x70] sm:$0xff] %v3227_v21  ;;  %v3230_v6 = vadd.f32 %v3706_v58, %v3069_v1  ;;  %v3595_v2 = vpop.f32.mrb[160].mxu0  ;;  %v3707_v41 = vpop.f32.mrb[160].mxu1 }
 0x3dd   :  { %v3596_v3 = vpop.f32.mrb[161].mxu0  ;;  %v3708_v4 = vpop.f32.mrb[161].mxu1 }
 0x3de   :  { %3312 = vst [vmem:[%s5393_s8 + $0x78] sm:$0xff] %v3230_v6  ;;  %v3597_v40 = vadd.f32 %v3596_v3, %v3595_v2  ;;  %v3709_v62 = vadd.f32 %v3708_v4, %v3707_v41  ;;  %v3598_v32 = vpop.f32.mrb[162].mxu0  ;;  %v3710_v14 = vpop.f32.mrb[162].mxu1 }
 0x3df   :  { %v3599_v30 = vpop.f32.mrb[163].mxu0  ;;  %v3711_v13 = vpop.f32.mrb[163].mxu1 }
 0x3e0   :  { %v3074_v57 = vadd.f32 %v3597_v40, %v5255_v8  ;;  %v3600_v5 = vadd.f32 %v3599_v30, %v3598_v32  ;;  %v3712_v15 = vadd.f32 %v3711_v13, %v3710_v14 }
 0x3e2   :  { %v3235_v9 = vadd.f32 %v3709_v62, %v3074_v57  ;;  %v3077_v12 = vadd.f32 %v3600_v5, %v5255_v8 }
 0x3e4   :  { %3313 = vst [vmem:[%s5393_s8 + $0x80] sm:$0xff] %v3235_v9  ;;  %v3238_v16 = vadd.f32 %v3712_v15, %v3077_v12  ;;  %v3601_v11 = vpop.f32.mrb[164].mxu0  ;;  %v3713_v51 = vpop.f32.mrb[164].mxu1 }
 0x3e5   :  { %v3602_v17 = vpop.f32.mrb[165].mxu0  ;;  %v3714_v18 = vpop.f32.mrb[165].mxu1 }
 0x3e6   :  { %3314 = vst [vmem:[%s5393_s8 + $0x88] sm:$0xff] %v3238_v16  ;;  %v3603_v22 = vadd.f32 %v3602_v17, %v3601_v11  ;;  %v3715_v24 = vadd.f32 %v3714_v18, %v3713_v51  ;;  %v3604_v25 = vpop.f32.mrb[166].mxu0  ;;  %v3716_v26 = vpop.f32.mrb[166].mxu1 }
 0x3e7   :  { %v3605_v49 = vpop.f32.mrb[167].mxu0  ;;  %v3717_v36 = vpop.f32.mrb[167].mxu1 }
 0x3e8   :  { %v3082_v27 = vadd.f32 %v3603_v22, %v5255_v8  ;;  %v3606_v28 = vadd.f32 %v3605_v49, %v3604_v25  ;;  %v3718_v29 = vadd.f32 %v3717_v36, %v3716_v26 }
 0x3ea   :  { %v3243_v31 = vadd.f32 %v3715_v24, %v3082_v27  ;;  %v3085_v33 = vadd.f32 %v3606_v28, %v5255_v8 }
 0x3ec   :  { %3315 = vst [vmem:[%s5393_s8 + $0x90] sm:$0xff] %v3243_v31  ;;  %v3246_v37 = vadd.f32 %v3718_v29, %v3085_v33  ;;  %v3607_v34 = vpop.f32.mrb[168].mxu0  ;;  %v3719_v52 = vpop.f32.mrb[168].mxu1 }
 0x3ed   :  { %v3608_v54 = vpop.f32.mrb[169].mxu0  ;;  %v3720_v43 = vpop.f32.mrb[169].mxu1 }
 0x3ee   :  { %3316 = vst [vmem:[%s5393_s8 + $0x98] sm:$0xff] %v3246_v37  ;;  %v3609_v45 = vadd.f32 %v3608_v54, %v3607_v34  ;;  %v3721_v60 = vadd.f32 %v3720_v43, %v3719_v52  ;;  %v3610_v35 = vpop.f32.mrb[170].mxu0  ;;  %v3722_v38 = vpop.f32.mrb[170].mxu1 }
 0x3ef   :  { %v3611_v61 = vpop.f32.mrb[171].mxu0  ;;  %v3723_v20 = vpop.f32.mrb[171].mxu1 }
 0x3f0   :  { %v3090_v23 = vadd.f32 %v3609_v45, %v5255_v8  ;;  %v3612_v63 = vadd.f32 %v3611_v61, %v3610_v35  ;;  %v3724_v59 = vadd.f32 %v3723_v20, %v3722_v38 }
 0x3f2   :  { %v3251_v0 = vadd.f32 %v3721_v60, %v3090_v23  ;;  %v3093_v7 = vadd.f32 %v3612_v63, %v5255_v8 }
 0x3f4   :  { %3317 = vst [vmem:[%s5393_s8 + $0xa0] sm:$0xff] %v3251_v0  ;;  %v3254_v10 = vadd.f32 %v3724_v59, %v3093_v7  ;;  %v3613_v53 = vpop.f32.mrb[172].mxu0  ;;  %v3725_v56 = vpop.f32.mrb[172].mxu1 }
 0x3f5   :  { %v3614_v47 = vpop.f32.mrb[173].mxu0  ;;  %v3726_v50 = vpop.f32.mrb[173].mxu1 }
 0x3f6   :  { %3318 = vst [vmem:[%s5393_s8 + $0xa8] sm:$0xff] %v3254_v10  ;;  %v3615_v42 = vadd.f32 %v3614_v47, %v3613_v53  ;;  %v3727_v48 = vadd.f32 %v3726_v50, %v3725_v56  ;;  %v3616_v44 = vpop.f32.mrb[174].mxu0  ;;  %v3728_v46 = vpop.f32.mrb[174].mxu1 }
 0x3f7   :  { %v3617_v39 = vpop.f32.mrb[175].mxu0  ;;  %v3729_v55 = vpop.f32.mrb[175].mxu1 }
 0x3f8   :  { %v3098_v19 = vadd.f32 %v3615_v42, %v5255_v8  ;;  %v3618_v58 = vadd.f32 %v3617_v39, %v3616_v44  ;;  %v3730_v21 = vadd.f32 %v3729_v55, %v3728_v46 }
 0x3fa   :  { %v3259_v1 = vadd.f32 %v3727_v48, %v3098_v19  ;;  %v3101_v6 = vadd.f32 %v3618_v58, %v5255_v8 }
 0x3fc   :  { %3319 = vst [vmem:[%s5393_s8 + $0xb0] sm:$0xff] %v3259_v1  ;;  %v3262_v2 = vadd.f32 %v3730_v21, %v3101_v6  ;;  %v3619_v41 = vpop.f32.mrb[176].mxu0  ;;  %v3731_v3 = vpop.f32.mrb[176].mxu1 }
 0x3fd   :  { %v3620_v4 = vpop.f32.mrb[177].mxu0  ;;  %v3732_v40 = vpop.f32.mrb[177].mxu1 }
 0x3fe   :  { %3320 = vst [vmem:[%s5393_s8 + $0xb8] sm:$0xff] %v3262_v2  ;;  %v3621_v62 = vadd.f32 %v3620_v4, %v3619_v41  ;;  %v3733_v32 = vadd.f32 %v3732_v40, %v3731_v3  ;;  %v3622_v14 = vpop.f32.mrb[178].mxu0  ;;  %v3734_v30 = vpop.f32.mrb[178].mxu1 }
 0x3ff   :  { %v3623_v13 = vpop.f32.mrb[179].mxu0  ;;  %v3735_v57 = vpop.f32.mrb[179].mxu1 }
 0x400   :  { %v3106_v5 = vadd.f32 %v3621_v62, %v5255_v8  ;;  %v3624_v15 = vadd.f32 %v3623_v13, %v3622_v14  ;;  %v3736_v9 = vadd.f32 %v3735_v57, %v3734_v30 }
 0x402   :  { %v3267_v12 = vadd.f32 %v3733_v32, %v3106_v5  ;;  %v3109_v16 = vadd.f32 %v3624_v15, %v5255_v8 }
 0x404   :  { %3321 = vst [vmem:[%s5393_s8 + $0xc0] sm:$0xff] %v3267_v12  ;;  %v3270_v11 = vadd.f32 %v3736_v9, %v3109_v16  ;;  %v3625_v51 = vpop.f32.mrb[180].mxu0  ;;  %v3737_v17 = vpop.f32.mrb[180].mxu1 }
 0x405   :  { %v3626_v18 = vpop.f32.mrb[181].mxu0  ;;  %v3738_v22 = vpop.f32.mrb[181].mxu1 }
 0x406   :  { %3322 = vst [vmem:[%s5393_s8 + $0xc8] sm:$0xff] %v3270_v11  ;;  %v3627_v24 = vadd.f32 %v3626_v18, %v3625_v51  ;;  %v3739_v25 = vadd.f32 %v3738_v22, %v3737_v17  ;;  %v3628_v26 = vpop.f32.mrb[182].mxu0  ;;  %v3740_v49 = vpop.f32.mrb[182].mxu1 }
 0x407   :  { %v3629_v36 = vpop.f32.mrb[183].mxu0  ;;  %v3741_v27 = vpop.f32.mrb[183].mxu1 }
 0x408   :  { %v3114_v28 = vadd.f32 %v3627_v24, %v5255_v8  ;;  %v3630_v29 = vadd.f32 %v3629_v36, %v3628_v26  ;;  %v3742_v31 = vadd.f32 %v3741_v27, %v3740_v49 }
 0x40a   :  { %v3275_v33 = vadd.f32 %v3739_v25, %v3114_v28  ;;  %v3117_v37 = vadd.f32 %v3630_v29, %v5255_v8 }
 0x40c   :  { %3323 = vst [vmem:[%s5393_s8 + $0xd0] sm:$0xff] %v3275_v33  ;;  %v3278_v34 = vadd.f32 %v3742_v31, %v3117_v37  ;;  %v3631_v52 = vpop.f32.mrb[184].mxu0  ;;  %v3743_v54 = vpop.f32.mrb[184].mxu1 }
 0x40d   :  { %v3632_v43 = vpop.f32.mrb[185].mxu0  ;;  %v3744_v45 = vpop.f32.mrb[185].mxu1 }
 0x40e   :  { %3324 = vst [vmem:[%s5393_s8 + $0xd8] sm:$0xff] %v3278_v34  ;;  %v3633_v60 = vadd.f32 %v3632_v43, %v3631_v52  ;;  %v3745_v35 = vadd.f32 %v3744_v45, %v3743_v54  ;;  %v3634_v38 = vpop.f32.mrb[186].mxu0  ;;  %v3746_v61 = vpop.f32.mrb[186].mxu1 }
 0x40f   :  { %v3635_v20 = vpop.f32.mrb[187].mxu0  ;;  %v3747_v23 = vpop.f32.mrb[187].mxu1 }
 0x410   :  { %v3122_v63 = vadd.f32 %v3633_v60, %v5255_v8  ;;  %v3636_v59 = vadd.f32 %v3635_v20, %v3634_v38  ;;  %v3748_v0 = vadd.f32 %v3747_v23, %v3746_v61 }
 0x412   :  { %v3283_v7 = vadd.f32 %v3745_v35, %v3122_v63  ;;  %v3125_v10 = vadd.f32 %v3636_v59, %v5255_v8 }
 0x414   :  { %3325 = vst [vmem:[%s5393_s8 + $0xe0] sm:$0xff] %v3283_v7  ;;  %v3286_v53 = vadd.f32 %v3748_v0, %v3125_v10  ;;  %v3637_v56 = vpop.f32.mrb[188].mxu0  ;;  %v3749_v47 = vpop.f32.mrb[188].mxu1 }
 0x415   :  { %v3638_v50 = vpop.f32.mrb[189].mxu0  ;;  %v3750_v42 = vpop.f32.mrb[189].mxu1 }
 0x416   :  { %3326 = vst [vmem:[%s5393_s8 + $0xe8] sm:$0xff] %v3286_v53  ;;  %v3639_v48 = vadd.f32 %v3638_v50, %v3637_v56  ;;  %v3751_v44 = vadd.f32 %v3750_v42, %v3749_v47  ;;  %v3640_v46 = vpop.f32.mrb[190].mxu0  ;;  %v3752_v39 = vpop.f32.mrb[190].mxu1 }
 0x417   :  { %v3641_v55 = vpop.f32.mrb[191].mxu0  ;;  %v3753_v19 = vpop.f32.mrb[191].mxu1 }
 0x418   :  { %v3130_v58 = vadd.f32 %v3639_v48, %v5255_v8  ;;  %v3642_v21 = vadd.f32 %v3641_v55, %v3640_v46  ;;  %v3754_v1 = vadd.f32 %v3753_v19, %v3752_v39 }
 0x41a   :  { %v3291_v6 = vadd.f32 %v3751_v44, %v3130_v58  ;;  %v3133_v2 = vadd.f32 %v3642_v21, %v5255_v8 }
 0x41c   :  { %3327 = vst [vmem:[%s5393_s8 + $0xf0] sm:$0xff] %v3291_v6  ;;  %v3294_v41 = vadd.f32 %v3754_v1, %v3133_v2 }
 0x41e   :  { %3328 = vst [vmem:[%s5393_s8 + $0xf8] sm:$0xff] %v3294_v41 }
 0x41f   :  { %3333 = vsyncpa [#allocation3], 1 }

</bundles_post_ra>
